<compile_context>
chip_gen: v6e
topology: v6e:2x2x1
jax: 0.10.0
libtpu: 0.0.40
codegen_flags: <defaults>
</compile_context>

<pallas_src>
import jax
import jax.numpy as jnp
from jax.experimental import pallas as pl
from jax.experimental.pallas import tpu as pltpu


# ----------------------------------------------------------------------------
# Conv block kernel: conv3d(k=3, pad=1) + bias + ReLU + BN + depth-pair maxpool
# ----------------------------------------------------------------------------
def _make_conv_kernel(H, WCo):
    def kernel(xp_ref, bmat_ref, bias_ref, scale_ref, shift_ref, o_ref):
        # xp_ref:   (1, D+2, H+2, (W+2)*Cin)  bf16  padded volume of one sample
        # bmat_ref: (9, (W+2)*Cin, W*Cout)    bf16  banded per-(kd,kh) tap weights
        # bias/scale/shift: (1, W*Cout)       f32   per-(w, cout) rows (BN folded)
        # o_ref:    (1, 1, H, W*Cout)         f32   depth-pooled conv output plane
        do = pl.program_id(1)
        d0 = 2 * do                       # padded depth base of the pooled pair

        acc0 = jnp.zeros((H, WCo), jnp.float32)   # output depth 2*do
        acc1 = jnp.zeros((H, WCo), jnp.float32)   # output depth 2*do + 1
        for t in range(9):                # unrolled taps over (kd, kh)
            kd, kh = divmod(t, 3)
            b_t = bmat_ref[t]                                   # ((W+2)*Cin, W*Cout)
            a0 = xp_ref[0, d0 + kd, pl.ds(kh, H), :]            # (H, (W+2)*Cin)
            a1 = xp_ref[0, d0 + 1 + kd, pl.ds(kh, H), :]
            acc0 = acc0 + jnp.dot(a0, b_t, preferred_element_type=jnp.float32)
            acc1 = acc1 + jnp.dot(a1, b_t, preferred_element_type=jnp.float32)

        bias = bias_ref[...]
        scale = scale_ref[...]
        shift = shift_ref[...]

        def epi(a):                       # bn(relu(conv(x) + b)) — PyTorch ordering
            return scale * jnp.maximum(a + bias, 0.0) + shift

        # maxpool over the depth pair (pool is applied after bn/relu, so epi first)
        o_ref[0, 0] = jnp.maximum(epi(acc0), epi(acc1))

    return kernel


def conv_block(x, weight, bias, gamma, beta, mean, var, eps=1e-5):
    """x: (N, D, H, W*Cin) channels-last fused.

    Returns pool(bn(relu(conv(x)))) as (N, D//2, H//2, (W//2)*Cout), same layout.
    """
    N, D, H, WC = x.shape
    c_out, c_in = weight.shape[0], weight.shape[1]
    assert WC % c_in == 0
    W = WC // c_in
    assert D % 2 == 0 and H % 2 == 0 and W % 2 == 0
    Do, Ho, Wo = D // 2, H // 2, W // 2
    Kdim, WCo = (W + 2) * c_in, W * c_out

    # Zero-pad D, H, W by 1 (W padding lives inside the fused minor dim).
    x5 = x.reshape(N, D, H, W, c_in)
    x5 = jnp.pad(x5, ((0, 0), (1, 1), (1, 1), (1, 1), (0, 0)))
    xp = x5.reshape(N, D + 2, H + 2, Kdim).astype(jnp.bfloat16)

    # Banded tap weights: for tap (kd, kh),
    #   B[(w+kw)*Cin + ci, w*Cout + co] = weight[co, ci, kd, kh, kw]
    # so A(H, (W+2)*Cin) @ B gives the conv contribution of that tap for all (w, co).
    wt = weight.astype(jnp.float32)
    w_idx = jnp.arange(W)
    bmats = []
    for kd in range(3):
        for kh in range(3):
            b4 = jnp.zeros((W + 2, c_in, W, c_out), jnp.float32)
            for kw in range(3):
                v = jnp.broadcast_to(wt[:, :, kd, kh, kw].T, (W, c_in, c_out))
                b4 = b4.at[w_idx + kw, :, w_idx, :].add(v)
            bmats.append(b4.reshape(Kdim, WCo))
    bmat = jnp.stack(bmats, axis=0).astype(jnp.bfloat16)       # (9, Kdim, WCo)

    # Fold BN (inference) and tile per-channel params across W for the fused lanes.
    scale = gamma / jnp.sqrt(var + eps)
    shift = beta - mean * scale
    bias_row = jnp.tile(bias.astype(jnp.float32), W).reshape(1, WCo)
    scale_row = jnp.tile(scale.astype(jnp.float32), W).reshape(1, WCo)
    shift_row = jnp.tile(shift.astype(jnp.float32), W).reshape(1, WCo)

    kernel = _make_conv_kernel(H, WCo)
    y = pl.pallas_call(
        kernel,
        out_shape=jax.ShapeDtypeStruct((N, Do, H, WCo), jnp.float32),
        grid=(N, Do),
        in_specs=[
            # whole padded sample volume; block index depends only on n -> DMA'd once
            # per sample and kept resident across the Do steps.
            pl.BlockSpec((1, D + 2, H + 2, Kdim), lambda n, do: (n, 0, 0, 0)),
            pl.BlockSpec((9, Kdim, WCo), lambda n, do: (0, 0, 0)),
            pl.BlockSpec((1, WCo), lambda n, do: (0, 0)),
            pl.BlockSpec((1, WCo), lambda n, do: (0, 0)),
            pl.BlockSpec((1, WCo), lambda n, do: (0, 0)),
        ],
        out_specs=pl.BlockSpec((1, 1, H, WCo), lambda n, do: (n, do, 0, 0)),
        compiler_params=pltpu.CompilerParams(
            dimension_semantics=("parallel", "parallel"),
            vmem_limit_bytes=48 * 1024 * 1024,
        ),
    )(xp, bmat, bias_row, scale_row, shift_row)

    # Remaining 2x2 max over H and W (depth already pooled in-kernel); cheap XLA op
    # on the depth-halved tensor, stays in the fused channels-last layout.
    y = y.reshape(N, Do, Ho, 2, Wo, 2, c_out)
    y = jnp.max(y, axis=(3, 5))
    return y.reshape(N, Do, Ho, Wo * c_out)


# ----------------------------------------------------------------------------
# MLP head: fc1 (K-tiled, f32 accumulator) -> ReLU -> (dropout = identity) -> fc2
# ----------------------------------------------------------------------------
def mlp_head_kernel(x_ref, w1_ref, b1_ref, w2_ref, b2_ref, o_ref, acc_ref):
    k = pl.program_id(0)

    @pl.when(k == 0)
    def _():
        acc_ref[...] = jnp.zeros_like(acc_ref)

    acc_ref[...] += jnp.dot(x_ref[...], w1_ref[...], preferred_element_type=jnp.float32)

    @pl.when(k == pl.num_programs(0) - 1)
    def _():
        h = jnp.maximum(acc_ref[...] + b1_ref[...], 0.0)        # relu(fc1)
        o_ref[...] = jnp.dot(h, w2_ref[...], preferred_element_type=jnp.float32) + b2_ref[...]


def mlp_head(x, w1, b1, w2, b2):
    N, F = x.shape
    Hd, O = w1.shape[1], w2.shape[1]

    tk = F
    for cand in (1024, 512, 256, 128):
        if F >= 2 * cand and F % cand == 0:
            tk = cand
            break
    nk = F // tk

    return pl.pallas_call(
        mlp_head_kernel,
        out_shape=jax.ShapeDtypeStruct((N, O), jnp.float32),
        grid=(nk,),
        in_specs=[
            pl.BlockSpec((N, tk), lambda k: (0, k)),
            pl.BlockSpec((tk, Hd), lambda k: (k, 0)),
            pl.BlockSpec((1, Hd), lambda k: (0, 0)),
            pl.BlockSpec((Hd, O), lambda k: (0, 0)),
            pl.BlockSpec((1, O), lambda k: (0, 0)),
        ],
        out_specs=pl.BlockSpec((N, O), lambda k: (0, 0)),
        scratch_shapes=[pltpu.VMEM((N, Hd), jnp.float32)],
        compiler_params=pltpu.CompilerParams(
            dimension_semantics=("arbitrary",),
            vmem_limit_bytes=48 * 1024 * 1024,
        ),
    )(x.astype(jnp.bfloat16), w1.astype(jnp.bfloat16),
      b1.reshape(1, Hd).astype(jnp.float32),
      w2.astype(jnp.float32), b2.reshape(1, O).astype(jnp.float32))


# ----------------------------------------------------------------------------
# Full forward pass
# ----------------------------------------------------------------------------
def cnn3d_forward(x, params):
    p = params
    N, C, D, H, W = x.shape
    # Single layout change at entry: NCDHW -> channels-last fused (N, D, H, W*C).
    h = x.transpose(0, 2, 3, 4, 1).reshape(N, D, H, W * C)

    # block 1: pool1(bn1(relu(conv1(x))))
    h = conv_block(h, p["w1"], p["c1b"], p["g1"], p["be1"], p["m1"], p["v1"])
    # block 2: pool2(bn2(relu(conv2(x)))); dropout2 = identity (eval)
    h = conv_block(h, p["w2"], p["c2b"], p["g2"], p["be2"], p["m2"], p["v2"])
    # block 3: pool3(bn3(relu(conv3(x))))
    h = conv_block(h, p["w3"], p["c3b"], p["g3"], p["be3"], p["m3"], p["v3"])

    # Single permute back to channel-major order so the flatten matches torch's
    # x.view(N, -1) on an NCDHW tensor.  dropout = identity (eval).
    n, d, hh, wc = h.shape
    c = p["w3"].shape[0]
    w = wc // c
    flat = h.reshape(n, d, hh, w, c).transpose(0, 4, 1, 2, 3).reshape(n, -1)
    return mlp_head(flat, p["fc1w"], p["fc1b"], p["fc2w"], p["fc2b"])


def init_params(key, spatial):
    ks = jax.random.split(key, 22)
    s3 = spatial // 8                      # spatial size after 3 max-pools
    fc1_in = 32 * s3 * s3 * s3
    f = lambda k, shape, s=0.1: (s * jax.random.normal(k, shape)).astype(jnp.float32)
    return {
        "w1": f(ks[0], (8, 1, 3, 3, 3)),    "c1b": f(ks[1], (8,)),
        "g1": 1.0 + f(ks[2], (8,)),         "be1": f(ks[3], (8,)),
        "m1": f(ks[4], (8,)),               "v1": 1.0 + jnp.abs(f(ks[5], (8,))),
        "w2": f(ks[6], (16, 8, 3, 3, 3)),   "c2b": f(ks[7], (16,)),
        "g2": 1.0 + f(ks[8], (16,)),        "be2": f(ks[9], (16,)),
        "m2": f(ks[10], (16,)),             "v2": 1.0 + jnp.abs(f(ks[11], (16,))),
        "w3": f(ks[12], (32, 16, 3, 3, 3)), "c3b": f(ks[13], (32,)),
        "g3": 1.0 + f(ks[14], (32,)),       "be3": f(ks[15], (32,)),
        "m3": f(ks[16], (32,)),             "v3": 1.0 + jnp.abs(f(ks[17], (32,))),
        "fc1w": f(ks[18], (fc1_in, 128), 0.05), "fc1b": f(ks[19], (128,)),
        "fc2w": f(ks[20], (128, 2), 0.05),      "fc2b": f(ks[21], (2,)),
    }


if __name__ == "__main__":
    key = jax.random.PRNGKey(0)
    kx, kp = jax.random.split(key)

    N, C, S = 2, 1, 16                     # small 16^3 volume (module expects 1 channel)
    x = jax.random.normal(kx, (N, C, S, S, S), dtype=jnp.float32)
    params = init_params(kp, S)

    out = jax.jit(cnn3d_forward)(x, params)
    out = jax.block_until_ready(out)
    assert out.shape == (N, 2) and out.dtype == jnp.float32
    print("KERNEL_OK")
</pallas_src>

<mosaic_0001>
module attributes {stable_mosaic.version = 11 : i64} {
  func.func @kernel(%arg0: i32, %arg1: i32, %arg2: memref<1x18x18x18xbf16, #tpu.memory_space<vmem>>, %arg3: memref<9x18x128xbf16, #tpu.memory_space<vmem>>, %arg4: memref<1x128xf32, #tpu.memory_space<vmem>>, %arg5: memref<1x128xf32, #tpu.memory_space<vmem>>, %arg6: memref<1x128xf32, #tpu.memory_space<vmem>>, %arg7: memref<1x1x16x128xf32, #tpu.memory_space<vmem>>) attributes {dimension_semantics = [#tpu.dimension_semantics<parallel>, #tpu.dimension_semantics<parallel>], iteration_bounds = array<i64: 2, 8>, scalar_prefetch = 0 : i64, scratch_operands = 0 : i64, tpu.core_type = #tpu.core_type<tc>, window_params = [{transform_indices = @transform_0, window_bounds = array<i64: 1, 18, 18, 18>}, {pipeline_mode = #tpu.pipeline_mode<synchronous>, transform_indices = @transform_1, window_bounds = array<i64: 9, 18, 128>}, {pipeline_mode = #tpu.pipeline_mode<synchronous>, transform_indices = @transform_2, window_bounds = array<i64: 1, 128>}, {pipeline_mode = #tpu.pipeline_mode<synchronous>, transform_indices = @transform_3, window_bounds = array<i64: 1, 128>}, {pipeline_mode = #tpu.pipeline_mode<synchronous>, transform_indices = @transform_4, window_bounds = array<i64: 1, 128>}, {transform_indices = @transform_5, window_bounds = array<i64: 1, 1, 16, 128>}]} {
    %c2_i32 = arith.constant 2 : i32
    %0 = arith.muli %c2_i32, %arg1 : i32
    %cst = arith.constant 0.000000e+00 : f32
    %1 = vector.broadcast %cst : f32 to vector<16x128xf32>
    %cst_0 = arith.constant 0.000000e+00 : f32
    %2 = vector.broadcast %cst_0 : f32 to vector<16x128xf32>
    %c0 = arith.constant 0 : index
    %c0_1 = arith.constant 0 : index
    %c0_2 = arith.constant 0 : index
    %3 = vector.load %arg3[%c0, %c0_1, %c0_2] : memref<9x18x128xbf16, #tpu.memory_space<vmem>>, vector<1x18x128xbf16>
    %4 = vector.shape_cast %3 : vector<1x18x128xbf16> to vector<18x128xbf16>
    %c0_i32 = arith.constant 0 : i32
    %5 = arith.addi %0, %c0_i32 : i32
    %c0_3 = arith.constant 0 : index
    %6 = arith.index_cast %5 : i32 to index
    %c0_4 = arith.constant 0 : index
    %c0_5 = arith.constant 0 : index
    %7 = vector.load %arg2[%c0_3, %6, %c0_4, %c0_5] : memref<1x18x18x18xbf16, #tpu.memory_space<vmem>>, vector<1x1x16x18xbf16>
    %8 = vector.shape_cast %7 : vector<1x1x16x18xbf16> to vector<16x18xbf16>
    %c1_i32 = arith.constant 1 : i32
    %9 = arith.addi %0, %c1_i32 : i32
    %c0_i32_6 = arith.constant 0 : i32
    %10 = arith.addi %9, %c0_i32_6 : i32
    %c0_7 = arith.constant 0 : index
    %11 = arith.index_cast %10 : i32 to index
    %c0_8 = arith.constant 0 : index
    %c0_9 = arith.constant 0 : index
    %12 = vector.load %arg2[%c0_7, %11, %c0_8, %c0_9] : memref<1x18x18x18xbf16, #tpu.memory_space<vmem>>, vector<1x1x16x18xbf16>
    %13 = vector.shape_cast %12 : vector<1x1x16x18xbf16> to vector<16x18xbf16>
    %cst_10 = arith.constant dense<0.000000e+00> : vector<16x128xf32>
    %14 = tpu.matmul %8, %4, %cst_10 {dimension_numbers = #tpu.dot_dimension_numbers<[1], [0], [0], [1], [0, 0, 1, 1], [], []>} : vector<16x18xbf16>, vector<18x128xbf16>, vector<16x128xf32> -> vector<16x128xf32>
    %15 = arith.addf %1, %14 : vector<16x128xf32>
    %cst_11 = arith.constant dense<0.000000e+00> : vector<16x128xf32>
    %16 = tpu.matmul %13, %4, %cst_11 {dimension_numbers = #tpu.dot_dimension_numbers<[1], [0], [0], [1], [0, 0, 1, 1], [], []>} : vector<16x18xbf16>, vector<18x128xbf16>, vector<16x128xf32> -> vector<16x128xf32>
    %17 = arith.addf %2, %16 : vector<16x128xf32>
    %c1 = arith.constant 1 : index
    %c0_12 = arith.constant 0 : index
    %c0_13 = arith.constant 0 : index
    %18 = vector.load %arg3[%c1, %c0_12, %c0_13] : memref<9x18x128xbf16, #tpu.memory_space<vmem>>, vector<1x18x128xbf16>
    %19 = vector.shape_cast %18 : vector<1x18x128xbf16> to vector<18x128xbf16>
    %c0_i32_14 = arith.constant 0 : i32
    %20 = arith.addi %0, %c0_i32_14 : i32
    %c0_15 = arith.constant 0 : index
    %21 = arith.index_cast %20 : i32 to index
    %c1_16 = arith.constant 1 : index
    %c0_17 = arith.constant 0 : index
    %22 = vector.load %arg2[%c0_15, %21, %c1_16, %c0_17] : memref<1x18x18x18xbf16, #tpu.memory_space<vmem>>, vector<1x1x16x18xbf16>
    %23 = vector.shape_cast %22 : vector<1x1x16x18xbf16> to vector<16x18xbf16>
    %c1_i32_18 = arith.constant 1 : i32
    %24 = arith.addi %0, %c1_i32_18 : i32
    %c0_i32_19 = arith.constant 0 : i32
    %25 = arith.addi %24, %c0_i32_19 : i32
    %c0_20 = arith.constant 0 : index
    %26 = arith.index_cast %25 : i32 to index
    %c1_21 = arith.constant 1 : index
    %c0_22 = arith.constant 0 : index
    %27 = vector.load %arg2[%c0_20, %26, %c1_21, %c0_22] : memref<1x18x18x18xbf16, #tpu.memory_space<vmem>>, vector<1x1x16x18xbf16>
    %28 = vector.shape_cast %27 : vector<1x1x16x18xbf16> to vector<16x18xbf16>
    %cst_23 = arith.constant dense<0.000000e+00> : vector<16x128xf32>
    %29 = tpu.matmul %23, %19, %cst_23 {dimension_numbers = #tpu.dot_dimension_numbers<[1], [0], [0], [1], [0, 0, 1, 1], [], []>} : vector<16x18xbf16>, vector<18x128xbf16>, vector<16x128xf32> -> vector<16x128xf32>
    %30 = arith.addf %15, %29 : vector<16x128xf32>
    %cst_24 = arith.constant dense<0.000000e+00> : vector<16x128xf32>
    %31 = tpu.matmul %28, %19, %cst_24 {dimension_numbers = #tpu.dot_dimension_numbers<[1], [0], [0], [1], [0, 0, 1, 1], [], []>} : vector<16x18xbf16>, vector<18x128xbf16>, vector<16x128xf32> -> vector<16x128xf32>
    %32 = arith.addf %17, %31 : vector<16x128xf32>
    %c2 = arith.constant 2 : index
    %c0_25 = arith.constant 0 : index
    %c0_26 = arith.constant 0 : index
    %33 = vector.load %arg3[%c2, %c0_25, %c0_26] : memref<9x18x128xbf16, #tpu.memory_space<vmem>>, vector<1x18x128xbf16>
    %34 = vector.shape_cast %33 : vector<1x18x128xbf16> to vector<18x128xbf16>
    %c0_i32_27 = arith.constant 0 : i32
    %35 = arith.addi %0, %c0_i32_27 : i32
    %c0_28 = arith.constant 0 : index
    %36 = arith.index_cast %35 : i32 to index
    %c2_29 = arith.constant 2 : index
    %c0_30 = arith.constant 0 : index
    %37 = vector.load %arg2[%c0_28, %36, %c2_29, %c0_30] : memref<1x18x18x18xbf16, #tpu.memory_space<vmem>>, vector<1x1x16x18xbf16>
    %38 = vector.shape_cast %37 : vector<1x1x16x18xbf16> to vector<16x18xbf16>
    %c1_i32_31 = arith.constant 1 : i32
    %39 = arith.addi %0, %c1_i32_31 : i32
    %c0_i32_32 = arith.constant 0 : i32
    %40 = arith.addi %39, %c0_i32_32 : i32
    %c0_33 = arith.constant 0 : index
    %41 = arith.index_cast %40 : i32 to index
    %c2_34 = arith.constant 2 : index
    %c0_35 = arith.constant 0 : index
    %42 = vector.load %arg2[%c0_33, %41, %c2_34, %c0_35] : memref<1x18x18x18xbf16, #tpu.memory_space<vmem>>, vector<1x1x16x18xbf16>
    %43 = vector.shape_cast %42 : vector<1x1x16x18xbf16> to vector<16x18xbf16>
    %cst_36 = arith.constant dense<0.000000e+00> : vector<16x128xf32>
    %44 = tpu.matmul %38, %34, %cst_36 {dimension_numbers = #tpu.dot_dimension_numbers<[1], [0], [0], [1], [0, 0, 1, 1], [], []>} : vector<16x18xbf16>, vector<18x128xbf16>, vector<16x128xf32> -> vector<16x128xf32>
    %45 = arith.addf %30, %44 : vector<16x128xf32>
    %cst_37 = arith.constant dense<0.000000e+00> : vector<16x128xf32>
    %46 = tpu.matmul %43, %34, %cst_37 {dimension_numbers = #tpu.dot_dimension_numbers<[1], [0], [0], [1], [0, 0, 1, 1], [], []>} : vector<16x18xbf16>, vector<18x128xbf16>, vector<16x128xf32> -> vector<16x128xf32>
    %47 = arith.addf %32, %46 : vector<16x128xf32>
    %c3 = arith.constant 3 : index
    %c0_38 = arith.constant 0 : index
    %c0_39 = arith.constant 0 : index
    %48 = vector.load %arg3[%c3, %c0_38, %c0_39] : memref<9x18x128xbf16, #tpu.memory_space<vmem>>, vector<1x18x128xbf16>
    %49 = vector.shape_cast %48 : vector<1x18x128xbf16> to vector<18x128xbf16>
    %c1_i32_40 = arith.constant 1 : i32
    %50 = arith.addi %0, %c1_i32_40 : i32
    %c0_41 = arith.constant 0 : index
    %51 = arith.index_cast %50 : i32 to index
    %c0_42 = arith.constant 0 : index
    %c0_43 = arith.constant 0 : index
    %52 = vector.load %arg2[%c0_41, %51, %c0_42, %c0_43] : memref<1x18x18x18xbf16, #tpu.memory_space<vmem>>, vector<1x1x16x18xbf16>
    %53 = vector.shape_cast %52 : vector<1x1x16x18xbf16> to vector<16x18xbf16>
    %c1_i32_44 = arith.constant 1 : i32
    %54 = arith.addi %0, %c1_i32_44 : i32
    %c1_i32_45 = arith.constant 1 : i32
    %55 = arith.addi %54, %c1_i32_45 : i32
    %c0_46 = arith.constant 0 : index
    %56 = arith.index_cast %55 : i32 to index
    %c0_47 = arith.constant 0 : index
    %c0_48 = arith.constant 0 : index
    %57 = vector.load %arg2[%c0_46, %56, %c0_47, %c0_48] : memref<1x18x18x18xbf16, #tpu.memory_space<vmem>>, vector<1x1x16x18xbf16>
    %58 = vector.shape_cast %57 : vector<1x1x16x18xbf16> to vector<16x18xbf16>
    %cst_49 = arith.constant dense<0.000000e+00> : vector<16x128xf32>
    %59 = tpu.matmul %53, %49, %cst_49 {dimension_numbers = #tpu.dot_dimension_numbers<[1], [0], [0], [1], [0, 0, 1, 1], [], []>} : vector<16x18xbf16>, vector<18x128xbf16>, vector<16x128xf32> -> vector<16x128xf32>
    %60 = arith.addf %45, %59 : vector<16x128xf32>
    %cst_50 = arith.constant dense<0.000000e+00> : vector<16x128xf32>
    %61 = tpu.matmul %58, %49, %cst_50 {dimension_numbers = #tpu.dot_dimension_numbers<[1], [0], [0], [1], [0, 0, 1, 1], [], []>} : vector<16x18xbf16>, vector<18x128xbf16>, vector<16x128xf32> -> vector<16x128xf32>
    %62 = arith.addf %47, %61 : vector<16x128xf32>
    %c4 = arith.constant 4 : index
    %c0_51 = arith.constant 0 : index
    %c0_52 = arith.constant 0 : index
    %63 = vector.load %arg3[%c4, %c0_51, %c0_52] : memref<9x18x128xbf16, #tpu.memory_space<vmem>>, vector<1x18x128xbf16>
    %64 = vector.shape_cast %63 : vector<1x18x128xbf16> to vector<18x128xbf16>
    %c1_i32_53 = arith.constant 1 : i32
    %65 = arith.addi %0, %c1_i32_53 : i32
    %c0_54 = arith.constant 0 : index
    %66 = arith.index_cast %65 : i32 to index
    %c1_55 = arith.constant 1 : index
    %c0_56 = arith.constant 0 : index
    %67 = vector.load %arg2[%c0_54, %66, %c1_55, %c0_56] : memref<1x18x18x18xbf16, #tpu.memory_space<vmem>>, vector<1x1x16x18xbf16>
    %68 = vector.shape_cast %67 : vector<1x1x16x18xbf16> to vector<16x18xbf16>
    %c1_i32_57 = arith.constant 1 : i32
    %69 = arith.addi %0, %c1_i32_57 : i32
    %c1_i32_58 = arith.constant 1 : i32
    %70 = arith.addi %69, %c1_i32_58 : i32
    %c0_59 = arith.constant 0 : index
    %71 = arith.index_cast %70 : i32 to index
    %c1_60 = arith.constant 1 : index
    %c0_61 = arith.constant 0 : index
    %72 = vector.load %arg2[%c0_59, %71, %c1_60, %c0_61] : memref<1x18x18x18xbf16, #tpu.memory_space<vmem>>, vector<1x1x16x18xbf16>
    %73 = vector.shape_cast %72 : vector<1x1x16x18xbf16> to vector<16x18xbf16>
    %cst_62 = arith.constant dense<0.000000e+00> : vector<16x128xf32>
    %74 = tpu.matmul %68, %64, %cst_62 {dimension_numbers = #tpu.dot_dimension_numbers<[1], [0], [0], [1], [0, 0, 1, 1], [], []>} : vector<16x18xbf16>, vector<18x128xbf16>, vector<16x128xf32> -> vector<16x128xf32>
    %75 = arith.addf %60, %74 : vector<16x128xf32>
    %cst_63 = arith.constant dense<0.000000e+00> : vector<16x128xf32>
    %76 = tpu.matmul %73, %64, %cst_63 {dimension_numbers = #tpu.dot_dimension_numbers<[1], [0], [0], [1], [0, 0, 1, 1], [], []>} : vector<16x18xbf16>, vector<18x128xbf16>, vector<16x128xf32> -> vector<16x128xf32>
    %77 = arith.addf %62, %76 : vector<16x128xf32>
    %c5 = arith.constant 5 : index
    %c0_64 = arith.constant 0 : index
    %c0_65 = arith.constant 0 : index
    %78 = vector.load %arg3[%c5, %c0_64, %c0_65] : memref<9x18x128xbf16, #tpu.memory_space<vmem>>, vector<1x18x128xbf16>
    %79 = vector.shape_cast %78 : vector<1x18x128xbf16> to vector<18x128xbf16>
    %c1_i32_66 = arith.constant 1 : i32
    %80 = arith.addi %0, %c1_i32_66 : i32
    %c0_67 = arith.constant 0 : index
    %81 = arith.index_cast %80 : i32 to index
    %c2_68 = arith.constant 2 : index
    %c0_69 = arith.constant 0 : index
    %82 = vector.load %arg2[%c0_67, %81, %c2_68, %c0_69] : memref<1x18x18x18xbf16, #tpu.memory_space<vmem>>, vector<1x1x16x18xbf16>
    %83 = vector.shape_cast %82 : vector<1x1x16x18xbf16> to vector<16x18xbf16>
    %c1_i32_70 = arith.constant 1 : i32
    %84 = arith.addi %0, %c1_i32_70 : i32
    %c1_i32_71 = arith.constant 1 : i32
    %85 = arith.addi %84, %c1_i32_71 : i32
    %c0_72 = arith.constant 0 : index
    %86 = arith.index_cast %85 : i32 to index
    %c2_73 = arith.constant 2 : index
    %c0_74 = arith.constant 0 : index
    %87 = vector.load %arg2[%c0_72, %86, %c2_73, %c0_74] : memref<1x18x18x18xbf16, #tpu.memory_space<vmem>>, vector<1x1x16x18xbf16>
    %88 = vector.shape_cast %87 : vector<1x1x16x18xbf16> to vector<16x18xbf16>
    %cst_75 = arith.constant dense<0.000000e+00> : vector<16x128xf32>
    %89 = tpu.matmul %83, %79, %cst_75 {dimension_numbers = #tpu.dot_dimension_numbers<[1], [0], [0], [1], [0, 0, 1, 1], [], []>} : vector<16x18xbf16>, vector<18x128xbf16>, vector<16x128xf32> -> vector<16x128xf32>
    %90 = arith.addf %75, %89 : vector<16x128xf32>
    %cst_76 = arith.constant dense<0.000000e+00> : vector<16x128xf32>
    %91 = tpu.matmul %88, %79, %cst_76 {dimension_numbers = #tpu.dot_dimension_numbers<[1], [0], [0], [1], [0, 0, 1, 1], [], []>} : vector<16x18xbf16>, vector<18x128xbf16>, vector<16x128xf32> -> vector<16x128xf32>
    %92 = arith.addf %77, %91 : vector<16x128xf32>
    %c6 = arith.constant 6 : index
    %c0_77 = arith.constant 0 : index
    %c0_78 = arith.constant 0 : index
    %93 = vector.load %arg3[%c6, %c0_77, %c0_78] : memref<9x18x128xbf16, #tpu.memory_space<vmem>>, vector<1x18x128xbf16>
    %94 = vector.shape_cast %93 : vector<1x18x128xbf16> to vector<18x128xbf16>
    %c2_i32_79 = arith.constant 2 : i32
    %95 = arith.addi %0, %c2_i32_79 : i32
    %c0_80 = arith.constant 0 : index
    %96 = arith.index_cast %95 : i32 to index
    %c0_81 = arith.constant 0 : index
    %c0_82 = arith.constant 0 : index
    %97 = vector.load %arg2[%c0_80, %96, %c0_81, %c0_82] : memref<1x18x18x18xbf16, #tpu.memory_space<vmem>>, vector<1x1x16x18xbf16>
    %98 = vector.shape_cast %97 : vector<1x1x16x18xbf16> to vector<16x18xbf16>
    %c1_i32_83 = arith.constant 1 : i32
    %99 = arith.addi %0, %c1_i32_83 : i32
    %c2_i32_84 = arith.constant 2 : i32
    %100 = arith.addi %99, %c2_i32_84 : i32
    %c0_85 = arith.constant 0 : index
    %101 = arith.index_cast %100 : i32 to index
    %c0_86 = arith.constant 0 : index
    %c0_87 = arith.constant 0 : index
    %102 = vector.load %arg2[%c0_85, %101, %c0_86, %c0_87] : memref<1x18x18x18xbf16, #tpu.memory_space<vmem>>, vector<1x1x16x18xbf16>
    %103 = vector.shape_cast %102 : vector<1x1x16x18xbf16> to vector<16x18xbf16>
    %cst_88 = arith.constant dense<0.000000e+00> : vector<16x128xf32>
    %104 = tpu.matmul %98, %94, %cst_88 {dimension_numbers = #tpu.dot_dimension_numbers<[1], [0], [0], [1], [0, 0, 1, 1], [], []>} : vector<16x18xbf16>, vector<18x128xbf16>, vector<16x128xf32> -> vector<16x128xf32>
    %105 = arith.addf %90, %104 : vector<16x128xf32>
    %cst_89 = arith.constant dense<0.000000e+00> : vector<16x128xf32>
    %106 = tpu.matmul %103, %94, %cst_89 {dimension_numbers = #tpu.dot_dimension_numbers<[1], [0], [0], [1], [0, 0, 1, 1], [], []>} : vector<16x18xbf16>, vector<18x128xbf16>, vector<16x128xf32> -> vector<16x128xf32>
    %107 = arith.addf %92, %106 : vector<16x128xf32>
    %c7 = arith.constant 7 : index
    %c0_90 = arith.constant 0 : index
    %c0_91 = arith.constant 0 : index
    %108 = vector.load %arg3[%c7, %c0_90, %c0_91] : memref<9x18x128xbf16, #tpu.memory_space<vmem>>, vector<1x18x128xbf16>
    %109 = vector.shape_cast %108 : vector<1x18x128xbf16> to vector<18x128xbf16>
    %c2_i32_92 = arith.constant 2 : i32
    %110 = arith.addi %0, %c2_i32_92 : i32
    %c0_93 = arith.constant 0 : index
    %111 = arith.index_cast %110 : i32 to index
    %c1_94 = arith.constant 1 : index
    %c0_95 = arith.constant 0 : index
    %112 = vector.load %arg2[%c0_93, %111, %c1_94, %c0_95] : memref<1x18x18x18xbf16, #tpu.memory_space<vmem>>, vector<1x1x16x18xbf16>
    %113 = vector.shape_cast %112 : vector<1x1x16x18xbf16> to vector<16x18xbf16>
    %c1_i32_96 = arith.constant 1 : i32
    %114 = arith.addi %0, %c1_i32_96 : i32
    %c2_i32_97 = arith.constant 2 : i32
    %115 = arith.addi %114, %c2_i32_97 : i32
    %c0_98 = arith.constant 0 : index
    %116 = arith.index_cast %115 : i32 to index
    %c1_99 = arith.constant 1 : index
    %c0_100 = arith.constant 0 : index
    %117 = vector.load %arg2[%c0_98, %116, %c1_99, %c0_100] : memref<1x18x18x18xbf16, #tpu.memory_space<vmem>>, vector<1x1x16x18xbf16>
    %118 = vector.shape_cast %117 : vector<1x1x16x18xbf16> to vector<16x18xbf16>
    %cst_101 = arith.constant dense<0.000000e+00> : vector<16x128xf32>
    %119 = tpu.matmul %113, %109, %cst_101 {dimension_numbers = #tpu.dot_dimension_numbers<[1], [0], [0], [1], [0, 0, 1, 1], [], []>} : vector<16x18xbf16>, vector<18x128xbf16>, vector<16x128xf32> -> vector<16x128xf32>
    %120 = arith.addf %105, %119 : vector<16x128xf32>
    %cst_102 = arith.constant dense<0.000000e+00> : vector<16x128xf32>
    %121 = tpu.matmul %118, %109, %cst_102 {dimension_numbers = #tpu.dot_dimension_numbers<[1], [0], [0], [1], [0, 0, 1, 1], [], []>} : vector<16x18xbf16>, vector<18x128xbf16>, vector<16x128xf32> -> vector<16x128xf32>
    %122 = arith.addf %107, %121 : vector<16x128xf32>
    %c8 = arith.constant 8 : index
    %c0_103 = arith.constant 0 : index
    %c0_104 = arith.constant 0 : index
    %123 = vector.load %arg3[%c8, %c0_103, %c0_104] : memref<9x18x128xbf16, #tpu.memory_space<vmem>>, vector<1x18x128xbf16>
    %124 = vector.shape_cast %123 : vector<1x18x128xbf16> to vector<18x128xbf16>
    %c2_i32_105 = arith.constant 2 : i32
    %125 = arith.addi %0, %c2_i32_105 : i32
    %c0_106 = arith.constant 0 : index
    %126 = arith.index_cast %125 : i32 to index
    %c2_107 = arith.constant 2 : index
    %c0_108 = arith.constant 0 : index
    %127 = vector.load %arg2[%c0_106, %126, %c2_107, %c0_108] : memref<1x18x18x18xbf16, #tpu.memory_space<vmem>>, vector<1x1x16x18xbf16>
    %128 = vector.shape_cast %127 : vector<1x1x16x18xbf16> to vector<16x18xbf16>
    %c1_i32_109 = arith.constant 1 : i32
    %129 = arith.addi %0, %c1_i32_109 : i32
    %c2_i32_110 = arith.constant 2 : i32
    %130 = arith.addi %129, %c2_i32_110 : i32
    %c0_111 = arith.constant 0 : index
    %131 = arith.index_cast %130 : i32 to index
    %c2_112 = arith.constant 2 : index
    %c0_113 = arith.constant 0 : index
    %132 = vector.load %arg2[%c0_111, %131, %c2_112, %c0_113] : memref<1x18x18x18xbf16, #tpu.memory_space<vmem>>, vector<1x1x16x18xbf16>
    %133 = vector.shape_cast %132 : vector<1x1x16x18xbf16> to vector<16x18xbf16>
    %cst_114 = arith.constant dense<0.000000e+00> : vector<16x128xf32>
    %134 = tpu.matmul %128, %124, %cst_114 {dimension_numbers = #tpu.dot_dimension_numbers<[1], [0], [0], [1], [0, 0, 1, 1], [], []>} : vector<16x18xbf16>, vector<18x128xbf16>, vector<16x128xf32> -> vector<16x128xf32>
    %135 = arith.addf %120, %134 : vector<16x128xf32>
    %cst_115 = arith.constant dense<0.000000e+00> : vector<16x128xf32>
    %136 = tpu.matmul %133, %124, %cst_115 {dimension_numbers = #tpu.dot_dimension_numbers<[1], [0], [0], [1], [0, 0, 1, 1], [], []>} : vector<16x18xbf16>, vector<18x128xbf16>, vector<16x128xf32> -> vector<16x128xf32>
    %137 = arith.addf %122, %136 : vector<16x128xf32>
    %c0_116 = arith.constant 0 : index
    %c0_117 = arith.constant 0 : index
    %138 = vector.load %arg4[%c0_116, %c0_117] : memref<1x128xf32, #tpu.memory_space<vmem>>, vector<1x128xf32>
    %c0_118 = arith.constant 0 : index
    %c0_119 = arith.constant 0 : index
    %139 = vector.load %arg5[%c0_118, %c0_119] : memref<1x128xf32, #tpu.memory_space<vmem>>, vector<1x128xf32>
    %c0_120 = arith.constant 0 : index
    %c0_121 = arith.constant 0 : index
    %140 = vector.load %arg6[%c0_120, %c0_121] : memref<1x128xf32, #tpu.memory_space<vmem>>, vector<1x128xf32>
    %141 = vector.broadcast %138 : vector<1x128xf32> to vector<16x128xf32>
    %142 = arith.addf %135, %141 : vector<16x128xf32>
    %cst_122 = arith.constant 0.000000e+00 : f32
    %143 = vector.broadcast %cst_122 : f32 to vector<16x128xf32>
    %144 = arith.maximumf %142, %143 : vector<16x128xf32>
    %145 = vector.broadcast %139 : vector<1x128xf32> to vector<16x128xf32>
    %146 = arith.mulf %145, %144 : vector<16x128xf32>
    %147 = vector.broadcast %140 : vector<1x128xf32> to vector<16x128xf32>
    %148 = arith.addf %146, %147 : vector<16x128xf32>
    %149 = vector.broadcast %138 : vector<1x128xf32> to vector<16x128xf32>
    %150 = arith.addf %137, %149 : vector<16x128xf32>
    %cst_123 = arith.constant 0.000000e+00 : f32
    %151 = vector.broadcast %cst_123 : f32 to vector<16x128xf32>
    %152 = arith.maximumf %150, %151 : vector<16x128xf32>
    %153 = vector.broadcast %139 : vector<1x128xf32> to vector<16x128xf32>
    %154 = arith.mulf %153, %152 : vector<16x128xf32>
    %155 = vector.broadcast %140 : vector<1x128xf32> to vector<16x128xf32>
    %156 = arith.addf %154, %155 : vector<16x128xf32>
    %157 = arith.maximumf %148, %156 : vector<16x128xf32>
    %c0_124 = arith.constant 0 : index
    %c0_125 = arith.constant 0 : index
    %c0_126 = arith.constant 0 : index
    %c0_127 = arith.constant 0 : index
    %158 = vector.load %arg7[%c0_124, %c0_125, %c0_126, %c0_127] : memref<1x1x16x128xf32, #tpu.memory_space<vmem>>, vector<1x1x16x128xf32>
    %159 = vector.shape_cast %158 : vector<1x1x16x128xf32> to vector<16x128xf32>
    %160 = vector.shape_cast %157 : vector<16x128xf32> to vector<1x1x16x128xf32>
    tpu.vector_store %arg7[%c0_124, %c0_125, %c0_126, %c0_127], %160 {strides = array<i32>} : memref<1x1x16x128xf32, #tpu.memory_space<vmem>>, vector<1x1x16x128xf32>,
    return
  }
  func.func @transform_0(%arg0: i32, %arg1: i32) -> (i32, i32, i32, i32) {
    %c0_i32 = arith.constant 0 : i32
    %c0_i32_0 = arith.constant 0 : i32
    %c0_i32_1 = arith.constant 0 : i32
    %c0_i32_2 = arith.constant 0 : i32
    return %arg0, %c0_i32, %c0_i32_0, %c0_i32_1 : i32, i32, i32, i32
  }
  func.func @transform_1(%arg0: i32, %arg1: i32) -> (i32, i32, i32) {
    %c0_i32 = arith.constant 0 : i32
    %c0_i32_0 = arith.constant 0 : i32
    %c0_i32_1 = arith.constant 0 : i32
    %c0_i32_2 = arith.constant 0 : i32
    return %c0_i32, %c0_i32_0, %c0_i32_1 : i32, i32, i32
  }
  func.func @transform_2(%arg0: i32, %arg1: i32) -> (i32, i32) {
    %c0_i32 = arith.constant 0 : i32
    %c0_i32_0 = arith.constant 0 : i32
    %c0_i32_1 = arith.constant 0 : i32
    return %c0_i32, %c0_i32_0 : i32, i32
  }
  func.func @transform_3(%arg0: i32, %arg1: i32) -> (i32, i32) {
    %c0_i32 = arith.constant 0 : i32
    %c0_i32_0 = arith.constant 0 : i32
    %c0_i32_1 = arith.constant 0 : i32
    return %c0_i32, %c0_i32_0 : i32, i32
  }
  func.func @transform_4(%arg0: i32, %arg1: i32) -> (i32, i32) {
    %c0_i32 = arith.constant 0 : i32
    %c0_i32_0 = arith.constant 0 : i32
    %c0_i32_1 = arith.constant 0 : i32
    return %c0_i32, %c0_i32_0 : i32, i32
  }
  func.func @transform_5(%arg0: i32, %arg1: i32) -> (i32, i32, i32, i32) {
    %c0_i32 = arith.constant 0 : i32
    %c0_i32_0 = arith.constant 0 : i32
    %c0_i32_1 = arith.constant 0 : i32
    return %arg0, %arg1, %c0_i32, %c0_i32_0 : i32, i32, i32, i32
  }
}

module attributes {stable_mosaic.version = 11 : i64} {
  func.func @kernel(%arg0: i32, %arg1: i32, %arg2: memref<1x10x10x80xbf16, #tpu.memory_space<vmem>>, %arg3: memref<9x80x128xbf16, #tpu.memory_space<vmem>>, %arg4: memref<1x128xf32, #tpu.memory_space<vmem>>, %arg5: memref<1x128xf32, #tpu.memory_space<vmem>>, %arg6: memref<1x128xf32, #tpu.memory_space<vmem>>, %arg7: memref<1x1x8x128xf32, #tpu.memory_space<vmem>>) attributes {dimension_semantics = [#tpu.dimension_semantics<parallel>, #tpu.dimension_semantics<parallel>], iteration_bounds = array<i64: 2, 4>, scalar_prefetch = 0 : i64, scratch_operands = 0 : i64, tpu.core_type = #tpu.core_type<tc>, window_params = [{transform_indices = @transform_0, window_bounds = array<i64: 1, 10, 10, 80>}, {pipeline_mode = #tpu.pipeline_mode<synchronous>, transform_indices = @transform_1, window_bounds = array<i64: 9, 80, 128>}, {pipeline_mode = #tpu.pipeline_mode<synchronous>, transform_indices = @transform_2, window_bounds = array<i64: 1, 128>}, {pipeline_mode = #tpu.pipeline_mode<synchronous>, transform_indices = @transform_3, window_bounds = array<i64: 1, 128>}, {pipeline_mode = #tpu.pipeline_mode<synchronous>, transform_indices = @transform_4, window_bounds = array<i64: 1, 128>}, {transform_indices = @transform_5, window_bounds = array<i64: 1, 1, 8, 128>}]} {
    %c2_i32 = arith.constant 2 : i32
    %0 = arith.muli %c2_i32, %arg1 : i32
    %cst = arith.constant 0.000000e+00 : f32
    %1 = vector.broadcast %cst : f32 to vector<8x128xf32>
    %cst_0 = arith.constant 0.000000e+00 : f32
    %2 = vector.broadcast %cst_0 : f32 to vector<8x128xf32>
    %c0 = arith.constant 0 : index
    %c0_1 = arith.constant 0 : index
    %c0_2 = arith.constant 0 : index
    %3 = vector.load %arg3[%c0, %c0_1, %c0_2] : memref<9x80x128xbf16, #tpu.memory_space<vmem>>, vector<1x80x128xbf16>
    %4 = vector.shape_cast %3 : vector<1x80x128xbf16> to vector<80x128xbf16>
    %c0_i32 = arith.constant 0 : i32
    %5 = arith.addi %0, %c0_i32 : i32
    %c0_3 = arith.constant 0 : index
    %6 = arith.index_cast %5 : i32 to index
    %c0_4 = arith.constant 0 : index
    %c0_5 = arith.constant 0 : index
    %7 = vector.load %arg2[%c0_3, %6, %c0_4, %c0_5] : memref<1x10x10x80xbf16, #tpu.memory_space<vmem>>, vector<1x1x8x80xbf16>
    %8 = vector.shape_cast %7 : vector<1x1x8x80xbf16> to vector<8x80xbf16>
    %c1_i32 = arith.constant 1 : i32
    %9 = arith.addi %0, %c1_i32 : i32
    %c0_i32_6 = arith.constant 0 : i32
    %10 = arith.addi %9, %c0_i32_6 : i32
    %c0_7 = arith.constant 0 : index
    %11 = arith.index_cast %10 : i32 to index
    %c0_8 = arith.constant 0 : index
    %c0_9 = arith.constant 0 : index
    %12 = vector.load %arg2[%c0_7, %11, %c0_8, %c0_9] : memref<1x10x10x80xbf16, #tpu.memory_space<vmem>>, vector<1x1x8x80xbf16>
    %13 = vector.shape_cast %12 : vector<1x1x8x80xbf16> to vector<8x80xbf16>
    %cst_10 = arith.constant dense<0.000000e+00> : vector<8x128xf32>
    %14 = tpu.matmul %8, %4, %cst_10 {dimension_numbers = #tpu.dot_dimension_numbers<[1], [0], [0], [1], [0, 0, 1, 1], [], []>} : vector<8x80xbf16>, vector<80x128xbf16>, vector<8x128xf32> -> vector<8x128xf32>
    %15 = arith.addf %1, %14 : vector<8x128xf32>
    %cst_11 = arith.constant dense<0.000000e+00> : vector<8x128xf32>
    %16 = tpu.matmul %13, %4, %cst_11 {dimension_numbers = #tpu.dot_dimension_numbers<[1], [0], [0], [1], [0, 0, 1, 1], [], []>} : vector<8x80xbf16>, vector<80x128xbf16>, vector<8x128xf32> -> vector<8x128xf32>
    %17 = arith.addf %2, %16 : vector<8x128xf32>
    %c1 = arith.constant 1 : index
    %c0_12 = arith.constant 0 : index
    %c0_13 = arith.constant 0 : index
    %18 = vector.load %arg3[%c1, %c0_12, %c0_13] : memref<9x80x128xbf16, #tpu.memory_space<vmem>>, vector<1x80x128xbf16>
    %19 = vector.shape_cast %18 : vector<1x80x128xbf16> to vector<80x128xbf16>
    %c0_i32_14 = arith.constant 0 : i32
    %20 = arith.addi %0, %c0_i32_14 : i32
    %c0_15 = arith.constant 0 : index
    %21 = arith.index_cast %20 : i32 to index
    %c1_16 = arith.constant 1 : index
    %c0_17 = arith.constant 0 : index
    %22 = vector.load %arg2[%c0_15, %21, %c1_16, %c0_17] : memref<1x10x10x80xbf16, #tpu.memory_space<vmem>>, vector<1x1x8x80xbf16>
    %23 = vector.shape_cast %22 : vector<1x1x8x80xbf16> to vector<8x80xbf16>
    %c1_i32_18 = arith.constant 1 : i32
    %24 = arith.addi %0, %c1_i32_18 : i32
    %c0_i32_19 = arith.constant 0 : i32
    %25 = arith.addi %24, %c0_i32_19 : i32
    %c0_20 = arith.constant 0 : index
    %26 = arith.index_cast %25 : i32 to index
    %c1_21 = arith.constant 1 : index
    %c0_22 = arith.constant 0 : index
    %27 = vector.load %arg2[%c0_20, %26, %c1_21, %c0_22] : memref<1x10x10x80xbf16, #tpu.memory_space<vmem>>, vector<1x1x8x80xbf16>
    %28 = vector.shape_cast %27 : vector<1x1x8x80xbf16> to vector<8x80xbf16>
    %cst_23 = arith.constant dense<0.000000e+00> : vector<8x128xf32>
    %29 = tpu.matmul %23, %19, %cst_23 {dimension_numbers = #tpu.dot_dimension_numbers<[1], [0], [0], [1], [0, 0, 1, 1], [], []>} : vector<8x80xbf16>, vector<80x128xbf16>, vector<8x128xf32> -> vector<8x128xf32>
    %30 = arith.addf %15, %29 : vector<8x128xf32>
    %cst_24 = arith.constant dense<0.000000e+00> : vector<8x128xf32>
    %31 = tpu.matmul %28, %19, %cst_24 {dimension_numbers = #tpu.dot_dimension_numbers<[1], [0], [0], [1], [0, 0, 1, 1], [], []>} : vector<8x80xbf16>, vector<80x128xbf16>, vector<8x128xf32> -> vector<8x128xf32>
    %32 = arith.addf %17, %31 : vector<8x128xf32>
    %c2 = arith.constant 2 : index
    %c0_25 = arith.constant 0 : index
    %c0_26 = arith.constant 0 : index
    %33 = vector.load %arg3[%c2, %c0_25, %c0_26] : memref<9x80x128xbf16, #tpu.memory_space<vmem>>, vector<1x80x128xbf16>
    %34 = vector.shape_cast %33 : vector<1x80x128xbf16> to vector<80x128xbf16>
    %c0_i32_27 = arith.constant 0 : i32
    %35 = arith.addi %0, %c0_i32_27 : i32
    %c0_28 = arith.constant 0 : index
    %36 = arith.index_cast %35 : i32 to index
    %c2_29 = arith.constant 2 : index
    %c0_30 = arith.constant 0 : index
    %37 = vector.load %arg2[%c0_28, %36, %c2_29, %c0_30] : memref<1x10x10x80xbf16, #tpu.memory_space<vmem>>, vector<1x1x8x80xbf16>
    %38 = vector.shape_cast %37 : vector<1x1x8x80xbf16> to vector<8x80xbf16>
    %c1_i32_31 = arith.constant 1 : i32
    %39 = arith.addi %0, %c1_i32_31 : i32
    %c0_i32_32 = arith.constant 0 : i32
    %40 = arith.addi %39, %c0_i32_32 : i32
    %c0_33 = arith.constant 0 : index
    %41 = arith.index_cast %40 : i32 to index
    %c2_34 = arith.constant 2 : index
    %c0_35 = arith.constant 0 : index
    %42 = vector.load %arg2[%c0_33, %41, %c2_34, %c0_35] : memref<1x10x10x80xbf16, #tpu.memory_space<vmem>>, vector<1x1x8x80xbf16>
    %43 = vector.shape_cast %42 : vector<1x1x8x80xbf16> to vector<8x80xbf16>
    %cst_36 = arith.constant dense<0.000000e+00> : vector<8x128xf32>
    %44 = tpu.matmul %38, %34, %cst_36 {dimension_numbers = #tpu.dot_dimension_numbers<[1], [0], [0], [1], [0, 0, 1, 1], [], []>} : vector<8x80xbf16>, vector<80x128xbf16>, vector<8x128xf32> -> vector<8x128xf32>
    %45 = arith.addf %30, %44 : vector<8x128xf32>
    %cst_37 = arith.constant dense<0.000000e+00> : vector<8x128xf32>
    %46 = tpu.matmul %43, %34, %cst_37 {dimension_numbers = #tpu.dot_dimension_numbers<[1], [0], [0], [1], [0, 0, 1, 1], [], []>} : vector<8x80xbf16>, vector<80x128xbf16>, vector<8x128xf32> -> vector<8x128xf32>
    %47 = arith.addf %32, %46 : vector<8x128xf32>
    %c3 = arith.constant 3 : index
    %c0_38 = arith.constant 0 : index
    %c0_39 = arith.constant 0 : index
    %48 = vector.load %arg3[%c3, %c0_38, %c0_39] : memref<9x80x128xbf16, #tpu.memory_space<vmem>>, vector<1x80x128xbf16>
    %49 = vector.shape_cast %48 : vector<1x80x128xbf16> to vector<80x128xbf16>
    %c1_i32_40 = arith.constant 1 : i32
    %50 = arith.addi %0, %c1_i32_40 : i32
    %c0_41 = arith.constant 0 : index
    %51 = arith.index_cast %50 : i32 to index
    %c0_42 = arith.constant 0 : index
    %c0_43 = arith.constant 0 : index
    %52 = vector.load %arg2[%c0_41, %51, %c0_42, %c0_43] : memref<1x10x10x80xbf16, #tpu.memory_space<vmem>>, vector<1x1x8x80xbf16>
    %53 = vector.shape_cast %52 : vector<1x1x8x80xbf16> to vector<8x80xbf16>
    %c1_i32_44 = arith.constant 1 : i32
    %54 = arith.addi %0, %c1_i32_44 : i32
    %c1_i32_45 = arith.constant 1 : i32
    %55 = arith.addi %54, %c1_i32_45 : i32
    %c0_46 = arith.constant 0 : index
    %56 = arith.index_cast %55 : i32 to index
    %c0_47 = arith.constant 0 : index
    %c0_48 = arith.constant 0 : index
    %57 = vector.load %arg2[%c0_46, %56, %c0_47, %c0_48] : memref<1x10x10x80xbf16, #tpu.memory_space<vmem>>, vector<1x1x8x80xbf16>
    %58 = vector.shape_cast %57 : vector<1x1x8x80xbf16> to vector<8x80xbf16>
    %cst_49 = arith.constant dense<0.000000e+00> : vector<8x128xf32>
    %59 = tpu.matmul %53, %49, %cst_49 {dimension_numbers = #tpu.dot_dimension_numbers<[1], [0], [0], [1], [0, 0, 1, 1], [], []>} : vector<8x80xbf16>, vector<80x128xbf16>, vector<8x128xf32> -> vector<8x128xf32>
    %60 = arith.addf %45, %59 : vector<8x128xf32>
    %cst_50 = arith.constant dense<0.000000e+00> : vector<8x128xf32>
    %61 = tpu.matmul %58, %49, %cst_50 {dimension_numbers = #tpu.dot_dimension_numbers<[1], [0], [0], [1], [0, 0, 1, 1], [], []>} : vector<8x80xbf16>, vector<80x128xbf16>, vector<8x128xf32> -> vector<8x128xf32>
    %62 = arith.addf %47, %61 : vector<8x128xf32>
    %c4 = arith.constant 4 : index
    %c0_51 = arith.constant 0 : index
    %c0_52 = arith.constant 0 : index
    %63 = vector.load %arg3[%c4, %c0_51, %c0_52] : memref<9x80x128xbf16, #tpu.memory_space<vmem>>, vector<1x80x128xbf16>
    %64 = vector.shape_cast %63 : vector<1x80x128xbf16> to vector<80x128xbf16>
    %c1_i32_53 = arith.constant 1 : i32
    %65 = arith.addi %0, %c1_i32_53 : i32
    %c0_54 = arith.constant 0 : index
    %66 = arith.index_cast %65 : i32 to index
    %c1_55 = arith.constant 1 : index
    %c0_56 = arith.constant 0 : index
    %67 = vector.load %arg2[%c0_54, %66, %c1_55, %c0_56] : memref<1x10x10x80xbf16, #tpu.memory_space<vmem>>, vector<1x1x8x80xbf16>
    %68 = vector.shape_cast %67 : vector<1x1x8x80xbf16> to vector<8x80xbf16>
    %c1_i32_57 = arith.constant 1 : i32
    %69 = arith.addi %0, %c1_i32_57 : i32
    %c1_i32_58 = arith.constant 1 : i32
    %70 = arith.addi %69, %c1_i32_58 : i32
    %c0_59 = arith.constant 0 : index
    %71 = arith.index_cast %70 : i32 to index
    %c1_60 = arith.constant 1 : index
    %c0_61 = arith.constant 0 : index
    %72 = vector.load %arg2[%c0_59, %71, %c1_60, %c0_61] : memref<1x10x10x80xbf16, #tpu.memory_space<vmem>>, vector<1x1x8x80xbf16>
    %73 = vector.shape_cast %72 : vector<1x1x8x80xbf16> to vector<8x80xbf16>
    %cst_62 = arith.constant dense<0.000000e+00> : vector<8x128xf32>
    %74 = tpu.matmul %68, %64, %cst_62 {dimension_numbers = #tpu.dot_dimension_numbers<[1], [0], [0], [1], [0, 0, 1, 1], [], []>} : vector<8x80xbf16>, vector<80x128xbf16>, vector<8x128xf32> -> vector<8x128xf32>
    %75 = arith.addf %60, %74 : vector<8x128xf32>
    %cst_63 = arith.constant dense<0.000000e+00> : vector<8x128xf32>
    %76 = tpu.matmul %73, %64, %cst_63 {dimension_numbers = #tpu.dot_dimension_numbers<[1], [0], [0], [1], [0, 0, 1, 1], [], []>} : vector<8x80xbf16>, vector<80x128xbf16>, vector<8x128xf32> -> vector<8x128xf32>
    %77 = arith.addf %62, %76 : vector<8x128xf32>
    %c5 = arith.constant 5 : index
    %c0_64 = arith.constant 0 : index
    %c0_65 = arith.constant 0 : index
    %78 = vector.load %arg3[%c5, %c0_64, %c0_65] : memref<9x80x128xbf16, #tpu.memory_space<vmem>>, vector<1x80x128xbf16>
    %79 = vector.shape_cast %78 : vector<1x80x128xbf16> to vector<80x128xbf16>
    %c1_i32_66 = arith.constant 1 : i32
    %80 = arith.addi %0, %c1_i32_66 : i32
    %c0_67 = arith.constant 0 : index
    %81 = arith.index_cast %80 : i32 to index
    %c2_68 = arith.constant 2 : index
    %c0_69 = arith.constant 0 : index
    %82 = vector.load %arg2[%c0_67, %81, %c2_68, %c0_69] : memref<1x10x10x80xbf16, #tpu.memory_space<vmem>>, vector<1x1x8x80xbf16>
    %83 = vector.shape_cast %82 : vector<1x1x8x80xbf16> to vector<8x80xbf16>
    %c1_i32_70 = arith.constant 1 : i32
    %84 = arith.addi %0, %c1_i32_70 : i32
    %c1_i32_71 = arith.constant 1 : i32
    %85 = arith.addi %84, %c1_i32_71 : i32
    %c0_72 = arith.constant 0 : index
    %86 = arith.index_cast %85 : i32 to index
    %c2_73 = arith.constant 2 : index
    %c0_74 = arith.constant 0 : index
    %87 = vector.load %arg2[%c0_72, %86, %c2_73, %c0_74] : memref<1x10x10x80xbf16, #tpu.memory_space<vmem>>, vector<1x1x8x80xbf16>
    %88 = vector.shape_cast %87 : vector<1x1x8x80xbf16> to vector<8x80xbf16>
    %cst_75 = arith.constant dense<0.000000e+00> : vector<8x128xf32>
    %89 = tpu.matmul %83, %79, %cst_75 {dimension_numbers = #tpu.dot_dimension_numbers<[1], [0], [0], [1], [0, 0, 1, 1], [], []>} : vector<8x80xbf16>, vector<80x128xbf16>, vector<8x128xf32> -> vector<8x128xf32>
    %90 = arith.addf %75, %89 : vector<8x128xf32>
    %cst_76 = arith.constant dense<0.000000e+00> : vector<8x128xf32>
    %91 = tpu.matmul %88, %79, %cst_76 {dimension_numbers = #tpu.dot_dimension_numbers<[1], [0], [0], [1], [0, 0, 1, 1], [], []>} : vector<8x80xbf16>, vector<80x128xbf16>, vector<8x128xf32> -> vector<8x128xf32>
    %92 = arith.addf %77, %91 : vector<8x128xf32>
    %c6 = arith.constant 6 : index
    %c0_77 = arith.constant 0 : index
    %c0_78 = arith.constant 0 : index
    %93 = vector.load %arg3[%c6, %c0_77, %c0_78] : memref<9x80x128xbf16, #tpu.memory_space<vmem>>, vector<1x80x128xbf16>
    %94 = vector.shape_cast %93 : vector<1x80x128xbf16> to vector<80x128xbf16>
    %c2_i32_79 = arith.constant 2 : i32
    %95 = arith.addi %0, %c2_i32_79 : i32
    %c0_80 = arith.constant 0 : index
    %96 = arith.index_cast %95 : i32 to index
    %c0_81 = arith.constant 0 : index
    %c0_82 = arith.constant 0 : index
    %97 = vector.load %arg2[%c0_80, %96, %c0_81, %c0_82] : memref<1x10x10x80xbf16, #tpu.memory_space<vmem>>, vector<1x1x8x80xbf16>
    %98 = vector.shape_cast %97 : vector<1x1x8x80xbf16> to vector<8x80xbf16>
    %c1_i32_83 = arith.constant 1 : i32
    %99 = arith.addi %0, %c1_i32_83 : i32
    %c2_i32_84 = arith.constant 2 : i32
    %100 = arith.addi %99, %c2_i32_84 : i32
    %c0_85 = arith.constant 0 : index
    %101 = arith.index_cast %100 : i32 to index
    %c0_86 = arith.constant 0 : index
    %c0_87 = arith.constant 0 : index
    %102 = vector.load %arg2[%c0_85, %101, %c0_86, %c0_87] : memref<1x10x10x80xbf16, #tpu.memory_space<vmem>>, vector<1x1x8x80xbf16>
    %103 = vector.shape_cast %102 : vector<1x1x8x80xbf16> to vector<8x80xbf16>
    %cst_88 = arith.constant dense<0.000000e+00> : vector<8x128xf32>
    %104 = tpu.matmul %98, %94, %cst_88 {dimension_numbers = #tpu.dot_dimension_numbers<[1], [0], [0], [1], [0, 0, 1, 1], [], []>} : vector<8x80xbf16>, vector<80x128xbf16>, vector<8x128xf32> -> vector<8x128xf32>
    %105 = arith.addf %90, %104 : vector<8x128xf32>
    %cst_89 = arith.constant dense<0.000000e+00> : vector<8x128xf32>
    %106 = tpu.matmul %103, %94, %cst_89 {dimension_numbers = #tpu.dot_dimension_numbers<[1], [0], [0], [1], [0, 0, 1, 1], [], []>} : vector<8x80xbf16>, vector<80x128xbf16>, vector<8x128xf32> -> vector<8x128xf32>
    %107 = arith.addf %92, %106 : vector<8x128xf32>
    %c7 = arith.constant 7 : index
    %c0_90 = arith.constant 0 : index
    %c0_91 = arith.constant 0 : index
    %108 = vector.load %arg3[%c7, %c0_90, %c0_91] : memref<9x80x128xbf16, #tpu.memory_space<vmem>>, vector<1x80x128xbf16>
    %109 = vector.shape_cast %108 : vector<1x80x128xbf16> to vector<80x128xbf16>
    %c2_i32_92 = arith.constant 2 : i32
    %110 = arith.addi %0, %c2_i32_92 : i32
    %c0_93 = arith.constant 0 : index
    %111 = arith.index_cast %110 : i32 to index
    %c1_94 = arith.constant 1 : index
    %c0_95 = arith.constant 0 : index
    %112 = vector.load %arg2[%c0_93, %111, %c1_94, %c0_95] : memref<1x10x10x80xbf16, #tpu.memory_space<vmem>>, vector<1x1x8x80xbf16>
    %113 = vector.shape_cast %112 : vector<1x1x8x80xbf16> to vector<8x80xbf16>
    %c1_i32_96 = arith.constant 1 : i32
    %114 = arith.addi %0, %c1_i32_96 : i32
    %c2_i32_97 = arith.constant 2 : i32
    %115 = arith.addi %114, %c2_i32_97 : i32
    %c0_98 = arith.constant 0 : index
    %116 = arith.index_cast %115 : i32 to index
    %c1_99 = arith.constant 1 : index
    %c0_100 = arith.constant 0 : index
    %117 = vector.load %arg2[%c0_98, %116, %c1_99, %c0_100] : memref<1x10x10x80xbf16, #tpu.memory_space<vmem>>, vector<1x1x8x80xbf16>
    %118 = vector.shape_cast %117 : vector<1x1x8x80xbf16> to vector<8x80xbf16>
    %cst_101 = arith.constant dense<0.000000e+00> : vector<8x128xf32>
    %119 = tpu.matmul %113, %109, %cst_101 {dimension_numbers = #tpu.dot_dimension_numbers<[1], [0], [0], [1], [0, 0, 1, 1], [], []>} : vector<8x80xbf16>, vector<80x128xbf16>, vector<8x128xf32> -> vector<8x128xf32>
    %120 = arith.addf %105, %119 : vector<8x128xf32>
    %cst_102 = arith.constant dense<0.000000e+00> : vector<8x128xf32>
    %121 = tpu.matmul %118, %109, %cst_102 {dimension_numbers = #tpu.dot_dimension_numbers<[1], [0], [0], [1], [0, 0, 1, 1], [], []>} : vector<8x80xbf16>, vector<80x128xbf16>, vector<8x128xf32> -> vector<8x128xf32>
    %122 = arith.addf %107, %121 : vector<8x128xf32>
    %c8 = arith.constant 8 : index
    %c0_103 = arith.constant 0 : index
    %c0_104 = arith.constant 0 : index
    %123 = vector.load %arg3[%c8, %c0_103, %c0_104] : memref<9x80x128xbf16, #tpu.memory_space<vmem>>, vector<1x80x128xbf16>
    %124 = vector.shape_cast %123 : vector<1x80x128xbf16> to vector<80x128xbf16>
    %c2_i32_105 = arith.constant 2 : i32
    %125 = arith.addi %0, %c2_i32_105 : i32
    %c0_106 = arith.constant 0 : index
    %126 = arith.index_cast %125 : i32 to index
    %c2_107 = arith.constant 2 : index
    %c0_108 = arith.constant 0 : index
    %127 = vector.load %arg2[%c0_106, %126, %c2_107, %c0_108] : memref<1x10x10x80xbf16, #tpu.memory_space<vmem>>, vector<1x1x8x80xbf16>
    %128 = vector.shape_cast %127 : vector<1x1x8x80xbf16> to vector<8x80xbf16>
    %c1_i32_109 = arith.constant 1 : i32
    %129 = arith.addi %0, %c1_i32_109 : i32
    %c2_i32_110 = arith.constant 2 : i32
    %130 = arith.addi %129, %c2_i32_110 : i32
    %c0_111 = arith.constant 0 : index
    %131 = arith.index_cast %130 : i32 to index
    %c2_112 = arith.constant 2 : index
    %c0_113 = arith.constant 0 : index
    %132 = vector.load %arg2[%c0_111, %131, %c2_112, %c0_113] : memref<1x10x10x80xbf16, #tpu.memory_space<vmem>>, vector<1x1x8x80xbf16>
    %133 = vector.shape_cast %132 : vector<1x1x8x80xbf16> to vector<8x80xbf16>
    %cst_114 = arith.constant dense<0.000000e+00> : vector<8x128xf32>
    %134 = tpu.matmul %128, %124, %cst_114 {dimension_numbers = #tpu.dot_dimension_numbers<[1], [0], [0], [1], [0, 0, 1, 1], [], []>} : vector<8x80xbf16>, vector<80x128xbf16>, vector<8x128xf32> -> vector<8x128xf32>
    %135 = arith.addf %120, %134 : vector<8x128xf32>
    %cst_115 = arith.constant dense<0.000000e+00> : vector<8x128xf32>
    %136 = tpu.matmul %133, %124, %cst_115 {dimension_numbers = #tpu.dot_dimension_numbers<[1], [0], [0], [1], [0, 0, 1, 1], [], []>} : vector<8x80xbf16>, vector<80x128xbf16>, vector<8x128xf32> -> vector<8x128xf32>
    %137 = arith.addf %122, %136 : vector<8x128xf32>
    %c0_116 = arith.constant 0 : index
    %c0_117 = arith.constant 0 : index
    %138 = vector.load %arg4[%c0_116, %c0_117] : memref<1x128xf32, #tpu.memory_space<vmem>>, vector<1x128xf32>
    %c0_118 = arith.constant 0 : index
    %c0_119 = arith.constant 0 : index
    %139 = vector.load %arg5[%c0_118, %c0_119] : memref<1x128xf32, #tpu.memory_space<vmem>>, vector<1x128xf32>
    %c0_120 = arith.constant 0 : index
    %c0_121 = arith.constant 0 : index
    %140 = vector.load %arg6[%c0_120, %c0_121] : memref<1x128xf32, #tpu.memory_space<vmem>>, vector<1x128xf32>
    %141 = vector.broadcast %138 : vector<1x128xf32> to vector<8x128xf32>
    %142 = arith.addf %135, %141 : vector<8x128xf32>
    %cst_122 = arith.constant 0.000000e+00 : f32
    %143 = vector.broadcast %cst_122 : f32 to vector<8x128xf32>
    %144 = arith.maximumf %142, %143 : vector<8x128xf32>
    %145 = vector.broadcast %139 : vector<1x128xf32> to vector<8x128xf32>
    %146 = arith.mulf %145, %144 : vector<8x128xf32>
    %147 = vector.broadcast %140 : vector<1x128xf32> to vector<8x128xf32>
    %148 = arith.addf %146, %147 : vector<8x128xf32>
    %149 = vector.broadcast %138 : vector<1x128xf32> to vector<8x128xf32>
    %150 = arith.addf %137, %149 : vector<8x128xf32>
    %cst_123 = arith.constant 0.000000e+00 : f32
    %151 = vector.broadcast %cst_123 : f32 to vector<8x128xf32>
    %152 = arith.maximumf %150, %151 : vector<8x128xf32>
    %153 = vector.broadcast %139 : vector<1x128xf32> to vector<8x128xf32>
    %154 = arith.mulf %153, %152 : vector<8x128xf32>
    %155 = vector.broadcast %140 : vector<1x128xf32> to vector<8x128xf32>
    %156 = arith.addf %154, %155 : vector<8x128xf32>
    %157 = arith.maximumf %148, %156 : vector<8x128xf32>
    %c0_124 = arith.constant 0 : index
    %c0_125 = arith.constant 0 : index
    %c0_126 = arith.constant 0 : index
    %c0_127 = arith.constant 0 : index
    %158 = vector.load %arg7[%c0_124, %c0_125, %c0_126, %c0_127] : memref<1x1x8x128xf32, #tpu.memory_space<vmem>>, vector<1x1x8x128xf32>
    %159 = vector.shape_cast %158 : vector<1x1x8x128xf32> to vector<8x128xf32>
    %160 = vector.shape_cast %157 : vector<8x128xf32> to vector<1x1x8x128xf32>
    tpu.vector_store %arg7[%c0_124, %c0_125, %c0_126, %c0_127], %160 {strides = array<i32>} : memref<1x1x8x128xf32, #tpu.memory_space<vmem>>, vector<1x1x8x128xf32>,
    return
  }
  func.func @transform_0(%arg0: i32, %arg1: i32) -> (i32, i32, i32, i32) {
    %c0_i32 = arith.constant 0 : i32
    %c0_i32_0 = arith.constant 0 : i32
    %c0_i32_1 = arith.constant 0 : i32
    %c0_i32_2 = arith.constant 0 : i32
    return %arg0, %c0_i32, %c0_i32_0, %c0_i32_1 : i32, i32, i32, i32
  }
  func.func @transform_1(%arg0: i32, %arg1: i32) -> (i32, i32, i32) {
    %c0_i32 = arith.constant 0 : i32
    %c0_i32_0 = arith.constant 0 : i32
    %c0_i32_1 = arith.constant 0 : i32
    %c0_i32_2 = arith.constant 0 : i32
    return %c0_i32, %c0_i32_0, %c0_i32_1 : i32, i32, i32
  }
  func.func @transform_2(%arg0: i32, %arg1: i32) -> (i32, i32) {
    %c0_i32 = arith.constant 0 : i32
    %c0_i32_0 = arith.constant 0 : i32
    %c0_i32_1 = arith.constant 0 : i32
    return %c0_i32, %c0_i32_0 : i32, i32
  }
  func.func @transform_3(%arg0: i32, %arg1: i32) -> (i32, i32) {
    %c0_i32 = arith.constant 0 : i32
    %c0_i32_0 = arith.constant 0 : i32
    %c0_i32_1 = arith.constant 0 : i32
    return %c0_i32, %c0_i32_0 : i32, i32
  }
  func.func @transform_4(%arg0: i32, %arg1: i32) -> (i32, i32) {
    %c0_i32 = arith.constant 0 : i32
    %c0_i32_0 = arith.constant 0 : i32
    %c0_i32_1 = arith.constant 0 : i32
    return %c0_i32, %c0_i32_0 : i32, i32
  }
  func.func @transform_5(%arg0: i32, %arg1: i32) -> (i32, i32, i32, i32) {
    %c0_i32 = arith.constant 0 : i32
    %c0_i32_0 = arith.constant 0 : i32
    %c0_i32_1 = arith.constant 0 : i32
    return %arg0, %arg1, %c0_i32, %c0_i32_0 : i32, i32, i32, i32
  }
}

module attributes {stable_mosaic.version = 11 : i64} {
  func.func @kernel(%arg0: i32, %arg1: i32, %arg2: memref<1x6x6x96xbf16, #tpu.memory_space<vmem>>, %arg3: memref<9x96x128xbf16, #tpu.memory_space<vmem>>, %arg4: memref<1x128xf32, #tpu.memory_space<vmem>>, %arg5: memref<1x128xf32, #tpu.memory_space<vmem>>, %arg6: memref<1x128xf32, #tpu.memory_space<vmem>>, %arg7: memref<1x1x4x128xf32, #tpu.memory_space<vmem>>) attributes {dimension_semantics = [#tpu.dimension_semantics<parallel>, #tpu.dimension_semantics<parallel>], iteration_bounds = array<i64: 2, 2>, scalar_prefetch = 0 : i64, scratch_operands = 0 : i64, tpu.core_type = #tpu.core_type<tc>, window_params = [{transform_indices = @transform_0, window_bounds = array<i64: 1, 6, 6, 96>}, {pipeline_mode = #tpu.pipeline_mode<synchronous>, transform_indices = @transform_1, window_bounds = array<i64: 9, 96, 128>}, {pipeline_mode = #tpu.pipeline_mode<synchronous>, transform_indices = @transform_2, window_bounds = array<i64: 1, 128>}, {pipeline_mode = #tpu.pipeline_mode<synchronous>, transform_indices = @transform_3, window_bounds = array<i64: 1, 128>}, {pipeline_mode = #tpu.pipeline_mode<synchronous>, transform_indices = @transform_4, window_bounds = array<i64: 1, 128>}, {transform_indices = @transform_5, window_bounds = array<i64: 1, 1, 4, 128>}]} {
    %c2_i32 = arith.constant 2 : i32
    %0 = arith.muli %c2_i32, %arg1 : i32
    %cst = arith.constant 0.000000e+00 : f32
    %1 = vector.broadcast %cst : f32 to vector<4x128xf32>
    %cst_0 = arith.constant 0.000000e+00 : f32
    %2 = vector.broadcast %cst_0 : f32 to vector<4x128xf32>
    %c0 = arith.constant 0 : index
    %c0_1 = arith.constant 0 : index
    %c0_2 = arith.constant 0 : index
    %3 = vector.load %arg3[%c0, %c0_1, %c0_2] : memref<9x96x128xbf16, #tpu.memory_space<vmem>>, vector<1x96x128xbf16>
    %4 = vector.shape_cast %3 : vector<1x96x128xbf16> to vector<96x128xbf16>
    %c0_i32 = arith.constant 0 : i32
    %5 = arith.addi %0, %c0_i32 : i32
    %c0_3 = arith.constant 0 : index
    %6 = arith.index_cast %5 : i32 to index
    %c0_4 = arith.constant 0 : index
    %c0_5 = arith.constant 0 : index
    %7 = vector.load %arg2[%c0_3, %6, %c0_4, %c0_5] : memref<1x6x6x96xbf16, #tpu.memory_space<vmem>>, vector<1x1x4x96xbf16>
    %8 = vector.shape_cast %7 : vector<1x1x4x96xbf16> to vector<4x96xbf16>
    %c1_i32 = arith.constant 1 : i32
    %9 = arith.addi %0, %c1_i32 : i32
    %c0_i32_6 = arith.constant 0 : i32
    %10 = arith.addi %9, %c0_i32_6 : i32
    %c0_7 = arith.constant 0 : index
    %11 = arith.index_cast %10 : i32 to index
    %c0_8 = arith.constant 0 : index
    %c0_9 = arith.constant 0 : index
    %12 = vector.load %arg2[%c0_7, %11, %c0_8, %c0_9] : memref<1x6x6x96xbf16, #tpu.memory_space<vmem>>, vector<1x1x4x96xbf16>
    %13 = vector.shape_cast %12 : vector<1x1x4x96xbf16> to vector<4x96xbf16>
    %cst_10 = arith.constant dense<0.000000e+00> : vector<4x128xf32>
    %14 = tpu.matmul %8, %4, %cst_10 {dimension_numbers = #tpu.dot_dimension_numbers<[1], [0], [0], [1], [0, 0, 1, 1], [], []>} : vector<4x96xbf16>, vector<96x128xbf16>, vector<4x128xf32> -> vector<4x128xf32>
    %15 = arith.addf %1, %14 : vector<4x128xf32>
    %cst_11 = arith.constant dense<0.000000e+00> : vector<4x128xf32>
    %16 = tpu.matmul %13, %4, %cst_11 {dimension_numbers = #tpu.dot_dimension_numbers<[1], [0], [0], [1], [0, 0, 1, 1], [], []>} : vector<4x96xbf16>, vector<96x128xbf16>, vector<4x128xf32> -> vector<4x128xf32>
    %17 = arith.addf %2, %16 : vector<4x128xf32>
    %c1 = arith.constant 1 : index
    %c0_12 = arith.constant 0 : index
    %c0_13 = arith.constant 0 : index
    %18 = vector.load %arg3[%c1, %c0_12, %c0_13] : memref<9x96x128xbf16, #tpu.memory_space<vmem>>, vector<1x96x128xbf16>
    %19 = vector.shape_cast %18 : vector<1x96x128xbf16> to vector<96x128xbf16>
    %c0_i32_14 = arith.constant 0 : i32
    %20 = arith.addi %0, %c0_i32_14 : i32
    %c0_15 = arith.constant 0 : index
    %21 = arith.index_cast %20 : i32 to index
    %c1_16 = arith.constant 1 : index
    %c0_17 = arith.constant 0 : index
    %22 = vector.load %arg2[%c0_15, %21, %c1_16, %c0_17] : memref<1x6x6x96xbf16, #tpu.memory_space<vmem>>, vector<1x1x4x96xbf16>
    %23 = vector.shape_cast %22 : vector<1x1x4x96xbf16> to vector<4x96xbf16>
    %c1_i32_18 = arith.constant 1 : i32
    %24 = arith.addi %0, %c1_i32_18 : i32
    %c0_i32_19 = arith.constant 0 : i32
    %25 = arith.addi %24, %c0_i32_19 : i32
    %c0_20 = arith.constant 0 : index
    %26 = arith.index_cast %25 : i32 to index
    %c1_21 = arith.constant 1 : index
    %c0_22 = arith.constant 0 : index
    %27 = vector.load %arg2[%c0_20, %26, %c1_21, %c0_22] : memref<1x6x6x96xbf16, #tpu.memory_space<vmem>>, vector<1x1x4x96xbf16>
    %28 = vector.shape_cast %27 : vector<1x1x4x96xbf16> to vector<4x96xbf16>
    %cst_23 = arith.constant dense<0.000000e+00> : vector<4x128xf32>
    %29 = tpu.matmul %23, %19, %cst_23 {dimension_numbers = #tpu.dot_dimension_numbers<[1], [0], [0], [1], [0, 0, 1, 1], [], []>} : vector<4x96xbf16>, vector<96x128xbf16>, vector<4x128xf32> -> vector<4x128xf32>
    %30 = arith.addf %15, %29 : vector<4x128xf32>
    %cst_24 = arith.constant dense<0.000000e+00> : vector<4x128xf32>
    %31 = tpu.matmul %28, %19, %cst_24 {dimension_numbers = #tpu.dot_dimension_numbers<[1], [0], [0], [1], [0, 0, 1, 1], [], []>} : vector<4x96xbf16>, vector<96x128xbf16>, vector<4x128xf32> -> vector<4x128xf32>
    %32 = arith.addf %17, %31 : vector<4x128xf32>
    %c2 = arith.constant 2 : index
    %c0_25 = arith.constant 0 : index
    %c0_26 = arith.constant 0 : index
    %33 = vector.load %arg3[%c2, %c0_25, %c0_26] : memref<9x96x128xbf16, #tpu.memory_space<vmem>>, vector<1x96x128xbf16>
    %34 = vector.shape_cast %33 : vector<1x96x128xbf16> to vector<96x128xbf16>
    %c0_i32_27 = arith.constant 0 : i32
    %35 = arith.addi %0, %c0_i32_27 : i32
    %c0_28 = arith.constant 0 : index
    %36 = arith.index_cast %35 : i32 to index
    %c2_29 = arith.constant 2 : index
    %c0_30 = arith.constant 0 : index
    %37 = vector.load %arg2[%c0_28, %36, %c2_29, %c0_30] : memref<1x6x6x96xbf16, #tpu.memory_space<vmem>>, vector<1x1x4x96xbf16>
    %38 = vector.shape_cast %37 : vector<1x1x4x96xbf16> to vector<4x96xbf16>
    %c1_i32_31 = arith.constant 1 : i32
    %39 = arith.addi %0, %c1_i32_31 : i32
    %c0_i32_32 = arith.constant 0 : i32
    %40 = arith.addi %39, %c0_i32_32 : i32
    %c0_33 = arith.constant 0 : index
    %41 = arith.index_cast %40 : i32 to index
    %c2_34 = arith.constant 2 : index
    %c0_35 = arith.constant 0 : index
    %42 = vector.load %arg2[%c0_33, %41, %c2_34, %c0_35] : memref<1x6x6x96xbf16, #tpu.memory_space<vmem>>, vector<1x1x4x96xbf16>
    %43 = vector.shape_cast %42 : vector<1x1x4x96xbf16> to vector<4x96xbf16>
    %cst_36 = arith.constant dense<0.000000e+00> : vector<4x128xf32>
    %44 = tpu.matmul %38, %34, %cst_36 {dimension_numbers = #tpu.dot_dimension_numbers<[1], [0], [0], [1], [0, 0, 1, 1], [], []>} : vector<4x96xbf16>, vector<96x128xbf16>, vector<4x128xf32> -> vector<4x128xf32>
    %45 = arith.addf %30, %44 : vector<4x128xf32>
    %cst_37 = arith.constant dense<0.000000e+00> : vector<4x128xf32>
    %46 = tpu.matmul %43, %34, %cst_37 {dimension_numbers = #tpu.dot_dimension_numbers<[1], [0], [0], [1], [0, 0, 1, 1], [], []>} : vector<4x96xbf16>, vector<96x128xbf16>, vector<4x128xf32> -> vector<4x128xf32>
    %47 = arith.addf %32, %46 : vector<4x128xf32>
    %c3 = arith.constant 3 : index
    %c0_38 = arith.constant 0 : index
    %c0_39 = arith.constant 0 : index
    %48 = vector.load %arg3[%c3, %c0_38, %c0_39] : memref<9x96x128xbf16, #tpu.memory_space<vmem>>, vector<1x96x128xbf16>
    %49 = vector.shape_cast %48 : vector<1x96x128xbf16> to vector<96x128xbf16>
    %c1_i32_40 = arith.constant 1 : i32
    %50 = arith.addi %0, %c1_i32_40 : i32
    %c0_41 = arith.constant 0 : index
    %51 = arith.index_cast %50 : i32 to index
    %c0_42 = arith.constant 0 : index
    %c0_43 = arith.constant 0 : index
    %52 = vector.load %arg2[%c0_41, %51, %c0_42, %c0_43] : memref<1x6x6x96xbf16, #tpu.memory_space<vmem>>, vector<1x1x4x96xbf16>
    %53 = vector.shape_cast %52 : vector<1x1x4x96xbf16> to vector<4x96xbf16>
    %c1_i32_44 = arith.constant 1 : i32
    %54 = arith.addi %0, %c1_i32_44 : i32
    %c1_i32_45 = arith.constant 1 : i32
    %55 = arith.addi %54, %c1_i32_45 : i32
    %c0_46 = arith.constant 0 : index
    %56 = arith.index_cast %55 : i32 to index
    %c0_47 = arith.constant 0 : index
    %c0_48 = arith.constant 0 : index
    %57 = vector.load %arg2[%c0_46, %56, %c0_47, %c0_48] : memref<1x6x6x96xbf16, #tpu.memory_space<vmem>>, vector<1x1x4x96xbf16>
    %58 = vector.shape_cast %57 : vector<1x1x4x96xbf16> to vector<4x96xbf16>
    %cst_49 = arith.constant dense<0.000000e+00> : vector<4x128xf32>
    %59 = tpu.matmul %53, %49, %cst_49 {dimension_numbers = #tpu.dot_dimension_numbers<[1], [0], [0], [1], [0, 0, 1, 1], [], []>} : vector<4x96xbf16>, vector<96x128xbf16>, vector<4x128xf32> -> vector<4x128xf32>
    %60 = arith.addf %45, %59 : vector<4x128xf32>
    %cst_50 = arith.constant dense<0.000000e+00> : vector<4x128xf32>
    %61 = tpu.matmul %58, %49, %cst_50 {dimension_numbers = #tpu.dot_dimension_numbers<[1], [0], [0], [1], [0, 0, 1, 1], [], []>} : vector<4x96xbf16>, vector<96x128xbf16>, vector<4x128xf32> -> vector<4x128xf32>
    %62 = arith.addf %47, %61 : vector<4x128xf32>
    %c4 = arith.constant 4 : index
    %c0_51 = arith.constant 0 : index
    %c0_52 = arith.constant 0 : index
    %63 = vector.load %arg3[%c4, %c0_51, %c0_52] : memref<9x96x128xbf16, #tpu.memory_space<vmem>>, vector<1x96x128xbf16>
    %64 = vector.shape_cast %63 : vector<1x96x128xbf16> to vector<96x128xbf16>
    %c1_i32_53 = arith.constant 1 : i32
    %65 = arith.addi %0, %c1_i32_53 : i32
    %c0_54 = arith.constant 0 : index
    %66 = arith.index_cast %65 : i32 to index
    %c1_55 = arith.constant 1 : index
    %c0_56 = arith.constant 0 : index
    %67 = vector.load %arg2[%c0_54, %66, %c1_55, %c0_56] : memref<1x6x6x96xbf16, #tpu.memory_space<vmem>>, vector<1x1x4x96xbf16>
    %68 = vector.shape_cast %67 : vector<1x1x4x96xbf16> to vector<4x96xbf16>
    %c1_i32_57 = arith.constant 1 : i32
    %69 = arith.addi %0, %c1_i32_57 : i32
    %c1_i32_58 = arith.constant 1 : i32
    %70 = arith.addi %69, %c1_i32_58 : i32
    %c0_59 = arith.constant 0 : index
    %71 = arith.index_cast %70 : i32 to index
    %c1_60 = arith.constant 1 : index
    %c0_61 = arith.constant 0 : index
    %72 = vector.load %arg2[%c0_59, %71, %c1_60, %c0_61] : memref<1x6x6x96xbf16, #tpu.memory_space<vmem>>, vector<1x1x4x96xbf16>
    %73 = vector.shape_cast %72 : vector<1x1x4x96xbf16> to vector<4x96xbf16>
    %cst_62 = arith.constant dense<0.000000e+00> : vector<4x128xf32>
    %74 = tpu.matmul %68, %64, %cst_62 {dimension_numbers = #tpu.dot_dimension_numbers<[1], [0], [0], [1], [0, 0, 1, 1], [], []>} : vector<4x96xbf16>, vector<96x128xbf16>, vector<4x128xf32> -> vector<4x128xf32>
    %75 = arith.addf %60, %74 : vector<4x128xf32>
    %cst_63 = arith.constant dense<0.000000e+00> : vector<4x128xf32>
    %76 = tpu.matmul %73, %64, %cst_63 {dimension_numbers = #tpu.dot_dimension_numbers<[1], [0], [0], [1], [0, 0, 1, 1], [], []>} : vector<4x96xbf16>, vector<96x128xbf16>, vector<4x128xf32> -> vector<4x128xf32>
    %77 = arith.addf %62, %76 : vector<4x128xf32>
    %c5 = arith.constant 5 : index
    %c0_64 = arith.constant 0 : index
    %c0_65 = arith.constant 0 : index
    %78 = vector.load %arg3[%c5, %c0_64, %c0_65] : memref<9x96x128xbf16, #tpu.memory_space<vmem>>, vector<1x96x128xbf16>
    %79 = vector.shape_cast %78 : vector<1x96x128xbf16> to vector<96x128xbf16>
    %c1_i32_66 = arith.constant 1 : i32
    %80 = arith.addi %0, %c1_i32_66 : i32
    %c0_67 = arith.constant 0 : index
    %81 = arith.index_cast %80 : i32 to index
    %c2_68 = arith.constant 2 : index
    %c0_69 = arith.constant 0 : index
    %82 = vector.load %arg2[%c0_67, %81, %c2_68, %c0_69] : memref<1x6x6x96xbf16, #tpu.memory_space<vmem>>, vector<1x1x4x96xbf16>
    %83 = vector.shape_cast %82 : vector<1x1x4x96xbf16> to vector<4x96xbf16>
    %c1_i32_70 = arith.constant 1 : i32
    %84 = arith.addi %0, %c1_i32_70 : i32
    %c1_i32_71 = arith.constant 1 : i32
    %85 = arith.addi %84, %c1_i32_71 : i32
    %c0_72 = arith.constant 0 : index
    %86 = arith.index_cast %85 : i32 to index
    %c2_73 = arith.constant 2 : index
    %c0_74 = arith.constant 0 : index
    %87 = vector.load %arg2[%c0_72, %86, %c2_73, %c0_74] : memref<1x6x6x96xbf16, #tpu.memory_space<vmem>>, vector<1x1x4x96xbf16>
    %88 = vector.shape_cast %87 : vector<1x1x4x96xbf16> to vector<4x96xbf16>
    %cst_75 = arith.constant dense<0.000000e+00> : vector<4x128xf32>
    %89 = tpu.matmul %83, %79, %cst_75 {dimension_numbers = #tpu.dot_dimension_numbers<[1], [0], [0], [1], [0, 0, 1, 1], [], []>} : vector<4x96xbf16>, vector<96x128xbf16>, vector<4x128xf32> -> vector<4x128xf32>
    %90 = arith.addf %75, %89 : vector<4x128xf32>
    %cst_76 = arith.constant dense<0.000000e+00> : vector<4x128xf32>
    %91 = tpu.matmul %88, %79, %cst_76 {dimension_numbers = #tpu.dot_dimension_numbers<[1], [0], [0], [1], [0, 0, 1, 1], [], []>} : vector<4x96xbf16>, vector<96x128xbf16>, vector<4x128xf32> -> vector<4x128xf32>
    %92 = arith.addf %77, %91 : vector<4x128xf32>
    %c6 = arith.constant 6 : index
    %c0_77 = arith.constant 0 : index
    %c0_78 = arith.constant 0 : index
    %93 = vector.load %arg3[%c6, %c0_77, %c0_78] : memref<9x96x128xbf16, #tpu.memory_space<vmem>>, vector<1x96x128xbf16>
    %94 = vector.shape_cast %93 : vector<1x96x128xbf16> to vector<96x128xbf16>
    %c2_i32_79 = arith.constant 2 : i32
    %95 = arith.addi %0, %c2_i32_79 : i32
    %c0_80 = arith.constant 0 : index
    %96 = arith.index_cast %95 : i32 to index
    %c0_81 = arith.constant 0 : index
    %c0_82 = arith.constant 0 : index
    %97 = vector.load %arg2[%c0_80, %96, %c0_81, %c0_82] : memref<1x6x6x96xbf16, #tpu.memory_space<vmem>>, vector<1x1x4x96xbf16>
    %98 = vector.shape_cast %97 : vector<1x1x4x96xbf16> to vector<4x96xbf16>
    %c1_i32_83 = arith.constant 1 : i32
    %99 = arith.addi %0, %c1_i32_83 : i32
    %c2_i32_84 = arith.constant 2 : i32
    %100 = arith.addi %99, %c2_i32_84 : i32
    %c0_85 = arith.constant 0 : index
    %101 = arith.index_cast %100 : i32 to index
    %c0_86 = arith.constant 0 : index
    %c0_87 = arith.constant 0 : index
    %102 = vector.load %arg2[%c0_85, %101, %c0_86, %c0_87] : memref<1x6x6x96xbf16, #tpu.memory_space<vmem>>, vector<1x1x4x96xbf16>
    %103 = vector.shape_cast %102 : vector<1x1x4x96xbf16> to vector<4x96xbf16>
    %cst_88 = arith.constant dense<0.000000e+00> : vector<4x128xf32>
    %104 = tpu.matmul %98, %94, %cst_88 {dimension_numbers = #tpu.dot_dimension_numbers<[1], [0], [0], [1], [0, 0, 1, 1], [], []>} : vector<4x96xbf16>, vector<96x128xbf16>, vector<4x128xf32> -> vector<4x128xf32>
    %105 = arith.addf %90, %104 : vector<4x128xf32>
    %cst_89 = arith.constant dense<0.000000e+00> : vector<4x128xf32>
    %106 = tpu.matmul %103, %94, %cst_89 {dimension_numbers = #tpu.dot_dimension_numbers<[1], [0], [0], [1], [0, 0, 1, 1], [], []>} : vector<4x96xbf16>, vector<96x128xbf16>, vector<4x128xf32> -> vector<4x128xf32>
    %107 = arith.addf %92, %106 : vector<4x128xf32>
    %c7 = arith.constant 7 : index
    %c0_90 = arith.constant 0 : index
    %c0_91 = arith.constant 0 : index
    %108 = vector.load %arg3[%c7, %c0_90, %c0_91] : memref<9x96x128xbf16, #tpu.memory_space<vmem>>, vector<1x96x128xbf16>
    %109 = vector.shape_cast %108 : vector<1x96x128xbf16> to vector<96x128xbf16>
    %c2_i32_92 = arith.constant 2 : i32
    %110 = arith.addi %0, %c2_i32_92 : i32
    %c0_93 = arith.constant 0 : index
    %111 = arith.index_cast %110 : i32 to index
    %c1_94 = arith.constant 1 : index
    %c0_95 = arith.constant 0 : index
    %112 = vector.load %arg2[%c0_93, %111, %c1_94, %c0_95] : memref<1x6x6x96xbf16, #tpu.memory_space<vmem>>, vector<1x1x4x96xbf16>
    %113 = vector.shape_cast %112 : vector<1x1x4x96xbf16> to vector<4x96xbf16>
    %c1_i32_96 = arith.constant 1 : i32
    %114 = arith.addi %0, %c1_i32_96 : i32
    %c2_i32_97 = arith.constant 2 : i32
    %115 = arith.addi %114, %c2_i32_97 : i32
    %c0_98 = arith.constant 0 : index
    %116 = arith.index_cast %115 : i32 to index
    %c1_99 = arith.constant 1 : index
    %c0_100 = arith.constant 0 : index
    %117 = vector.load %arg2[%c0_98, %116, %c1_99, %c0_100] : memref<1x6x6x96xbf16, #tpu.memory_space<vmem>>, vector<1x1x4x96xbf16>
    %118 = vector.shape_cast %117 : vector<1x1x4x96xbf16> to vector<4x96xbf16>
    %cst_101 = arith.constant dense<0.000000e+00> : vector<4x128xf32>
    %119 = tpu.matmul %113, %109, %cst_101 {dimension_numbers = #tpu.dot_dimension_numbers<[1], [0], [0], [1], [0, 0, 1, 1], [], []>} : vector<4x96xbf16>, vector<96x128xbf16>, vector<4x128xf32> -> vector<4x128xf32>
    %120 = arith.addf %105, %119 : vector<4x128xf32>
    %cst_102 = arith.constant dense<0.000000e+00> : vector<4x128xf32>
    %121 = tpu.matmul %118, %109, %cst_102 {dimension_numbers = #tpu.dot_dimension_numbers<[1], [0], [0], [1], [0, 0, 1, 1], [], []>} : vector<4x96xbf16>, vector<96x128xbf16>, vector<4x128xf32> -> vector<4x128xf32>
    %122 = arith.addf %107, %121 : vector<4x128xf32>
    %c8 = arith.constant 8 : index
    %c0_103 = arith.constant 0 : index
    %c0_104 = arith.constant 0 : index
    %123 = vector.load %arg3[%c8, %c0_103, %c0_104] : memref<9x96x128xbf16, #tpu.memory_space<vmem>>, vector<1x96x128xbf16>
    %124 = vector.shape_cast %123 : vector<1x96x128xbf16> to vector<96x128xbf16>
    %c2_i32_105 = arith.constant 2 : i32
    %125 = arith.addi %0, %c2_i32_105 : i32
    %c0_106 = arith.constant 0 : index
    %126 = arith.index_cast %125 : i32 to index
    %c2_107 = arith.constant 2 : index
    %c0_108 = arith.constant 0 : index
    %127 = vector.load %arg2[%c0_106, %126, %c2_107, %c0_108] : memref<1x6x6x96xbf16, #tpu.memory_space<vmem>>, vector<1x1x4x96xbf16>
    %128 = vector.shape_cast %127 : vector<1x1x4x96xbf16> to vector<4x96xbf16>
    %c1_i32_109 = arith.constant 1 : i32
    %129 = arith.addi %0, %c1_i32_109 : i32
    %c2_i32_110 = arith.constant 2 : i32
    %130 = arith.addi %129, %c2_i32_110 : i32
    %c0_111 = arith.constant 0 : index
    %131 = arith.index_cast %130 : i32 to index
    %c2_112 = arith.constant 2 : index
    %c0_113 = arith.constant 0 : index
    %132 = vector.load %arg2[%c0_111, %131, %c2_112, %c0_113] : memref<1x6x6x96xbf16, #tpu.memory_space<vmem>>, vector<1x1x4x96xbf16>
    %133 = vector.shape_cast %132 : vector<1x1x4x96xbf16> to vector<4x96xbf16>
    %cst_114 = arith.constant dense<0.000000e+00> : vector<4x128xf32>
    %134 = tpu.matmul %128, %124, %cst_114 {dimension_numbers = #tpu.dot_dimension_numbers<[1], [0], [0], [1], [0, 0, 1, 1], [], []>} : vector<4x96xbf16>, vector<96x128xbf16>, vector<4x128xf32> -> vector<4x128xf32>
    %135 = arith.addf %120, %134 : vector<4x128xf32>
    %cst_115 = arith.constant dense<0.000000e+00> : vector<4x128xf32>
    %136 = tpu.matmul %133, %124, %cst_115 {dimension_numbers = #tpu.dot_dimension_numbers<[1], [0], [0], [1], [0, 0, 1, 1], [], []>} : vector<4x96xbf16>, vector<96x128xbf16>, vector<4x128xf32> -> vector<4x128xf32>
    %137 = arith.addf %122, %136 : vector<4x128xf32>
    %c0_116 = arith.constant 0 : index
    %c0_117 = arith.constant 0 : index
    %138 = vector.load %arg4[%c0_116, %c0_117] : memref<1x128xf32, #tpu.memory_space<vmem>>, vector<1x128xf32>
    %c0_118 = arith.constant 0 : index
    %c0_119 = arith.constant 0 : index
    %139 = vector.load %arg5[%c0_118, %c0_119] : memref<1x128xf32, #tpu.memory_space<vmem>>, vector<1x128xf32>
    %c0_120 = arith.constant 0 : index
    %c0_121 = arith.constant 0 : index
    %140 = vector.load %arg6[%c0_120, %c0_121] : memref<1x128xf32, #tpu.memory_space<vmem>>, vector<1x128xf32>
    %141 = vector.broadcast %138 : vector<1x128xf32> to vector<4x128xf32>
    %142 = arith.addf %135, %141 : vector<4x128xf32>
    %cst_122 = arith.constant 0.000000e+00 : f32
    %143 = vector.broadcast %cst_122 : f32 to vector<4x128xf32>
    %144 = arith.maximumf %142, %143 : vector<4x128xf32>
    %145 = vector.broadcast %139 : vector<1x128xf32> to vector<4x128xf32>
    %146 = arith.mulf %145, %144 : vector<4x128xf32>
    %147 = vector.broadcast %140 : vector<1x128xf32> to vector<4x128xf32>
    %148 = arith.addf %146, %147 : vector<4x128xf32>
    %149 = vector.broadcast %138 : vector<1x128xf32> to vector<4x128xf32>
    %150 = arith.addf %137, %149 : vector<4x128xf32>
    %cst_123 = arith.constant 0.000000e+00 : f32
    %151 = vector.broadcast %cst_123 : f32 to vector<4x128xf32>
    %152 = arith.maximumf %150, %151 : vector<4x128xf32>
    %153 = vector.broadcast %139 : vector<1x128xf32> to vector<4x128xf32>
    %154 = arith.mulf %153, %152 : vector<4x128xf32>
    %155 = vector.broadcast %140 : vector<1x128xf32> to vector<4x128xf32>
    %156 = arith.addf %154, %155 : vector<4x128xf32>
    %157 = arith.maximumf %148, %156 : vector<4x128xf32>
    %c0_124 = arith.constant 0 : index
    %c0_125 = arith.constant 0 : index
    %c0_126 = arith.constant 0 : index
    %c0_127 = arith.constant 0 : index
    %158 = vector.load %arg7[%c0_124, %c0_125, %c0_126, %c0_127] : memref<1x1x4x128xf32, #tpu.memory_space<vmem>>, vector<1x1x4x128xf32>
    %159 = vector.shape_cast %158 : vector<1x1x4x128xf32> to vector<4x128xf32>
    %160 = vector.shape_cast %157 : vector<4x128xf32> to vector<1x1x4x128xf32>
    tpu.vector_store %arg7[%c0_124, %c0_125, %c0_126, %c0_127], %160 {strides = array<i32>} : memref<1x1x4x128xf32, #tpu.memory_space<vmem>>, vector<1x1x4x128xf32>,
    return
  }
  func.func @transform_0(%arg0: i32, %arg1: i32) -> (i32, i32, i32, i32) {
    %c0_i32 = arith.constant 0 : i32
    %c0_i32_0 = arith.constant 0 : i32
    %c0_i32_1 = arith.constant 0 : i32
    %c0_i32_2 = arith.constant 0 : i32
    return %arg0, %c0_i32, %c0_i32_0, %c0_i32_1 : i32, i32, i32, i32
  }
  func.func @transform_1(%arg0: i32, %arg1: i32) -> (i32, i32, i32) {
    %c0_i32 = arith.constant 0 : i32
    %c0_i32_0 = arith.constant 0 : i32
    %c0_i32_1 = arith.constant 0 : i32
    %c0_i32_2 = arith.constant 0 : i32
    return %c0_i32, %c0_i32_0, %c0_i32_1 : i32, i32, i32
  }
  func.func @transform_2(%arg0: i32, %arg1: i32) -> (i32, i32) {
    %c0_i32 = arith.constant 0 : i32
    %c0_i32_0 = arith.constant 0 : i32
    %c0_i32_1 = arith.constant 0 : i32
    return %c0_i32, %c0_i32_0 : i32, i32
  }
  func.func @transform_3(%arg0: i32, %arg1: i32) -> (i32, i32) {
    %c0_i32 = arith.constant 0 : i32
    %c0_i32_0 = arith.constant 0 : i32
    %c0_i32_1 = arith.constant 0 : i32
    return %c0_i32, %c0_i32_0 : i32, i32
  }
  func.func @transform_4(%arg0: i32, %arg1: i32) -> (i32, i32) {
    %c0_i32 = arith.constant 0 : i32
    %c0_i32_0 = arith.constant 0 : i32
    %c0_i32_1 = arith.constant 0 : i32
    return %c0_i32, %c0_i32_0 : i32, i32
  }
  func.func @transform_5(%arg0: i32, %arg1: i32) -> (i32, i32, i32, i32) {
    %c0_i32 = arith.constant 0 : i32
    %c0_i32_0 = arith.constant 0 : i32
    %c0_i32_1 = arith.constant 0 : i32
    return %arg0, %arg1, %c0_i32, %c0_i32_0 : i32, i32, i32, i32
  }
}

module attributes {stable_mosaic.version = 11 : i64} {
  func.func @mlp_head_kernel(%arg0: i32, %arg1: memref<2x128xbf16, #tpu.memory_space<vmem>>, %arg2: memref<128x128xbf16, #tpu.memory_space<vmem>>, %arg3: memref<1x128xf32, #tpu.memory_space<vmem>>, %arg4: memref<128x2xf32, #tpu.memory_space<vmem>>, %arg5: memref<1x2xf32, #tpu.memory_space<vmem>>, %arg6: memref<2x2xf32, #tpu.memory_space<vmem>>, %arg7: memref<2x128xf32, #tpu.memory_space<vmem>>) attributes {dimension_semantics = [#tpu.dimension_semantics<arbitrary>], iteration_bounds = array<i64: 2>, scalar_prefetch = 0 : i64, scratch_operands = 1 : i64, tpu.core_type = #tpu.core_type<tc>, window_params = [{transform_indices = @transform_0, window_bounds = array<i64: 2, 128>}, {transform_indices = @transform_1, window_bounds = array<i64: 128, 128>}, {pipeline_mode = #tpu.pipeline_mode<synchronous>, transform_indices = @transform_2, window_bounds = array<i64: 1, 128>}, {pipeline_mode = #tpu.pipeline_mode<synchronous>, transform_indices = @transform_3, window_bounds = array<i64: 128, 2>}, {pipeline_mode = #tpu.pipeline_mode<synchronous>, transform_indices = @transform_4, window_bounds = array<i64: 1, 2>}, {pipeline_mode = #tpu.pipeline_mode<synchronous>, transform_indices = @transform_5, window_bounds = array<i64: 2, 2>}]} {
    %c0_i32 = arith.constant 0 : i32
    %0 = arith.cmpi eq, %arg0, %c0_i32 : i32
    %1 = arith.extui %0 : i1 to i32
    %c0_i32_0 = arith.constant 0 : i32
    %2 = arith.cmpi ne, %1, %c0_i32_0 : i32
    scf.if %2 {
      %cst_9 = arith.constant 0.000000e+00 : f32
      %12 = vector.broadcast %cst_9 : f32 to vector<2x128xf32>
      %c0_10 = arith.constant 0 : index
      %c0_11 = arith.constant 0 : index
      %13 = vector.load %arg7[%c0_10, %c0_11] : memref<2x128xf32, #tpu.memory_space<vmem>>, vector<2x128xf32>
      tpu.vector_store %arg7[%c0_10, %c0_11], %12 {strides = array<i32>} : memref<2x128xf32, #tpu.memory_space<vmem>>, vector<2x128xf32>,
    } else {
    }
    %c0 = arith.constant 0 : index
    %c0_1 = arith.constant 0 : index
    %3 = vector.load %arg7[%c0, %c0_1] : memref<2x128xf32, #tpu.memory_space<vmem>>, vector<2x128xf32>
    %c0_2 = arith.constant 0 : index
    %c0_3 = arith.constant 0 : index
    %4 = vector.load %arg1[%c0_2, %c0_3] : memref<2x128xbf16, #tpu.memory_space<vmem>>, vector<2x128xbf16>
    %c0_4 = arith.constant 0 : index
    %c0_5 = arith.constant 0 : index
    %5 = vector.load %arg2[%c0_4, %c0_5] : memref<128x128xbf16, #tpu.memory_space<vmem>>, vector<128x128xbf16>
    %cst = arith.constant dense<0.000000e+00> : vector<2x128xf32>
    %6 = tpu.matmul %4, %5, %cst {dimension_numbers = #tpu.dot_dimension_numbers<[1], [0], [0], [1], [0, 0, 1, 1], [], []>} : vector<2x128xbf16>, vector<128x128xbf16>, vector<2x128xf32> -> vector<2x128xf32>
    %7 = arith.addf %3, %6 : vector<2x128xf32>
    %c0_6 = arith.constant 0 : index
    %c0_7 = arith.constant 0 : index
    %8 = vector.load %arg7[%c0_6, %c0_7] : memref<2x128xf32, #tpu.memory_space<vmem>>, vector<2x128xf32>
    tpu.vector_store %arg7[%c0_6, %c0_7], %7 {strides = array<i32>} : memref<2x128xf32, #tpu.memory_space<vmem>>, vector<2x128xf32>,
    %c1_i32 = arith.constant 1 : i32
    %9 = arith.cmpi eq, %arg0, %c1_i32 : i32
    %10 = arith.extui %9 : i1 to i32
    %c0_i32_8 = arith.constant 0 : i32
    %11 = arith.cmpi ne, %10, %c0_i32_8 : i32
    scf.if %11 {
      %c0_9 = arith.constant 0 : index
      %c0_10 = arith.constant 0 : index
      %12 = vector.load %arg7[%c0_9, %c0_10] : memref<2x128xf32, #tpu.memory_space<vmem>>, vector<2x128xf32>
      %c0_11 = arith.constant 0 : index
      %c0_12 = arith.constant 0 : index
      %13 = vector.load %arg3[%c0_11, %c0_12] : memref<1x128xf32, #tpu.memory_space<vmem>>, vector<1x128xf32>
      %14 = vector.broadcast %13 : vector<1x128xf32> to vector<2x128xf32>
      %15 = arith.addf %12, %14 : vector<2x128xf32>
      %cst_13 = arith.constant 0.000000e+00 : f32
      %16 = vector.broadcast %cst_13 : f32 to vector<2x128xf32>
      %17 = arith.maximumf %15, %16 : vector<2x128xf32>
      %c0_14 = arith.constant 0 : index
      %c0_15 = arith.constant 0 : index
      %18 = vector.load %arg4[%c0_14, %c0_15] : memref<128x2xf32, #tpu.memory_space<vmem>>, vector<128x2xf32>
      %cst_16 = arith.constant dense<0.000000e+00> : vector<2x2xf32>
      %19 = tpu.matmul %17, %18, %cst_16 {dimension_numbers = #tpu.dot_dimension_numbers<[1], [0], [0], [1], [0, 0, 1, 1], [], []>} : vector<2x128xf32>, vector<128x2xf32>, vector<2x2xf32> -> vector<2x2xf32>
      %c0_17 = arith.constant 0 : index
      %c0_18 = arith.constant 0 : index
      %20 = vector.load %arg5[%c0_17, %c0_18] : memref<1x2xf32, #tpu.memory_space<vmem>>, vector<1x2xf32>
      %21 = vector.broadcast %20 : vector<1x2xf32> to vector<2x2xf32>
      %22 = arith.addf %19, %21 : vector<2x2xf32>
      %c0_19 = arith.constant 0 : index
      %c0_20 = arith.constant 0 : index
      %23 = vector.load %arg6[%c0_19, %c0_20] : memref<2x2xf32, #tpu.memory_space<vmem>>, vector<2x2xf32>
      tpu.vector_store %arg6[%c0_19, %c0_20], %22 {strides = array<i32>} : memref<2x2xf32, #tpu.memory_space<vmem>>, vector<2x2xf32>,
    } else {
    }
    return
  }
  func.func @transform_0(%arg0: i32) -> (i32, i32) {
    %c0_i32 = arith.constant 0 : i32
    %c0_i32_0 = arith.constant 0 : i32
    return %c0_i32, %arg0 : i32, i32
  }
  func.func @transform_1(%arg0: i32) -> (i32, i32) {
    %c0_i32 = arith.constant 0 : i32
    %c0_i32_0 = arith.constant 0 : i32
    return %arg0, %c0_i32 : i32, i32
  }
  func.func @transform_2(%arg0: i32) -> (i32, i32) {
    %c0_i32 = arith.constant 0 : i32
    %c0_i32_0 = arith.constant 0 : i32
    %c0_i32_1 = arith.constant 0 : i32
    return %c0_i32, %c0_i32_0 : i32, i32
  }
  func.func @transform_3(%arg0: i32) -> (i32, i32) {
    %c0_i32 = arith.constant 0 : i32
    %c0_i32_0 = arith.constant 0 : i32
    %c0_i32_1 = arith.constant 0 : i32
    return %c0_i32, %c0_i32_0 : i32, i32
  }
  func.func @transform_4(%arg0: i32) -> (i32, i32) {
    %c0_i32 = arith.constant 0 : i32
    %c0_i32_0 = arith.constant 0 : i32
    %c0_i32_1 = arith.constant 0 : i32
    return %c0_i32, %c0_i32_0 : i32, i32
  }
  func.func @transform_5(%arg0: i32) -> (i32, i32) {
    %c0_i32 = arith.constant 0 : i32
    %c0_i32_0 = arith.constant 0 : i32
    %c0_i32_1 = arith.constant 0 : i32
    return %c0_i32, %c0_i32_0 : i32, i32
  }
}

</mosaic_0001>

<bundles_post_ra>
// kernel: tile.49
= control target key start
LH: loop header
LB: loop body
LE: loop exit
PB: predicated region body
PF: predicated region fallthrough
CT: control target
= control target key end

     0   :  { %s133_s10 = smov 120   ;;  %s134_s11 = smov 104   ;;  %vm3_vm0 = vcmask 64512   ;;  %vm9_vm1 = vcmask 1048512   ;;  %vm15_vm2 = vcmask 982912   ;;  %vm21_vm3 = vcmask 917312   ;;  %s209_s0 = inlined_call_operand.vmem [shape: f32[16,8], index: 0, kind: input, shape index: {}]   ;;  %s210_s1 = inlined_call_operand.vmem [shape: f32[1,128], index: 1, kind: output, shape index: {}]  }
   0x1   :  { %v103_v0 = vld [vmem:[%s209_s0 + $0xf] sm:$0x1]   ;;  %v105_v1 = vld [vmem:[%s209_s0 + $0xd] sm:$0x1]   ;;  %v104_v2 = vld [vmem:[%s209_s0 + $0xe] sm:$0x1]  }
   0x2   :  { %7 = vrot.lane.b32.xlu0 %v103_v0, %s133_s10  ;;  %19 = vrot.lane.b32.xlu1 %v105_v1, %s134_s11  ;;  %v106_v3 = vld [vmem:[%s209_s0 + $0xc] sm:$0x1]   ;;  %s135_s16 = smov 112   ;;  %s136_s17 = smov 96   ;;  %v107_v4 = vld [vmem:[%s209_s0 + $0xb] sm:$0x1]  }
   0x3   :  { %v108_v5 = vld [vmem:[%s209_s0 + $0xa] sm:$0x1]   ;;  %v2_v6 = vld [vmem:[%s209_s0] sm:$0x1]   ;;  %s137_s24 = smov 88   ;;  %s138_s25 = smov 80  }
   0x4   :  { %4 = vst.msk [vmem:[#allocation0] sm:$0x1] %vm3_vm0, %v2_v6   ;;  %v109_v7 = vld [vmem:[%s209_s0 + $0x9] sm:$0x1]   ;;  %v110_v8 = vld [vmem:[%s209_s0 + $0x8] sm:$0x1]  }
   0x5   :  { %s139_s30 = smov 72   ;;  %s140_s2 = smov 64   ;;  %v111_v9 = vld [vmem:[%s209_s0 + $0x7] sm:$0x1]   ;;  %v112_v10 = vld [vmem:[%s209_s0 + $0x6] sm:$0x1]  }
   0x6   :  { %13 = vrot.lane.b32.xlu0 %v104_v2, %s135_s16  ;;  %25 = vrot.lane.b32.xlu1 %v106_v3, %s136_s17  ;;  %s141_s7 = smov 56   ;;  %s142_s8 = smov 48   ;;  %v113_v11 = vld [vmem:[%s209_s0 + $0x5] sm:$0x1]   ;;  %v114_v12 = vld [vmem:[%s209_s0 + $0x4] sm:$0x1]  }
   0x7   :  { %s143_s13 = smov 40   ;;  %s144_s14 = smov 32   ;;  %v115_v13 = vld [vmem:[%s209_s0 + $0x3] sm:$0x1]   ;;  %v116_v14 = vld [vmem:[%s209_s0 + $0x2] sm:$0x1]  }
   0x8   :  { %s145_s19 = smov 24   ;;  %s146_s20 = smov 16   ;;  %v117_v15 = vld [vmem:[%s209_s0 + $0x1] sm:$0x1]   ;;  %vm27_vm4 = vcmask 851712   ;;  %vm33_vm5 = vcmask 786112  }
   0x9   :  { %s147_s0 = smov 8   ;;  %vm39_vm6 = vcmask 720512   ;;  %vm45_vm7 = vcmask 654912   ;;  %vm51_vm8 = vcmask 589312   ;;  %vm57_vm9 = vcmask 523712  }
   0xa   :  { %31 = vrot.lane.b32.xlu0 %v107_v4, %s137_s24  ;;  %37 = vrot.lane.b32.xlu1 %v108_v5, %s138_s25  ;;  %vm63_vm10 = vcmask 458112   ;;  %vm69_vm11 = vcmask 392512   ;;  %vm75_vm12 = vcmask 326912   ;;  %vm81_vm13 = vcmask 261312  }
   0xb   :  { %vm87_vm14 = vcmask 195712   ;;  %vm93_vm15 = vcmask 130112  }
   0xe   :  { %43 = vrot.lane.b32.xlu0 %v109_v7, %s139_s30  ;;  %49 = vrot.lane.b32.xlu1 %v110_v8, %s140_s2 }
  0x12   :  { %55 = vrot.lane.b32.xlu0 %v111_v9, %s141_s7  ;;  %61 = vrot.lane.b32.xlu1 %v112_v10, %s142_s8 }
  0x16   :  { %67 = vrot.lane.b32.xlu0 %v113_v11, %s143_s13  ;;  %73 = vrot.lane.b32.xlu1 %v114_v12, %s144_s14 }
  0x1a   :  { %79 = vrot.lane.b32.xlu0 %v115_v13, %s145_s19  ;;  %85 = vrot.lane.b32.xlu1 %v116_v14, %s146_s20 }
  0x1e   :  { %91 = vrot.lane.b32.xlu0 %v117_v15, %s147_s0 }
  0x74   :  { %v8_v16 = vpop.permute.xlu0 %7   ;;  %v20_v17 = vpop.permute.xlu1 %19  }
  0x75   :  { %10 = vst.msk [vmem:[#allocation0] sm:$0x1] %vm9_vm1, %v8_v16  }
  0x78   :  { %v14_v18 = vpop.permute.xlu0 %13   ;;  %v26_v19 = vpop.permute.xlu1 %25  }
  0x79   :  { %16 = vst.msk [vmem:[#allocation0] sm:$0x1] %vm15_vm2, %v14_v18  }
  0x7a   :  { %22 = vst.msk [vmem:[#allocation0] sm:$0x1] %vm21_vm3, %v20_v17  }
  0x7b   :  { %28 = vst.msk [vmem:[#allocation0] sm:$0x1] %vm27_vm4, %v26_v19  }
  0x7c   :  { %v32_v20 = vpop.permute.xlu0 %31   ;;  %v38_v21 = vpop.permute.xlu1 %37  }
  0x7d   :  { %34 = vst.msk [vmem:[#allocation0] sm:$0x1] %vm33_vm5, %v32_v20  }
  0x7e   :  { %40 = vst.msk [vmem:[#allocation0] sm:$0x1] %vm39_vm6, %v38_v21  }
  0x80   :  { %v44_v22 = vpop.permute.xlu0 %43   ;;  %v50_v23 = vpop.permute.xlu1 %49  }
  0x81   :  { %46 = vst.msk [vmem:[#allocation0] sm:$0x1] %vm45_vm7, %v44_v22  }
  0x82   :  { %52 = vst.msk [vmem:[#allocation0] sm:$0x1] %vm51_vm8, %v50_v23  }
  0x84   :  { %v56_v24 = vpop.permute.xlu0 %55   ;;  %v62_v25 = vpop.permute.xlu1 %61  }
  0x85   :  { %58 = vst.msk [vmem:[#allocation0] sm:$0x1] %vm57_vm9, %v56_v24  }
  0x86   :  { %64 = vst.msk [vmem:[#allocation0] sm:$0x1] %vm63_vm10, %v62_v25  }
  0x88   :  { %v68_v26 = vpop.permute.xlu0 %67   ;;  %v74_v27 = vpop.permute.xlu1 %73  }
  0x89   :  { %70 = vst.msk [vmem:[#allocation0] sm:$0x1] %vm69_vm11, %v68_v26  }
  0x8a   :  { %76 = vst.msk [vmem:[#allocation0] sm:$0x1] %vm75_vm12, %v74_v27  }
  0x8c   :  { %v80_v28 = vpop.permute.xlu0 %79   ;;  %v86_v29 = vpop.permute.xlu1 %85  }
  0x8d   :  { %82 = vst.msk [vmem:[#allocation0] sm:$0x1] %vm81_vm13, %v80_v28  }
  0x8e   :  { %88 = vst.msk [vmem:[#allocation0] sm:$0x1] %vm87_vm14, %v86_v29  }
  0x90   :  { %v92_v30 = vpop.permute.xlu0 %91  }
  0x91   :  { %94 = vst.msk [vmem:[#allocation0] sm:$0x1] %vm93_vm15, %v92_v30  }
  0x98   :  { %v99_v31 = vld [vmem:[#allocation0] sm:$0x1] }
  0x99   :  { %102 = vst [vmem:[%s210_s1] sm:$0x1] %v99_v31 }

// kernel: cnn3d_forward.4
= control target key start
LH: loop header
LB: loop body
LE: loop exit
PB: predicated region body
PF: predicated region fallthrough
CT: control target
= control target key end

     0   :  { %s1945_s18 = smov 0   ;;  %s1947_s19 = smov 0   ;;  %s2237_s0 = inlined_call_operand.vmem [shape: bf16[2,18,18,18], index: 0, kind: input, shape index: {}]   ;;  %s2238_s1 = inlined_call_operand.vmem [shape: bf16[9,18,128], index: 1, kind: input, shape index: {}]   ;;  %s2239_s2 = inlined_call_operand.vmem [shape: f32[1,128], index: 2, kind: input, shape index: {}]   ;;  %s2240_s3 = inlined_call_operand.vmem [shape: f32[1,128], index: 3, kind: input, shape index: {}]   ;;  %s2241_s4 = inlined_call_operand.vmem [shape: f32[1,128], index: 4, kind: input, shape index: {}]   ;;  %s2242_s5 = inlined_call_operand.vmem [shape: f32[2,8,16,128], index: 5, kind: output, shape index: {}]  }
   0x1   :  { %s1949_s20 = smov 0   ;;  %s1951_s21 = smov 0  }
   0x2   :  { %s1953_s22 = smov 0  }
   0x3 LB: > { %s24_s23 = sadd.s32 1, %s1903_s20  ;;  %s27_s24 = sadd.s32 1, %s1907_s21  ;;  %s1911_s22 = sphi %s1953_s22, %s15_s22   ;;  %s1907_s21 = sphi %s1951_s21, %s2246_s21   ;;  %s1903_s20 = sphi %s1949_s20, %s2245_s20   ;;  %s1899_s19 = sphi %s1947_s19, %s2244_s19   ;;  %s1895_s18 = sphi %s1945_s18, %s2243_s18  }
   0x4   : > { %p25_p0 = scmp.ge.s32.totalorder %s24_s23, 8  ;;  %p1490_p1 = scmp.ge.s32.totalorder %s1911_s22, 1 }
   0x5   : > { %p201_p2 = scmp.lt.s32.totalorder %s1911_s22, 17 }
   0x6   : > { %s2248_s23 = smov (%p25_p0, %s24_s23), 0  ;;  %s2250_s24 = smov (!%p25_p0, %s27_s24), %s1907_s21 }
   0x7   : > { %p202_p3 = pnand %p1490_p1, %p201_p2  ;;  %p29_p4 = scmp.ge.s32.totalorder %s2250_s24, 2 }
   0x8   : > { %p233_p5 = scmp.lt.s32.totalorder (!%p202_p3), %s1899_s19, 1  ;;  %s1599_s8 = smul.u32 (!%p202_p3), 24, %s1895_s18 }
   0x9   : > { %s2252_s24 = smov (%p29_p4, %s2250_s24), 0  ;;  %205 = sbr.rel (%p202_p3) target bundleno = 304 (0x130), region = 40 }
   0xa   : > { %p240_p6 = scmp.lt.s32.totalorder (!%p202_p3), %s1895_s18, 7 }
   0xe   : > { %vm303_vm0 = vcmask 1040384   ;;  %v1913_v0 = vmov 0.0   ;;  %v1841_v1 = vld [vmem:[%s2238_s1 + $0x8] ss:$0 sps:$4 sm:$0x11]   ;;  %vm1914_vm1 = vmmov 0  }
   0xf   : > { %1662 = vmatprep.subr.bf16.mxu1 %v1913_v0  ;;  %1654 = vmatprep.subr.bf16.mxu0 %v1913_v0  ;;  %v1843_v2 = vld [vmem:[%s2238_s1 + $0x14] ss:$0 sps:$4 sm:$0x11]   ;;  %v360_v3 = vsel %vm303_vm0, %v1841_v1, 0  ;;  %v1842_v4 = vld [vmem:[%s2238_s1] sm:$0xff]   ;;  %s2254_s19 = smov (!%p233_p5, %s1899_s19), 1 }
  0x10   : > { %1666 = vmatprep.mubr.msk.bf16.mxu1 %vm1914_vm1, %v1913_v0  ;;  %1658 = vmatprep.mubr.msk.bf16.mxu0 %vm1914_vm1, %v1913_v0  ;;  %v305_v5 = vsel %vm303_vm0, %v1843_v2, 0  ;;  %v1846_v6 = vld [vmem:[%s2238_s1 + $0xc] sm:$0xff]   ;;  %s1798_s9 = smul.u32 216, %s2254_s19  ;;  %vm299_vm2 = vcmask 146432   ;;  %vm277_vm3 = vsmask.f32 7424 }
  0x11   : > { %1663 = vmatpush3.bf16.msra.mxu1 %v360_v3  ;;  %1655 = vmatpush3.bf16.msra.mxu0 %v305_v5  ;;  %v1849_v16 = vld [vmem:[%s2238_s1 + $0x20] ss:$0 sps:$4 sm:$0x11]   ;;  %v1850_v30 = vld [vmem:[%s2238_s1 + $0x18] sm:$0xff]   ;;  %vm519_vm4 = vcmask 1046528   ;;  %v1854_v45 = vld [vmem:[%s2238_s1 + $0x24] sm:$0xff]  }
  0x12   : > { %1664 = vmatprep.subr.bf16.mxu1 %v1913_v0  ;;  %1656 = vmatprep.subr.bf16.mxu0 %v1913_v0  ;;  %s237_s12 = scalar_lea.vmem %s2237_s0, %s1798_s9  ;;  %v536_v29 = vsel %vm303_vm0, %v1849_v16, 0  ;;  %v1853_v34 = vld [vmem:[%s2238_s1 + $0x2c] ss:$0 sps:$4 sm:$0x11]   ;;  %v1857_v56 = vld [vmem:[%s2238_s1 + $0x30] sm:$0xff]   ;;  %v1861_v1 = vld [vmem:[%s2238_s1 + $0x3c] sm:$0xff]  }
  0x13   : > { %s2011_s13 = scalar_lea.vmem %s237_s12, %s1599_s8  ;;  %v653_v43 = vsel %vm303_vm0, %v1853_v34, 0  ;;  %v1856_v49 = vld [vmem:[%s2238_s1 + $0x38] ss:$0 sps:$4 sm:$0x11]   ;;  %s2256_s18 = smov (!%p240_p6, %s1895_s18), 7 }
  0x14   : > { %v255_v7 = vld [vmem:[%s2011_s13] sm:$0xf]  ;;  %v256_v8 = vld [vmem:[%s2011_s13 + $0x4] sm:$0xf]  ;;  %v1500_v11 = vld [vmem:[%s2011_s13 + $0xc] sm:$0xf] }
  0x15   : > { %1665 = vmatpush3.bf16.msra.mxu1 %v1842_v4  ;;  %1657 = vmatpush3.bf16.msra.mxu0 %v1846_v6  ;;  %v1506_v9 = vcombine.low %v255_v7, %v256_v8  ;;  %v2017_v10 = vld [vmem:[%s2011_s13 + $0x8] ss:$0 sps:$4 sm:$0x11]   ;;  %v1501_v12 = vld [vmem:[%s2011_s13 + $0x10] sm:$0xf]  ;;  %v2085_v51 = vld [vmem:[%s2011_s13 + $0x18] sm:$0xff]  }
  0x16   : > { %1678 = vmatprep.subr.bf16.mxu1 %v1913_v0  ;;  %1670 = vmatprep.subr.bf16.mxu0 %v1913_v0  ;;  %v286_v15 = vshll.u32 %v2017_v10, 16  ;;  %v2028_v17 = vcombine.low %v1500_v11, %v1501_v12  ;;  %v1851_v18 = vld [vmem:[%s2011_s13 + $0x14] ss:$0 sps:$4 sm:$0x11]   ;;  %v1521_v21 = vld [vmem:[%s2011_s13 + $0xc] sm:$0xe] }
  0x17   : > { %v279_v13 = vshrl.u32 %v1506_v9, 16  ;;  %v281_v14 = vshll.u32 %v1506_v9, 16  ;;  %v419_v25 = vshll.u32 %v1851_v18, 16  ;;  %v1526_v27 = vcombine.low %v1521_v21, %v1501_v12  ;;  %v514_v31 = vld [vmem:[%s2011_s13] sm:$0xe]  ;;  %s1492_s8 = sshll.u32 %s2256_s18, 1 }
  0x18   : > { %1667 = vmatmul.mubr.msk.bf16.vlgmr.msra.gmra.mxu1 %vm299_vm2, %v1506_v9  ;;  %v288_v20 = vrot.slane %v286_v15, 1  ;;  %v414_v22 = vshll.u32 %v2028_v17, 16  ;;  %v412_v24 = vshrl.u32 %v2028_v17, 16  ;;  %v585_v36 = vrot.slane %v1851_v18, 1  ;;  %v1543_v37 = vld [vmem:[%s2011_s13 + $0x18] sm:$0xf] }
  0x19   : > { %1679 = vmatpush3.bf16.msra.mxu1 %v360_v3  ;;  %1682 = vmatprep.mubr.msk.bf16.mxu1 %vm1914_vm1, %v1913_v0  ;;  %v283_v19 = vrot.slane %v281_v14, 1  ;;  %v421_v33 = vrot.slane %v419_v25, 1  ;;  %v584_v35 = vrot.slane %v1526_v27, 1  ;;  %v1544_v38 = vld [vmem:[%s2011_s13 + $0x1c] sm:$0xf]  ;;  %v1522_v39 = vcombine.low %v514_v31, %v256_v8  ;;  %v1865_v14 = vld [vmem:[%s2011_s13 + $0x24] sm:$0xff]  }
  0x1a   : > { %1680 = vmatprep.subr.bf16.mxu1 %v1913_v0  ;;  %v416_v26 = vrot.slane %v414_v22, 1  ;;  %v1549_v42 = vcombine.low %v1543_v37, %v1544_v38  ;;  %v521_v46 = vrot.slane %v2017_v10, 1  ;;  %v1859_v47 = vld [vmem:[%s2011_s13 + $0x20] ss:$0 sps:$4 sm:$0x11]   ;;  %v766_v55 = vsel %vm303_vm0, %v1856_v49, 0 }
  0x1b   : > { %v284_v23 = vor.u32 %v283_v19, %v279_v13  ;;  %v2061_v41 = vsel %vm519_vm4, %v584_v35, %v585_v36  ;;  %v520_v44 = vrot.slane %v1522_v39, 1  ;;  %v827_v54 = vshll.u32 %v1859_v47, 16  ;;  %v1860_v59 = vld [vmem:[%s2238_s1 + $0x44] ss:$0 sps:$4 sm:$0x11]   ;;  %v1864_v10 = vld [vmem:[%s2238_s1 + $0x48] sm:$0xff]  }
  0x1c   : > { %v417_v32 = vor.u32 %v416_v26, %v412_v24  ;;  %v822_v48 = vshll.u32 %v1549_v42, 16  ;;  %v820_v52 = vshrl.u32 %v1549_v42, 16  ;;  %v1555_v60 = vld [vmem:[%s2011_s13 + $0x18] sm:$0xe]  ;;  %v892_v63 = vsel %vm303_vm0, %v1860_v59, 0  ;;  %v1871_v27 = vld [vmem:[%s2238_s1 + $0x60] sm:$0xff]  }
  0x1d   : > { %1681 = vmatpush3.bf16.msra.mxu1 %v1842_v4  ;;  %v289_v28 = vsel %vm277_vm3, %v284_v23, %v288_v20  ;;  %v522_v50 = vsel %vm519_vm4, %v520_v44, %v521_v46  ;;  %v829_v58 = vrot.slane %v827_v54, 1  ;;  %v1559_v62 = vcombine.low %v1555_v60, %v1544_v38  ;;  %v1863_v4 = vld [vmem:[%s2238_s1 + $0x50] ss:$0 sps:$4 sm:$0x11]   ;;  %v1867_v19 = vld [vmem:[%s2238_s1 + $0x54] sm:$0xff]   ;;  %s1493_s9 = sshll.u32 %s2254_s19, 4 }
  0x1e   : > { %1694 = vmatprep.subr.bf16.mxu1 %v1913_v0  ;;  %1659 = vmatmul.mubr.msk.bf16.vlgmr.msra.gmra.mxu0 %vm299_vm2, %v289_v28  ;;  %v2057_v40 = vsel %vm277_vm3, %v417_v32, %v421_v33  ;;  %v824_v53 = vrot.slane %v822_v48, 1  ;;  %v941_v3 = vrot.slane %v1859_v47, 1  ;;  %v1009_v9 = vsel %vm303_vm0, %v1863_v4, 0  ;;  %v1869_v11 = vld [vmem:[%s2011_s13 + $0x2c] ss:$0 sps:$4 sm:$0x11]   ;;  %s244_s12 = sadd.s32 %s1493_s9, %s1492_s8 }
  0x1f   : > { %1671 = vmatpush3.bf16.msra.mxu0 %v305_v5  ;;  %1674 = vmatprep.mubr.msk.bf16.mxu0 %vm1914_vm1, %v1913_v0  ;;  %v940_v2 = vrot.slane %v1559_v62, 1  ;;  %v1576_v5 = vld [vmem:[%s2011_s13 + $0x24] sm:$0xf]  ;;  %v1866_v13 = vld [vmem:[%s2238_s1 + $0x5c] ss:$0 sps:$4 sm:$0x11]  }
  0x20   : > { %1683 = vmatmul.mubr.msk.bf16.vlgmr.msra.gmra.mxu1 %vm299_vm2, %v2028_v17  ;;  %1672 = vmatprep.subr.bf16.mxu0 %v1913_v0  ;;  %v825_v57 = vor.u32 %v824_v53, %v820_v52  ;;  %v1122_v18 = vsel %vm303_vm0, %v1866_v13, 0  ;;  %v1870_v22 = vld [vmem:[%s2238_s1 + $0x68] ss:$0 sps:$4 sm:$0x11]   ;;  %v1588_v23 = vld [vmem:[%s2011_s13 + $0x24] sm:$0xe] }
  0x21   : > { %1695 = vmatpush3.bf16.msra.mxu1 %v536_v29  ;;  %1698 = vmatprep.mubr.msk.bf16.mxu1 %vm1914_vm1, %v1913_v0  ;;  %v2132_v7 = vsel %vm519_vm4, %v940_v2, %v941_v3  ;;  %v1248_v26 = vsel %vm303_vm0, %v1870_v22, 0  ;;  %s1494_s18 = sshll.u32 %s244_s12, 3 }
  0x22   : > { %1696 = vmatprep.subr.bf16.mxu1 %v1913_v0  ;;  %v2108_v61 = vsel %vm277_vm3, %v825_v57, %v829_v58  ;;  %s246_s17 = scalar_lea.vmem %s2242_s5, %s1494_s18 }
  0x23   : > { %1673 = vmatpush3.bf16.msra.mxu0 %v1846_v6  ;;  %v1577_v6 = vld [vmem:[%s2011_s13 + $0x28] sm:$0xf] }
  0x24   : > { %1686 = vmatprep.subr.bf16.mxu0 %v1913_v0  ;;  %v1582_v8 = vcombine.low %v1576_v5, %v1577_v6  ;;  %v1592_v25 = vcombine.low %v1588_v23, %v1577_v6 }
  0x25   : > { %1697 = vmatpush3.bf16.msra.mxu1 %v1850_v30 }
  0x26   : > { %1710 = vmatprep.subr.bf16.mxu1 %v1913_v0  ;;  %1675 = vmatmul.mubr.msk.bf16.vlgmr.msra.gmra.mxu0 %vm299_vm2, %v2057_v40  ;;  %v1178_v12 = vshll.u32 %v1582_v8, 16  ;;  %v1176_v15 = vshrl.u32 %v1582_v8, 16  ;;  %v1296_v28 = vrot.slane %v1592_v25, 1 }
  0x27   : > { %1687 = vmatpush3.bf16.msra.mxu0 %v536_v29  ;;  %1690 = vmatprep.mubr.msk.bf16.mxu0 %vm1914_vm1, %v1913_v0  ;;  %v1297_v29 = vrot.slane %v1869_v11, 1 }
  0x28   : > { %1699 = vmatmul.mubr.msk.bf16.vlgmr.msra.gmra.mxu1 %vm299_vm2, %v2061_v41  ;;  %1688 = vmatprep.subr.bf16.mxu0 %v1913_v0  ;;  %v1180_v16 = vrot.slane %v1178_v12, 1 }
  0x29   : > { %1711 = vmatpush3.bf16.msra.mxu1 %v653_v43  ;;  %1714 = vmatprep.mubr.msk.bf16.mxu1 %vm1914_vm1, %v1913_v0 }
  0x2a   : > { %1712 = vmatprep.subr.bf16.mxu1 %v1913_v0  ;;  %v1181_v20 = vor.u32 %v1180_v16, %v1176_v15 }
  0x2b   : > { %1689 = vmatpush3.bf16.msra.mxu0 %v1850_v30  ;;  %v1298_v30 = vsel %vm519_vm4, %v1296_v28, %v1297_v29 }
  0x2c   : > { %1702 = vmatprep.subr.bf16.mxu0 %v1913_v0 }
  0x2d   : > { %1713 = vmatpush3.bf16.msra.mxu1 %v1854_v45 }
  0x2e   : > { %1726 = vmatprep.subr.bf16.mxu1 %v1913_v0  ;;  %1691 = vmatmul.mubr.msk.bf16.vlgmr.msra.gmra.mxu0 %vm299_vm2, %v522_v50 }
  0x2f   : > { %1703 = vmatpush3.bf16.msra.mxu0 %v653_v43  ;;  %1706 = vmatprep.mubr.msk.bf16.mxu0 %vm1914_vm1, %v1913_v0 }
  0x30   : > { %1715 = vmatmul.mubr.msk.bf16.vlgmr.msra.gmra.mxu1 %vm299_vm2, %v2085_v51  ;;  %1704 = vmatprep.subr.bf16.mxu0 %v1913_v0 }
  0x31   : > { %1727 = vmatpush3.bf16.msra.mxu1 %v766_v55  ;;  %1730 = vmatprep.mubr.msk.bf16.mxu1 %vm1914_vm1, %v1913_v0 }
  0x32   : > { %1728 = vmatprep.subr.bf16.mxu1 %v1913_v0 }
  0x33   : > { %1705 = vmatpush3.bf16.msra.mxu0 %v1854_v45 }
  0x34   : > { %1718 = vmatprep.subr.bf16.mxu0 %v1913_v0 }
  0x35   : > { %1729 = vmatpush3.bf16.msra.mxu1 %v1857_v56 }
  0x36   : > { %1742 = vmatprep.subr.bf16.mxu1 %v1913_v0  ;;  %1707 = vmatmul.mubr.msk.bf16.vlgmr.msra.gmra.mxu0 %vm299_vm2, %v2028_v17  ;;  %v1183_v17 = vshll.u32 %v1869_v11, 16 }
  0x37   : > { %1719 = vmatpush3.bf16.msra.mxu0 %v766_v55  ;;  %1722 = vmatprep.mubr.msk.bf16.mxu0 %vm1914_vm1, %v1913_v0 }
  0x38   : > { %1731 = vmatmul.mubr.msk.bf16.vlgmr.msra.gmra.mxu1 %vm299_vm2, %v2108_v61  ;;  %1720 = vmatprep.subr.bf16.mxu0 %v1913_v0  ;;  %v1185_v21 = vrot.slane %v1183_v17, 1 }
  0x39   : > { %1743 = vmatpush3.bf16.msra.mxu1 %v892_v63  ;;  %1746 = vmatprep.mubr.msk.bf16.mxu1 %vm1914_vm1, %v1913_v0 }
  0x3a   : > { %1744 = vmatprep.subr.bf16.mxu1 %v1913_v0  ;;  %v1186_v24 = vsel %vm277_vm3, %v1181_v20, %v1185_v21 }
  0x3b   : > { %1721 = vmatpush3.bf16.msra.mxu0 %v1857_v56 }
  0x3c   : > { %1734 = vmatprep.subr.bf16.mxu0 %v1913_v0 }
  0x3d   : > { %1745 = vmatpush3.bf16.msra.mxu1 %v1861_v1 }
  0x3e   : > { %1758 = vmatprep.subr.bf16.mxu1 %v1913_v0  ;;  %1723 = vmatmul.mubr.msk.bf16.vlgmr.msra.gmra.mxu0 %vm299_vm2, %v2057_v40 }
  0x3f   : > { %1735 = vmatpush3.bf16.msra.mxu0 %v892_v63  ;;  %1738 = vmatprep.mubr.msk.bf16.mxu0 %vm1914_vm1, %v1913_v0 }
  0x40   : > { %1747 = vmatmul.mubr.msk.bf16.vlgmr.msra.gmra.mxu1 %vm299_vm2, %v2132_v7  ;;  %1736 = vmatprep.subr.bf16.mxu0 %v1913_v0 }
  0x41   : > { %1759 = vmatpush3.bf16.msra.mxu1 %v1009_v9  ;;  %1762 = vmatprep.mubr.msk.bf16.mxu1 %vm1914_vm1, %v1913_v0 }
  0x42   : > { %1760 = vmatprep.subr.bf16.mxu1 %v1913_v0 }
  0x43   : > { %1737 = vmatpush3.bf16.msra.mxu0 %v1861_v1 }
  0x44   : > { %1750 = vmatprep.subr.bf16.mxu0 %v1913_v0 }
  0x45   : > { %1761 = vmatpush3.bf16.msra.mxu1 %v1864_v10 }
  0x46   : > { %1774 = vmatprep.subr.bf16.mxu1 %v1913_v0  ;;  %1739 = vmatmul.mubr.msk.bf16.vlgmr.msra.gmra.mxu0 %vm299_vm2, %v2061_v41 }
  0x47   : > { %1751 = vmatpush3.bf16.msra.mxu0 %v1009_v9  ;;  %1754 = vmatprep.mubr.msk.bf16.mxu0 %vm1914_vm1, %v1913_v0 }
  0x48   : > { %1763 = vmatmul.mubr.msk.bf16.vlgmr.msra.gmra.mxu1 %vm299_vm2, %v1865_v14  ;;  %1752 = vmatprep.subr.bf16.mxu0 %v1913_v0 }
  0x49   : > { %1775 = vmatpush3.bf16.msra.mxu1 %v1122_v18  ;;  %1778 = vmatprep.mubr.msk.bf16.mxu1 %vm1914_vm1, %v1913_v0 }
  0x4a   : > { %1776 = vmatprep.subr.bf16.mxu1 %v1913_v0 }
  0x4b   : > { %1753 = vmatpush3.bf16.msra.mxu0 %v1864_v10 }
  0x4c   : > { %1766 = vmatprep.subr.bf16.mxu0 %v1913_v0 }
  0x4d   : > { %1777 = vmatpush3.bf16.msra.mxu1 %v1867_v19 }
  0x4e   : > { %1790 = vmatprep.subr.bf16.mxu1 %v1913_v0  ;;  %1755 = vmatmul.mubr.msk.bf16.vlgmr.msra.gmra.mxu0 %vm299_vm2, %v2085_v51 }
  0x4f   : > { %1767 = vmatpush3.bf16.msra.mxu0 %v1122_v18  ;;  %1770 = vmatprep.mubr.msk.bf16.mxu0 %vm1914_vm1, %v1913_v0 }
  0x50   : > { %1779 = vmatmul.mubr.msk.bf16.vlgmr.msra.gmra.mxu1 %vm299_vm2, %v1186_v24  ;;  %1768 = vmatprep.subr.bf16.mxu0 %v1913_v0 }
  0x51   : > { %1791 = vmatpush3.bf16.msra.mxu1 %v1248_v26  ;;  %1794 = vmatprep.mubr.msk.bf16.mxu1 %vm1914_vm1, %v1913_v0 }
  0x52   : > { %1792 = vmatprep.subr.bf16.mxu1 %v1913_v0 }
  0x53   : > { %1769 = vmatpush3.bf16.msra.mxu0 %v1867_v19 }
  0x54   : > { %1782 = vmatprep.subr.bf16.mxu0 %v1913_v0 }
  0x55   : > { %1793 = vmatpush3.bf16.msra.mxu1 %v1871_v27 }
  0x56   : > { %1771 = vmatmul.mubr.msk.bf16.vlgmr.msra.gmra.mxu0 %vm299_vm2, %v2108_v61 }
  0x57   : > { %1783 = vmatpush3.bf16.msra.mxu0 %v1248_v26  ;;  %1786 = vmatprep.mubr.msk.bf16.mxu0 %vm1914_vm1, %v1913_v0 }
  0x58   : > { %1795 = vmatmul.mubr.msk.bf16.vlgmr.msra.gmra.mxu1 %vm299_vm2, %v1298_v30  ;;  %1784 = vmatprep.subr.bf16.mxu0 %v1913_v0 }
  0x5b   : > { %1785 = vmatpush3.bf16.msra.mxu0 %v1871_v27 }
  0x5e   : > { %1787 = vmatmul.mubr.msk.bf16.vlgmr.msra.gmra.mxu0 %vm299_vm2, %v2132_v7 }
  0xd8   : > { %v396_v31 = vpop.f32.mrf.mxu1 }
  0xda   : > { %v1668_v32 = vpop.f32.mrf.mxu1 }
  0xdc   : > { %v2199_v33 = vpop.f32.mrf.mxu1 }
  0xde   : > { %v1669_v34 = vpop.f32.mrf.mxu1  ;;  %v341_v35 = vpop.f32.mrf.mxu0 }
  0xdf   : > { %v397_v28 = vadd.f32 %v396_v31, %v341_v35 }
  0xe0   : > { %v503_v36 = vpop.f32.mrf.mxu1  ;;  %v1660_v37 = vpop.f32.mrf.mxu0 }
  0xe2   : > { %v1684_v38 = vpop.f32.mrf.mxu1  ;;  %v2201_v39 = vpop.f32.mrf.mxu0 }
  0xe4   : > { %v506_v40 = vpop.f32.mrf.mxu1  ;;  %v1661_v41 = vpop.f32.mrf.mxu0 }
  0xe6   : > { %v1685_v42 = vpop.f32.mrf.mxu1  ;;  %v460_v43 = vpop.f32.mrf.mxu0 }
  0xe7   : > { %v504_v13 = vadd.f32 %v503_v36, %v460_v43 }
  0xe8   : > { %v624_v0 = vpop.f32.mrf.mxu1  ;;  %v1676_v44 = vpop.f32.mrf.mxu0 }
  0xe9   : > { %v631_v18 = vadd.f32 %v624_v0, %v504_v13 }
  0xea   : > { %v1700_v45 = vpop.f32.mrf.mxu1  ;;  %v463_v46 = vpop.f32.mrf.mxu0 }
  0xeb   : > { %v507_v19 = vadd.f32 %v506_v40, %v463_v46  ;;  %v400_v40 = vadd.f32 %v2199_v33, %v2201_v39 }
  0xec   : > { %v627_v47 = vpop.f32.mrf.mxu1  ;;  %v1677_v48 = vpop.f32.mrf.mxu0 }
  0xed   : > { %v632_v25 = vadd.f32 %v627_v47, %v507_v19 }
  0xee   : > { %v1701_v49 = vpop.f32.mrf.mxu1  ;;  %v572_v50 = vpop.f32.mrf.mxu0 }
  0xef   : > { %v579_v36 = vadd.f32 %v572_v50, %v397_v28  ;;  %v1594_v50 = vld [vmem:[%s2239_s2] ss:$0 sm:$0xff] }
  0xf0   : > { %v740_v51 = vpop.f32.mrf.mxu1  ;;  %v1692_v52 = vpop.f32.mrf.mxu0 }
  0xf1   : > { %v747_v22 = vadd.f32 %v740_v51, %v631_v18 }
  0xf2   : > { %v1716_v53 = vpop.f32.mrf.mxu1  ;;  %v575_v54 = vpop.f32.mrf.mxu0 }
  0xf3   : > { %v580_v47 = vadd.f32 %v575_v54, %v400_v40 }
  0xf4   : > { %v743_v55 = vpop.f32.mrf.mxu1  ;;  %v1693_v56 = vpop.f32.mrf.mxu0 }
  0xf5   : > { %v748_v30 = vadd.f32 %v743_v55, %v632_v25 }
  0xf6   : > { %v1717_v57 = vpop.f32.mrf.mxu1  ;;  %v689_v58 = vpop.f32.mrf.mxu0 }
  0xf7   : > { %v696_v43 = vadd.f32 %v689_v58, %v579_v36 }
  0xf8   : > { %v868_v59 = vpop.f32.mrf.mxu1  ;;  %v1708_v60 = vpop.f32.mrf.mxu0 }
  0xf9   : > { %v875_v26 = vadd.f32 %v868_v59, %v747_v22 }
  0xfa   : > { %v1732_v61 = vpop.f32.mrf.mxu1  ;;  %v692_v62 = vpop.f32.mrf.mxu0 }
  0xfb   : > { %v697_v52 = vadd.f32 %v692_v62, %v580_v47 }
  0xfc   : > { %v871_v63 = vpop.f32.mrf.mxu1  ;;  %v1709_v1 = vpop.f32.mrf.mxu0 }
  0xfd   : > { %v876_v38 = vadd.f32 %v871_v63, %v748_v30 }
  0xfe   : > { %v1733_v2 = vpop.f32.mrf.mxu1  ;;  %v802_v3 = vpop.f32.mrf.mxu0 }
  0xff   : > { %v809_v31 = vadd.f32 %v802_v3, %v696_v43 }
 0x100   : > { %v980_v4 = vpop.f32.mrf.mxu1  ;;  %v1724_v5 = vpop.f32.mrf.mxu0 }
 0x101   : > { %v987_v32 = vadd.f32 %v980_v4, %v875_v26 }
 0x102   : > { %v1748_v6 = vpop.f32.mrf.mxu1  ;;  %v805_v7 = vpop.f32.mrf.mxu0 }
 0x103   : > { %v810_v56 = vadd.f32 %v805_v7, %v697_v52  ;;  %v1595_v6 = vld [vmem:[%s2240_s3] ss:$0 sm:$0xff] }
 0x104   : > { %v983_v8 = vpop.f32.mrf.mxu1  ;;  %v1725_v9 = vpop.f32.mrf.mxu0 }
 0x105   : > { %v988_v44 = vadd.f32 %v983_v8, %v876_v38 }
 0x106   : > { %v1749_v10 = vpop.f32.mrf.mxu1  ;;  %v928_v11 = vpop.f32.mrf.mxu0 }
 0x107   : > { %v935_v33 = vadd.f32 %v928_v11, %v809_v31 }
 0x108   : > { %v1096_v12 = vpop.f32.mrf.mxu1  ;;  %v1740_v14 = vpop.f32.mrf.mxu0 }
 0x109   : > { %v1103_v41 = vadd.f32 %v1096_v12, %v987_v32 }
 0x10a   : > { %v1764_v15 = vpop.f32.mrf.mxu1  ;;  %v931_v16 = vpop.f32.mrf.mxu0 }
 0x10b   : > { %v936_v61 = vadd.f32 %v931_v16, %v810_v56  ;;  %v1596_v15 = vld [vmem:[%s2241_s4] ss:$0 sm:$0xff] }
 0x10c   : > { %v1099_v17 = vpop.f32.mrf.mxu1  ;;  %v1741_v20 = vpop.f32.mrf.mxu0 }
 0x10d   : > { %v1104_v48 = vadd.f32 %v1099_v17, %v988_v44 }
 0x10e   : > { %v1765_v21 = vpop.f32.mrf.mxu1  ;;  %v1045_v23 = vpop.f32.mrf.mxu0 }
 0x10f   : > { %v1052_v54 = vadd.f32 %v1045_v23, %v935_v33 }
 0x110   : > { %v1224_v24 = vpop.f32.mrf.mxu1  ;;  %v1756_v27 = vpop.f32.mrf.mxu0 }
 0x111   : > { %v1231_v45 = vadd.f32 %v1224_v24, %v1103_v41 }
 0x112   : > { %v1780_v29 = vpop.f32.mrf.mxu1  ;;  %v1048_v34 = vpop.f32.mrf.mxu0 }
 0x113   : > { %v1053_v3 = vadd.f32 %v1048_v34, %v936_v61 }
 0x114   : > { %v1227_v37 = vpop.f32.mrf.mxu1  ;;  %v1757_v42 = vpop.f32.mrf.mxu0 }
 0x115   : > { %v1232_v53 = vadd.f32 %v1227_v37, %v1104_v48 }
 0x116   : > { %v1781_v0 = vpop.f32.mrf.mxu1  ;;  %v1158_v46 = vpop.f32.mrf.mxu0 }
 0x117   : > { %v1165_v63 = vadd.f32 %v1158_v46, %v1052_v54 }
 0x118   : > { %v1336_v35 = vpop.f32.mrf.mxu1  ;;  %v1772_v51 = vpop.f32.mrf.mxu0 }
 0x119   : > { %v1343_v49 = vadd.f32 %v1336_v35, %v1231_v45 }
 0x11a   : > { %v1796_v39 = vpop.f32.mrf.mxu1  ;;  %v1161_v55 = vpop.f32.mrf.mxu0 }
 0x11b   : > { %v1374_v57 = vadd.f32 %v1594_v50, %v1343_v49  ;;  %v1166_v8 = vadd.f32 %v1161_v55, %v1053_v3 }
 0x11c   : > { %v1339_v58 = vpop.f32.mrf.mxu1  ;;  %v1773_v60 = vpop.f32.mrf.mxu0 }
 0x11d   : > { %v1344_v59 = vadd.f32 %v1339_v58, %v1232_v53  ;;  %v1376_v4 = vmax.f32 %v1374_v57, 0.0 }
 0x11e   : > { %v1797_v1 = vpop.f32.mrf.mxu1  ;;  %v1284_v2 = vpop.f32.mrf.mxu0 }
 0x11f   : > { %v1375_v62 = vadd.f32 %v1594_v50, %v1344_v59  ;;  %v1291_v5 = vadd.f32 %v1284_v2, %v1165_v63  ;;  %v1378_v11 = vmul.f32 %v1595_v6, %v1376_v4 }
 0x120   : > { %v1788_v7 = vpop.f32.mrf.mxu0 }
 0x121   : > { %v1354_v9 = vadd.f32 %v1594_v50, %v1291_v5  ;;  %v1377_v12 = vmax.f32 %v1375_v62, 0.0  ;;  %v1380_v19 = vadd.f32 %v1596_v15, %v1378_v11 }
 0x122   : > { %v1287_v10 = vpop.f32.mrf.mxu0 }
 0x123   : > { %v1356_v13 = vmax.f32 %v1354_v9, 0.0  ;;  %v1292_v14 = vadd.f32 %v1287_v10, %v1166_v8  ;;  %v1379_v20 = vmul.f32 %v1595_v6, %v1377_v12 }
 0x124   : > { %v1789_v16 = vpop.f32.mrf.mxu0 }
 0x125   : > { %v1364_v17 = vmul.f32 %v1595_v6, %v1356_v13  ;;  %v1355_v18 = vadd.f32 %v1594_v50, %v1292_v14  ;;  %v1381_v25 = vadd.f32 %v1596_v15, %v1379_v20 }
 0x127   : > { %v1372_v21 = vadd.f32 %v1596_v15, %v1364_v17  ;;  %v1357_v22 = vmax.f32 %v1355_v18, 0.0 }
 0x129   : > { %v1382_v23 = vmax.f32 %v1372_v21, %v1380_v19  ;;  %v1365_v24 = vmul.f32 %v1595_v6, %v1357_v22 }
 0x12b   : > { %1384 = vst [vmem:[%s246_s17] sm:$0xff] %v1382_v23  ;;  %v1373_v26 = vadd.f32 %v1596_v15, %v1365_v24 }
 0x12d   : > { %v1383_v27 = vmax.f32 %v1373_v26, %v1381_v25 }
 0x12f   : > { %1385 = vst [vmem:[%s246_s17 + $0x8] sm:$0xff] %v1383_v27 }
 0x130 PF: > { %s15_s22 = sadd.s32 1, %s1911_s22   ;;  %s2243_s18 = smov %s1903_s20 }
 0x131   : > { %p12_p7 = scmp.ge.s32.totalorder %s15_s22, 18   ;;  %s2244_s19 = smov %s1907_s21 }
 0x132   : > { %s2245_s20 = smov %s2248_s23  ;;  %s2246_s21 = smov %s2252_s24 }
 0x133   :  { %14 = sbr.rel (!%p12_p7) target bundleno = 3 (0x3), region = 82 }

// kernel: tile.63
= control target key start
LH: loop header
LB: loop body
LE: loop exit
PB: predicated region body
PF: predicated region fallthrough
CT: control target
= control target key end

     0   :  { %s22_s0 = inlined_call_operand.vmem [shape: f32[16], index: 0, kind: input, shape index: {}]   ;;  %s23_s1 = inlined_call_operand.vmem [shape: f32[8,16], index: 1, kind: output, shape index: {}]  }
   0x1   :  { %v4_v0 = vld [vmem:[%s22_s0] ss:$0 sm:$0xff] }
   0x2   :  { %5 = vst [vmem:[%s23_s1] sm:$0xff] %v4_v0 }

// kernel: tile.64
= control target key start
LH: loop header
LB: loop body
LE: loop exit
PB: predicated region body
PF: predicated region fallthrough
CT: control target
= control target key end

     0   :  { %s69_s10 = smov 112   ;;  %s70_s11 = smov 80   ;;  %vm3_vm0 = vcmask 130048   ;;  %vm9_vm1 = vcmask 1048448   ;;  %vm15_vm2 = vcmask 917248   ;;  %vm21_vm3 = vcmask 786048   ;;  %s113_s0 = inlined_call_operand.vmem [shape: f32[8,16], index: 0, kind: input, shape index: {}]   ;;  %s114_s1 = inlined_call_operand.vmem [shape: f32[1,128], index: 1, kind: output, shape index: {}]  }
   0x1   :  { %v55_v0 = vld [vmem:[%s113_s0 + $0x7] sm:$0x1]   ;;  %v57_v1 = vld [vmem:[%s113_s0 + $0x5] sm:$0x1]   ;;  %v56_v2 = vld [vmem:[%s113_s0 + $0x6] sm:$0x1]  }
   0x2   :  { %7 = vrot.lane.b32.xlu0 %v55_v0, %s69_s10  ;;  %19 = vrot.lane.b32.xlu1 %v57_v1, %s70_s11  ;;  %v58_v3 = vld [vmem:[%s113_s0 + $0x4] sm:$0x1]   ;;  %v2_v4 = vld [vmem:[%s113_s0] sm:$0x1]   ;;  %s71_s18 = smov 96   ;;  %s72_s19 = smov 64  }
   0x3   :  { %4 = vst.msk [vmem:[#allocation0] sm:$0x1] %vm3_vm0, %v2_v4   ;;  %v59_v5 = vld [vmem:[%s113_s0 + $0x3] sm:$0x1]   ;;  %v60_v6 = vld [vmem:[%s113_s0 + $0x2] sm:$0x1]  }
   0x4   :  { %s73_s24 = smov 48   ;;  %s74_s25 = smov 32   ;;  %v61_v7 = vld [vmem:[%s113_s0 + $0x1] sm:$0x1]   ;;  %vm27_vm4 = vcmask 654848   ;;  %vm33_vm5 = vcmask 523648  }
   0x5   :  { %s75_s0 = smov 16   ;;  %vm39_vm6 = vcmask 392448   ;;  %vm45_vm7 = vcmask 261248  }
   0x6   :  { %13 = vrot.lane.b32.xlu0 %v56_v2, %s71_s18  ;;  %25 = vrot.lane.b32.xlu1 %v58_v3, %s72_s19 }
   0xa   :  { %31 = vrot.lane.b32.xlu0 %v59_v5, %s73_s24  ;;  %37 = vrot.lane.b32.xlu1 %v60_v6, %s74_s25 }
   0xe   :  { %43 = vrot.lane.b32.xlu0 %v61_v7, %s75_s0 }
  0x74   :  { %v8_v8 = vpop.permute.xlu0 %7   ;;  %v20_v9 = vpop.permute.xlu1 %19  }
  0x75   :  { %10 = vst.msk [vmem:[#allocation0] sm:$0x1] %vm9_vm1, %v8_v8  }
  0x78   :  { %v14_v10 = vpop.permute.xlu0 %13   ;;  %v26_v11 = vpop.permute.xlu1 %25  }
  0x79   :  { %16 = vst.msk [vmem:[#allocation0] sm:$0x1] %vm15_vm2, %v14_v10  }
  0x7a   :  { %22 = vst.msk [vmem:[#allocation0] sm:$0x1] %vm21_vm3, %v20_v9  }
  0x7b   :  { %28 = vst.msk [vmem:[#allocation0] sm:$0x1] %vm27_vm4, %v26_v11  }
  0x7c   :  { %v32_v12 = vpop.permute.xlu0 %31   ;;  %v38_v13 = vpop.permute.xlu1 %37  }
  0x7d   :  { %34 = vst.msk [vmem:[#allocation0] sm:$0x1] %vm33_vm5, %v32_v12  }
  0x7e   :  { %40 = vst.msk [vmem:[#allocation0] sm:$0x1] %vm39_vm6, %v38_v13  }
  0x80   :  { %v44_v14 = vpop.permute.xlu0 %43  }
  0x81   :  { %46 = vst.msk [vmem:[#allocation0] sm:$0x1] %vm45_vm7, %v44_v14  }
  0x88   :  { %v51_v15 = vld [vmem:[#allocation0] sm:$0x1] }
  0x89   :  { %54 = vst [vmem:[%s114_s1] sm:$0x1] %v51_v15 }

// kernel: cnn3d_forward.5
= control target key start
LH: loop header
LB: loop body
LE: loop exit
PB: predicated region body
PF: predicated region fallthrough
CT: control target
= control target key end

     0   :  { %s2321_s18 = smov 0   ;;  %s2323_s19 = smov 0   ;;  %s2718_s0 = inlined_call_operand.vmem [shape: bf16[2,10,10,80], index: 0, kind: input, shape index: {}]   ;;  %s2719_s1 = inlined_call_operand.vmem [shape: bf16[9,80,128], index: 1, kind: input, shape index: {}]   ;;  %s2720_s2 = inlined_call_operand.vmem [shape: f32[1,128], index: 2, kind: input, shape index: {}]   ;;  %s2721_s3 = inlined_call_operand.vmem [shape: f32[1,128], index: 3, kind: input, shape index: {}]   ;;  %s2722_s4 = inlined_call_operand.vmem [shape: f32[1,128], index: 4, kind: input, shape index: {}]   ;;  %s2723_s5 = inlined_call_operand.vmem [shape: f32[2,4,8,128], index: 5, kind: output, shape index: {}]  }
   0x1   :  { %s2325_s20 = smov 0   ;;  %s2327_s21 = smov 0  }
   0x2   :  { %s2329_s22 = smov 0  }
   0x3 LB: > { %s24_s23 = sadd.s32 1, %s2279_s20  ;;  %s27_s24 = sadd.s32 1, %s2283_s21  ;;  %s2287_s22 = sphi %s2329_s22, %s15_s22   ;;  %s2283_s21 = sphi %s2327_s21, %s2727_s21   ;;  %s2279_s20 = sphi %s2325_s20, %s2726_s20   ;;  %s2275_s19 = sphi %s2323_s19, %s2725_s19   ;;  %s2271_s18 = sphi %s2321_s18, %s2724_s18  }
   0x4   : > { %p25_p0 = scmp.ge.s32.totalorder %s24_s23, 4  ;;  %p1608_p1 = scmp.ge.s32.totalorder %s2287_s22, 1 }
   0x5   : > { %p201_p2 = scmp.lt.s32.totalorder %s2287_s22, 9 }
   0x6   : > { %s2729_s23 = smov (%p25_p0, %s24_s23), 0  ;;  %s2731_s24 = smov (!%p25_p0, %s27_s24), %s2283_s21 }
   0x7   : > { %p202_p3 = pnand %p1608_p1, %p201_p2  ;;  %p29_p4 = scmp.ge.s32.totalorder %s2731_s24, 2 }
   0x8   : > { %p232_p5 = scmp.lt.s32.totalorder (!%p202_p3), %s2275_s19, 1  ;;  %s1789_s8 = sshll.u32 (!%p202_p3), %s2271_s18, 4 }
   0x9   : > { %s2733_s24 = smov (%p29_p4, %s2731_s24), 0  ;;  %205 = sbr.rel (%p202_p3) target bundleno = 402 (0x192), region = 40 }
   0xa   : > { %p239_p6 = scmp.lt.s32.totalorder (!%p202_p3), %s2271_s18, 3 }
   0xe   : > { %v2196_v0 = vld [vmem:[%s2719_s1 + $0x48] sm:$0xff]   ;;  %v2289_v1 = vmov 0.0   ;;  %v2197_v2 = vld [vmem:[%s2719_s1 + $0x20] sm:$0xff]   ;;  %vm2290_vm0 = vmmov 0   ;;  %v2199_v4 = vld [vmem:[%s2719_s1 + $0x18] sm:$0xff]   ;;  %s2735_s19 = smov (!%p232_p5, %s2275_s19), 1 }
   0xf   : > { %1901 = vmatprep.subr.bf16.mxu0 %v2289_v1  ;;  %1915 = vmatprep.subr.bf16.mxu1 %v2289_v1  ;;  %v2198_v3 = vld [vmem:[%s2719_s1 + $0x40] sm:$0xff]   ;;  %v2200_v5 = vld [vmem:[%s2719_s1 + $0x38] sm:$0xff]   ;;  %s2153_s11 = smul.u32 80, %s2735_s19  ;;  %v2201_v6 = vld [vmem:[%s2719_s1 + $0x10] sm:$0xff]   ;;  %vm321_vm1 = vcmask 654336   ;;  %s2737_s18 = smov (!%p239_p6, %s2271_s18), 3 }
  0x10   : > { %1902 = vmatpush3.bf16.msra.mxu0 %v2196_v0  ;;  %1911 = vmatprep.mubr.msk.bf16.mxu0 %vm2290_vm0, %v2289_v1  ;;  %v2202_v7 = vld [vmem:[%s2719_s1 + $0x30] sm:$0xff]   ;;  %v2203_v10 = vld [vmem:[%s2719_s1 + $0x8] sm:$0xff]   ;;  %v2205_v15 = vld [vmem:[%s2719_s1] sm:$0xff]  }
  0x11   : > { %1916 = vmatpush3.bf16.msra.mxu1 %v2197_v2  ;;  %1903 = vmatprep.subr.bf16.mxu0 %v2289_v1  ;;  %s236_s16 = scalar_lea.vmem %s2718_s0, %s2153_s11  ;;  %v2204_v14 = vld [vmem:[%s2719_s1 + $0x28] sm:$0xff]   ;;  %v2208_v25 = vld [vmem:[%s2719_s1 + $0x70] sm:$0xff]   ;;  %v2210_v27 = vld [vmem:[%s2719_s1 + $0x60] sm:$0xff]   ;;  %s1610_s11 = sshll.u32 %s2735_s19, 2 }
  0x12   : > { %1917 = vmatprep.subr.bf16.mxu1 %v2289_v1  ;;  %1925 = vmatprep.mubr.msk.bf16.mxu1 %vm2290_vm0, %v2289_v1  ;;  %s2392_s17 = scalar_lea.vmem %s236_s16, %s1789_s8  ;;  %v2209_v26 = vld [vmem:[%s2719_s1 + $0x68] sm:$0xff]   ;;  %v2211_v28 = vld [vmem:[%s2719_s1 + $0x58] sm:$0xff]   ;;  %v2212_v32 = vld [vmem:[%s2719_s1 + $0x50] sm:$0xff]   ;;  %s242_s14 = sadd.s32 %s1610_s11, %s2737_s18 }
  0x13   : > { %v260_v8 = vld [vmem:[%s2392_s17] sm:$0xf]  ;;  %v2399_v9 = vld [vmem:[%s2392_s17 + $0x4] sm:$0x1]  ;;  %v2420_v18 = vld [vmem:[%s2392_s17 + $0x8] sm:$0xf] }
  0x14   : > { %1904 = vmatpush3.bf16.msra.mxu0 %v2198_v3  ;;  %v1629_v11 = vcombine.low %v260_v8, %v2399_v9  ;;  %v1628_v19 = vld [vmem:[%s2392_s17 + $0xc] sm:$0x1]  ;;  %v547_v29 = vld [vmem:[%s2392_s17] sm:$0xe]  ;;  %v1655_v30 = vld [vmem:[%s2392_s17 + $0x8] sm:$0xe] }
  0x15   : > { %1918 = vmatpush3.bf16.msra.mxu1 %v2199_v4  ;;  %1905 = vmatprep.subr.bf16.mxu0 %v2289_v1  ;;  %v1642_v20 = vcombine.low %v2420_v18, %v1628_v19  ;;  %v1656_v31 = vcombine.low %v547_v29, %v2399_v9  ;;  %v1663_v33 = vcombine.low %v1655_v30, %v1628_v19  ;;  %v2215_v36 = vld [vmem:[%s2719_s1 + $0x98] sm:$0xff]   ;;  %v2216_v37 = vld [vmem:[%s2719_s1 + $0x90] sm:$0xff]   ;;  %v2217_v38 = vld [vmem:[%s2719_s1 + $0x88] sm:$0xff]   ;;  %s1611_s19 = sshll.u32 %s242_s14, 3 }
  0x16   : > { %1919 = vmatprep.subr.bf16.mxu1 %v2289_v1  ;;  %v285_v12 = vshrl.u32 %v1629_v11, 16  ;;  %v287_v13 = vshll.u32 %v1629_v11, 16  ;;  %v2218_v39 = vld [vmem:[%s2719_s1 + $0x80] sm:$0xff]   ;;  %v2219_v40 = vld [vmem:[%s2719_s1 + $0x78] sm:$0xff]   ;;  %v2512_v42 = vld [vmem:[%s2392_s17 + $0x10] sm:$0xf]  ;;  %s244_s27 = scalar_lea.vmem %s2723_s5, %s1611_s19 }
  0x17   : > { %v446_v21 = vshll.u32 %v1642_v20, 16  ;;  %v444_v22 = vshrl.u32 %v1642_v20, 16  ;;  %v552_v34 = vrot.slane %v1656_v31, 1  ;;  %v2474_v35 = vrot.slane %v1663_v33, 1  ;;  %v2220_v41 = vld [vmem:[%s2719_s1 + $0xc0] sm:$0xff]   ;;  %v2221_v43 = vld [vmem:[%s2719_s1 + $0xb8] sm:$0xff]  }
  0x18   : > { %1906 = vmatpush3.bf16.msra.mxu0 %v2200_v5  ;;  %v289_v16 = vrot.slane %v287_v13, 1  ;;  %v1695_v44 = vld [vmem:[%s2392_s17 + $0x10] sm:$0xf]  ;;  %v1696_v45 = vld [vmem:[%s2392_s17 + $0x14] sm:$0x1]  ;;  %v2223_v48 = vld [vmem:[%s2719_s1 + $0xa8] sm:$0xff]  }
  0x19   : > { %1920 = vmatpush3.bf16.msra.mxu1 %v2201_v6  ;;  %1907 = vmatprep.subr.bf16.mxu0 %v2289_v1  ;;  %v448_v23 = vrot.slane %v446_v21, 1  ;;  %v2222_v46 = vld [vmem:[%s2719_s1 + $0xb0] sm:$0xff]   ;;  %v1703_v47 = vcombine.low %v1695_v44, %v1696_v45  ;;  %v2224_v50 = vld [vmem:[%s2719_s1 + $0xa0] sm:$0xff]   ;;  %v2226_v54 = vld [vmem:[%s2719_s1 + $0xe8] sm:$0xff]  }
  0x1a   : > { %1921 = vmatprep.subr.bf16.mxu1 %v2289_v1  ;;  %v290_v17 = vor.u32 %v289_v16, %v285_v12  ;;  %v2227_v55 = vld [vmem:[%s2719_s1 + $0xe0] sm:$0xff]   ;;  %v2228_v56 = vld [vmem:[%s2719_s1 + $0xd8] sm:$0xff]   ;;  %v2229_v57 = vld [vmem:[%s2719_s1 + $0xd0] sm:$0xff]  }
  0x1b   : > { %v2436_v24 = vor.u32 %v448_v23, %v444_v22  ;;  %v898_v49 = vshll.u32 %v1703_v47, 16  ;;  %v896_v51 = vshrl.u32 %v1703_v47, 16  ;;  %v1715_v58 = vld [vmem:[%s2392_s17 + $0x10] sm:$0xe]  ;;  %v2230_v59 = vld [vmem:[%s2719_s1 + $0xc8] sm:$0xff]   ;;  %v2240_v11 = vld [vmem:[%s2719_s1 + $0x120] sm:$0xff]  }
  0x1c   : > { %1908 = vmatpush3.bf16.msra.mxu0 %v2202_v7  ;;  %v1722_v60 = vcombine.low %v1715_v58, %v1696_v45  ;;  %v2232_v62 = vld [vmem:[%s2719_s1 + $0x110] sm:$0xff]   ;;  %v2233_v63 = vld [vmem:[%s2719_s1 + $0x108] sm:$0xff]   ;;  %v2241_v13 = vld [vmem:[%s2719_s1 + $0x118] sm:$0xff]  }
  0x1d   : > { %1922 = vmatpush3.bf16.msra.mxu1 %v2203_v10  ;;  %1909 = vmatprep.subr.bf16.mxu0 %v2289_v1  ;;  %v900_v52 = vrot.slane %v898_v49, 1  ;;  %v2239_v9 = vld [vmem:[%s2719_s1 + $0x128] sm:$0xff]   ;;  %v2245_v19 = vld [vmem:[%s2719_s1 + $0x150] sm:$0xff]   ;;  %v1774_v21 = vld [vmem:[%s2392_s17 + $0x18] sm:$0xe] }
  0x1e   : > { %1923 = vmatprep.subr.bf16.mxu1 %v2289_v1  ;;  %v2582_v61 = vrot.slane %v1722_v60, 1  ;;  %v2246_v20 = vld [vmem:[%s2719_s1 + $0x148] sm:$0xff]   ;;  %v2247_v22 = vld [vmem:[%s2719_s1 + $0x140] sm:$0xff]  }
  0x1f   : > { %v2546_v53 = vor.u32 %v900_v52, %v896_v51 }
  0x20   : > { %1910 = vmatpush3.bf16.msra.mxu0 %v2204_v14 }
  0x21   : > { %1924 = vmatpush3.bf16.msra.mxu1 %v2205_v15  ;;  %1929 = vmatprep.subr.bf16.mxu0 %v2289_v1 }
  0x22   : > { %1943 = vmatprep.subr.bf16.mxu1 %v2289_v1 }
  0x23   : > { %1912 = vmatmul.mubr.msk.bf16.vlgmr.msra.gmra.mxu0 %vm321_vm1, %v290_v17  ;;  %v2243_v17 = vld [vmem:[%s2719_s1 + $0x160] sm:$0xff]  }
  0x24   : > { %1926 = vmatmul.mubr.msk.bf16.vlgmr.msra.gmra.mxu1 %vm321_vm1, %v260_v8  ;;  %1930 = vmatpush3.bf16.msra.mxu0 %v2196_v0  ;;  %v2234_v0 = vld [vmem:[%s2719_s1 + $0x100] sm:$0xff]   ;;  %v1755_v8 = vld [vmem:[%s2392_s17 + $0x1c] sm:$0x1] }
  0x25   : > { %1944 = vmatpush3.bf16.msra.mxu1 %v2197_v2  ;;  %1931 = vmatprep.subr.bf16.mxu0 %v2289_v1  ;;  %v2235_v2 = vld [vmem:[%s2719_s1 + $0xf8] sm:$0xff]   ;;  %v1781_v23 = vcombine.low %v1774_v21, %v1755_v8 }
  0x26   : > { %1945 = vmatprep.subr.bf16.mxu1 %v2289_v1  ;;  %1939 = vmatprep.mubr.msk.bf16.mxu0 %vm2290_vm0, %v2289_v1 }
  0x27   : > { %1953 = vmatprep.mubr.msk.bf16.mxu1 %vm2290_vm0, %v2289_v1 }
  0x28   : > { %1932 = vmatpush3.bf16.msra.mxu0 %v2198_v3  ;;  %v2236_v3 = vld [vmem:[%s2719_s1 + $0xf0] sm:$0xff]  }
  0x29   : > { %1946 = vmatpush3.bf16.msra.mxu1 %v2199_v4  ;;  %1933 = vmatprep.subr.bf16.mxu0 %v2289_v1  ;;  %v2237_v4 = vld [vmem:[%s2719_s1 + $0x138] sm:$0xff]  }
  0x2a   : > { %1947 = vmatprep.subr.bf16.mxu1 %v2289_v1 }
  0x2c   : > { %1934 = vmatpush3.bf16.msra.mxu0 %v2200_v5  ;;  %v1736_v5 = vld [vmem:[%s2392_s17 + $0x18] sm:$0xf] }
  0x2d   : > { %1948 = vmatpush3.bf16.msra.mxu1 %v2201_v6  ;;  %1935 = vmatprep.subr.bf16.mxu0 %v2289_v1  ;;  %v2238_v6 = vld [vmem:[%s2719_s1 + $0x130] sm:$0xff]  }
  0x2e   : > { %1949 = vmatprep.subr.bf16.mxu1 %v2289_v1 }
  0x30   : > { %1936 = vmatpush3.bf16.msra.mxu0 %v2202_v7  ;;  %v1754_v7 = vld [vmem:[%s2392_s17 + $0x18] sm:$0xf] }
  0x31   : > { %1950 = vmatpush3.bf16.msra.mxu1 %v2203_v10  ;;  %1937 = vmatprep.subr.bf16.mxu0 %v2289_v1  ;;  %v1762_v10 = vcombine.low %v1754_v7, %v1755_v8 }
  0x32   : > { %1951 = vmatprep.subr.bf16.mxu1 %v2289_v1 }
  0x33   : > { %v1300_v12 = vshll.u32 %v1762_v10, 16 }
  0x34   : > { %1938 = vmatpush3.bf16.msra.mxu0 %v2204_v14  ;;  %v1298_v14 = vshrl.u32 %v1762_v10, 16 }
  0x35   : > { %1952 = vmatpush3.bf16.msra.mxu1 %v2205_v15  ;;  %1957 = vmatprep.subr.bf16.mxu0 %v2289_v1  ;;  %v1302_v15 = vrot.slane %v1300_v12, 1 }
  0x36   : > { %1971 = vmatprep.subr.bf16.mxu1 %v2289_v1 }
  0x37   : > { %1940 = vmatmul.mubr.msk.bf16.vlgmr.msra.gmra.mxu0 %vm321_vm1, %v2436_v24  ;;  %v1303_v16 = vor.u32 %v1302_v15, %v1298_v14 }
  0x38   : > { %1954 = vmatmul.mubr.msk.bf16.vlgmr.msra.gmra.mxu1 %vm321_vm1, %v2420_v18  ;;  %1958 = vmatpush3.bf16.msra.mxu0 %v2208_v25 }
  0x39   : > { %1972 = vmatpush3.bf16.msra.mxu1 %v2208_v25  ;;  %1959 = vmatprep.subr.bf16.mxu0 %v2289_v1 }
  0x3a   : > { %1973 = vmatprep.subr.bf16.mxu1 %v2289_v1  ;;  %1967 = vmatprep.mubr.msk.bf16.mxu0 %vm2290_vm0, %v2289_v1 }
  0x3b   : > { %1981 = vmatprep.mubr.msk.bf16.mxu1 %vm2290_vm0, %v2289_v1 }
  0x3c   : > { %1960 = vmatpush3.bf16.msra.mxu0 %v2209_v26 }
  0x3d   : > { %1974 = vmatpush3.bf16.msra.mxu1 %v2209_v26  ;;  %1961 = vmatprep.subr.bf16.mxu0 %v2289_v1 }
  0x3e   : > { %1975 = vmatprep.subr.bf16.mxu1 %v2289_v1 }
  0x40   : > { %1962 = vmatpush3.bf16.msra.mxu0 %v2210_v27 }
  0x41   : > { %1976 = vmatpush3.bf16.msra.mxu1 %v2210_v27  ;;  %1963 = vmatprep.subr.bf16.mxu0 %v2289_v1 }
  0x42   : > { %1977 = vmatprep.subr.bf16.mxu1 %v2289_v1 }
  0x44   : > { %1964 = vmatpush3.bf16.msra.mxu0 %v2211_v28 }
  0x45   : > { %1978 = vmatpush3.bf16.msra.mxu1 %v2211_v28  ;;  %1965 = vmatprep.subr.bf16.mxu0 %v2289_v1 }
  0x46   : > { %1979 = vmatprep.subr.bf16.mxu1 %v2289_v1 }
  0x48   : > { %1966 = vmatpush3.bf16.msra.mxu0 %v2212_v32 }
  0x49   : > { %1980 = vmatpush3.bf16.msra.mxu1 %v2212_v32  ;;  %1985 = vmatprep.subr.bf16.mxu0 %v2289_v1 }
  0x4a   : > { %1999 = vmatprep.subr.bf16.mxu1 %v2289_v1 }
  0x4b   : > { %1968 = vmatmul.mubr.msk.bf16.vlgmr.msra.gmra.mxu0 %vm321_vm1, %v552_v34 }
  0x4c   : > { %1982 = vmatmul.mubr.msk.bf16.vlgmr.msra.gmra.mxu1 %vm321_vm1, %v2474_v35  ;;  %1986 = vmatpush3.bf16.msra.mxu0 %v2215_v36 }
  0x4d   : > { %2000 = vmatpush3.bf16.msra.mxu1 %v2215_v36  ;;  %1987 = vmatprep.subr.bf16.mxu0 %v2289_v1 }
  0x4e   : > { %2001 = vmatprep.subr.bf16.mxu1 %v2289_v1  ;;  %1995 = vmatprep.mubr.msk.bf16.mxu0 %vm2290_vm0, %v2289_v1 }
  0x4f   : > { %2009 = vmatprep.mubr.msk.bf16.mxu1 %vm2290_vm0, %v2289_v1 }
  0x50   : > { %1988 = vmatpush3.bf16.msra.mxu0 %v2216_v37 }
  0x51   : > { %2002 = vmatpush3.bf16.msra.mxu1 %v2216_v37  ;;  %1989 = vmatprep.subr.bf16.mxu0 %v2289_v1 }
  0x52   : > { %2003 = vmatprep.subr.bf16.mxu1 %v2289_v1 }
  0x54   : > { %1990 = vmatpush3.bf16.msra.mxu0 %v2217_v38 }
  0x55   : > { %2004 = vmatpush3.bf16.msra.mxu1 %v2217_v38  ;;  %1991 = vmatprep.subr.bf16.mxu0 %v2289_v1 }
  0x56   : > { %2005 = vmatprep.subr.bf16.mxu1 %v2289_v1 }
  0x58   : > { %1992 = vmatpush3.bf16.msra.mxu0 %v2218_v39 }
  0x59   : > { %2006 = vmatpush3.bf16.msra.mxu1 %v2218_v39  ;;  %1993 = vmatprep.subr.bf16.mxu0 %v2289_v1 }
  0x5a   : > { %2007 = vmatprep.subr.bf16.mxu1 %v2289_v1 }
  0x5c   : > { %1994 = vmatpush3.bf16.msra.mxu0 %v2219_v40 }
  0x5d   : > { %2008 = vmatpush3.bf16.msra.mxu1 %v2219_v40  ;;  %2013 = vmatprep.subr.bf16.mxu0 %v2289_v1 }
  0x5e   : > { %2027 = vmatprep.subr.bf16.mxu1 %v2289_v1 }
  0x5f   : > { %1996 = vmatmul.mubr.msk.bf16.vlgmr.msra.gmra.mxu0 %vm321_vm1, %v2420_v18  ;;  %v2244_v18 = vld [vmem:[%s2719_s1 + $0x158] sm:$0xff]  }
  0x60   : > { %2010 = vmatmul.mubr.msk.bf16.vlgmr.msra.gmra.mxu1 %vm321_vm1, %v2512_v42  ;;  %2014 = vmatpush3.bf16.msra.mxu0 %v2220_v41 }
  0x61   : > { %2028 = vmatpush3.bf16.msra.mxu1 %v2220_v41  ;;  %2015 = vmatprep.subr.bf16.mxu0 %v2289_v1 }
  0x62   : > { %2029 = vmatprep.subr.bf16.mxu1 %v2289_v1  ;;  %2023 = vmatprep.mubr.msk.bf16.mxu0 %vm2290_vm0, %v2289_v1 }
  0x63   : > { %2037 = vmatprep.mubr.msk.bf16.mxu1 %vm2290_vm0, %v2289_v1 }
  0x64   : > { %2016 = vmatpush3.bf16.msra.mxu0 %v2221_v43 }
  0x65   : > { %2030 = vmatpush3.bf16.msra.mxu1 %v2221_v43  ;;  %2017 = vmatprep.subr.bf16.mxu0 %v2289_v1 }
  0x66   : > { %2031 = vmatprep.subr.bf16.mxu1 %v2289_v1 }
  0x68   : > { %2018 = vmatpush3.bf16.msra.mxu0 %v2222_v46 }
  0x69   : > { %2032 = vmatpush3.bf16.msra.mxu1 %v2222_v46  ;;  %2019 = vmatprep.subr.bf16.mxu0 %v2289_v1 }
  0x6a   : > { %2033 = vmatprep.subr.bf16.mxu1 %v2289_v1 }
  0x6c   : > { %2020 = vmatpush3.bf16.msra.mxu0 %v2223_v48 }
  0x6d   : > { %2034 = vmatpush3.bf16.msra.mxu1 %v2223_v48  ;;  %2021 = vmatprep.subr.bf16.mxu0 %v2289_v1 }
  0x6e   : > { %2035 = vmatprep.subr.bf16.mxu1 %v2289_v1 }
  0x70   : > { %2022 = vmatpush3.bf16.msra.mxu0 %v2224_v50 }
  0x71   : > { %2036 = vmatpush3.bf16.msra.mxu1 %v2224_v50  ;;  %2041 = vmatprep.subr.bf16.mxu0 %v2289_v1 }
  0x72   : > { %2055 = vmatprep.subr.bf16.mxu1 %v2289_v1 }
  0x73   : > { %2024 = vmatmul.mubr.msk.bf16.vlgmr.msra.gmra.mxu0 %vm321_vm1, %v2436_v24  ;;  %v1434_v24 = vrot.slane %v1781_v23, 1 }
  0x74   : > { %2038 = vmatmul.mubr.msk.bf16.vlgmr.msra.gmra.mxu1 %vm321_vm1, %v2546_v53  ;;  %2042 = vmatpush3.bf16.msra.mxu0 %v2226_v54 }
  0x75   : > { %2056 = vmatpush3.bf16.msra.mxu1 %v2226_v54  ;;  %2043 = vmatprep.subr.bf16.mxu0 %v2289_v1 }
  0x76   : > { %2057 = vmatprep.subr.bf16.mxu1 %v2289_v1  ;;  %2051 = vmatprep.mubr.msk.bf16.mxu0 %vm2290_vm0, %v2289_v1 }
  0x77   : > { %2065 = vmatprep.mubr.msk.bf16.mxu1 %vm2290_vm0, %v2289_v1 }
  0x78   : > { %2044 = vmatpush3.bf16.msra.mxu0 %v2227_v55 }
  0x79   : > { %2058 = vmatpush3.bf16.msra.mxu1 %v2227_v55  ;;  %2045 = vmatprep.subr.bf16.mxu0 %v2289_v1 }
  0x7a   : > { %2059 = vmatprep.subr.bf16.mxu1 %v2289_v1 }
  0x7c   : > { %2046 = vmatpush3.bf16.msra.mxu0 %v2228_v56 }
  0x7d   : > { %2060 = vmatpush3.bf16.msra.mxu1 %v2228_v56  ;;  %2047 = vmatprep.subr.bf16.mxu0 %v2289_v1 }
  0x7e   : > { %2061 = vmatprep.subr.bf16.mxu1 %v2289_v1 }
  0x80   : > { %2048 = vmatpush3.bf16.msra.mxu0 %v2229_v57 }
  0x81   : > { %2062 = vmatpush3.bf16.msra.mxu1 %v2229_v57  ;;  %2049 = vmatprep.subr.bf16.mxu0 %v2289_v1 }
  0x82   : > { %2063 = vmatprep.subr.bf16.mxu1 %v2289_v1 }
  0x84   : > { %2050 = vmatpush3.bf16.msra.mxu0 %v2230_v59 }
  0x85   : > { %2064 = vmatpush3.bf16.msra.mxu1 %v2230_v59  ;;  %2069 = vmatprep.subr.bf16.mxu0 %v2289_v1 }
  0x86   : > { %2083 = vmatprep.subr.bf16.mxu1 %v2289_v1 }
  0x87   : > { %2052 = vmatmul.mubr.msk.bf16.vlgmr.msra.gmra.mxu0 %vm321_vm1, %v2474_v35 }
  0x88   : > { %2066 = vmatmul.mubr.msk.bf16.vlgmr.msra.gmra.mxu1 %vm321_vm1, %v2582_v61  ;;  %2070 = vmatpush3.bf16.msra.mxu0 %v2232_v62 }
  0x89   : > { %2084 = vmatpush3.bf16.msra.mxu1 %v2232_v62  ;;  %2071 = vmatprep.subr.bf16.mxu0 %v2289_v1 }
  0x8a   : > { %2085 = vmatprep.subr.bf16.mxu1 %v2289_v1  ;;  %2079 = vmatprep.mubr.msk.bf16.mxu0 %vm2290_vm0, %v2289_v1 }
  0x8b   : > { %2093 = vmatprep.mubr.msk.bf16.mxu1 %vm2290_vm0, %v2289_v1 }
  0x8c   : > { %2072 = vmatpush3.bf16.msra.mxu0 %v2233_v63 }
  0x8d   : > { %2086 = vmatpush3.bf16.msra.mxu1 %v2233_v63  ;;  %2073 = vmatprep.subr.bf16.mxu0 %v2289_v1 }
  0x8e   : > { %2087 = vmatprep.subr.bf16.mxu1 %v2289_v1 }
  0x90   : > { %2074 = vmatpush3.bf16.msra.mxu0 %v2234_v0 }
  0x91   : > { %2088 = vmatpush3.bf16.msra.mxu1 %v2234_v0  ;;  %2075 = vmatprep.subr.bf16.mxu0 %v2289_v1 }
  0x92   : > { %2089 = vmatprep.subr.bf16.mxu1 %v2289_v1 }
  0x94   : > { %2076 = vmatpush3.bf16.msra.mxu0 %v2235_v2 }
  0x95   : > { %2090 = vmatpush3.bf16.msra.mxu1 %v2235_v2  ;;  %2077 = vmatprep.subr.bf16.mxu0 %v2289_v1 }
  0x96   : > { %2091 = vmatprep.subr.bf16.mxu1 %v2289_v1 }
  0x98   : > { %2078 = vmatpush3.bf16.msra.mxu0 %v2236_v3 }
  0x99   : > { %2092 = vmatpush3.bf16.msra.mxu1 %v2236_v3  ;;  %2097 = vmatprep.subr.bf16.mxu0 %v2289_v1 }
  0x9a   : > { %2111 = vmatprep.subr.bf16.mxu1 %v2289_v1 }
  0x9b   : > { %2080 = vmatmul.mubr.msk.bf16.vlgmr.msra.gmra.mxu0 %vm321_vm1, %v2512_v42 }
  0x9c   : > { %2094 = vmatmul.mubr.msk.bf16.vlgmr.msra.gmra.mxu1 %vm321_vm1, %v1736_v5  ;;  %2098 = vmatpush3.bf16.msra.mxu0 %v2237_v4 }
  0x9d   : > { %2112 = vmatpush3.bf16.msra.mxu1 %v2237_v4  ;;  %2099 = vmatprep.subr.bf16.mxu0 %v2289_v1 }
  0x9e   : > { %2113 = vmatprep.subr.bf16.mxu1 %v2289_v1  ;;  %2107 = vmatprep.mubr.msk.bf16.mxu0 %vm2290_vm0, %v2289_v1 }
  0x9f   : > { %2121 = vmatprep.mubr.msk.bf16.mxu1 %vm2290_vm0, %v2289_v1 }
  0xa0   : > { %2100 = vmatpush3.bf16.msra.mxu0 %v2238_v6 }
  0xa1   : > { %2114 = vmatpush3.bf16.msra.mxu1 %v2238_v6  ;;  %2101 = vmatprep.subr.bf16.mxu0 %v2289_v1 }
  0xa2   : > { %2115 = vmatprep.subr.bf16.mxu1 %v2289_v1 }
  0xa4   : > { %2102 = vmatpush3.bf16.msra.mxu0 %v2239_v9 }
  0xa5   : > { %2116 = vmatpush3.bf16.msra.mxu1 %v2239_v9  ;;  %2103 = vmatprep.subr.bf16.mxu0 %v2289_v1 }
  0xa6   : > { %2117 = vmatprep.subr.bf16.mxu1 %v2289_v1 }
  0xa8   : > { %2104 = vmatpush3.bf16.msra.mxu0 %v2240_v11 }
  0xa9   : > { %2118 = vmatpush3.bf16.msra.mxu1 %v2240_v11  ;;  %2105 = vmatprep.subr.bf16.mxu0 %v2289_v1 }
  0xaa   : > { %2119 = vmatprep.subr.bf16.mxu1 %v2289_v1 }
  0xac   : > { %2106 = vmatpush3.bf16.msra.mxu0 %v2241_v13 }
  0xad   : > { %2120 = vmatpush3.bf16.msra.mxu1 %v2241_v13  ;;  %2125 = vmatprep.subr.bf16.mxu0 %v2289_v1 }
  0xae   : > { %2139 = vmatprep.subr.bf16.mxu1 %v2289_v1 }
  0xaf   : > { %2108 = vmatmul.mubr.msk.bf16.vlgmr.msra.gmra.mxu0 %vm321_vm1, %v2546_v53 }
  0xb0   : > { %2122 = vmatmul.mubr.msk.bf16.vlgmr.msra.gmra.mxu1 %vm321_vm1, %v1303_v16  ;;  %2126 = vmatpush3.bf16.msra.mxu0 %v2243_v17 }
  0xb1   : > { %2140 = vmatpush3.bf16.msra.mxu1 %v2243_v17  ;;  %2127 = vmatprep.subr.bf16.mxu0 %v2289_v1 }
  0xb2   : > { %2141 = vmatprep.subr.bf16.mxu1 %v2289_v1  ;;  %2135 = vmatprep.mubr.msk.bf16.mxu0 %vm2290_vm0, %v2289_v1 }
  0xb3   : > { %2149 = vmatprep.mubr.msk.bf16.mxu1 %vm2290_vm0, %v2289_v1 }
  0xb4   : > { %2128 = vmatpush3.bf16.msra.mxu0 %v2244_v18 }
  0xb5   : > { %2142 = vmatpush3.bf16.msra.mxu1 %v2244_v18  ;;  %2129 = vmatprep.subr.bf16.mxu0 %v2289_v1 }
  0xb6   : > { %2143 = vmatprep.subr.bf16.mxu1 %v2289_v1 }
  0xb8   : > { %2130 = vmatpush3.bf16.msra.mxu0 %v2245_v19 }
  0xb9   : > { %2144 = vmatpush3.bf16.msra.mxu1 %v2245_v19  ;;  %2131 = vmatprep.subr.bf16.mxu0 %v2289_v1 }
  0xba   : > { %2145 = vmatprep.subr.bf16.mxu1 %v2289_v1 }
  0xbc   : > { %2132 = vmatpush3.bf16.msra.mxu0 %v2246_v20 }
  0xbd   : > { %2146 = vmatpush3.bf16.msra.mxu1 %v2246_v20  ;;  %2133 = vmatprep.subr.bf16.mxu0 %v2289_v1 }
  0xbe   : > { %2147 = vmatprep.subr.bf16.mxu1 %v2289_v1 }
  0xc0   : > { %2134 = vmatpush3.bf16.msra.mxu0 %v2247_v22 }
  0xc1   : > { %2148 = vmatpush3.bf16.msra.mxu1 %v2247_v22 }
  0xc3   : > { %2136 = vmatmul.mubr.msk.bf16.vlgmr.msra.gmra.mxu0 %vm321_vm1, %v2582_v61 }
  0xc4   : > { %2150 = vmatmul.mubr.msk.bf16.vlgmr.msra.gmra.mxu1 %vm321_vm1, %v1434_v24 }
  0xe3   : > { %v359_v25 = vpop.f32.mrf.mxu0 }
  0xe4   : > { %v432_v26 = vpop.f32.mrf.mxu1 }
  0xe5   : > { %v433_v27 = vadd.f32 %v432_v26, %v359_v25  ;;  %v1913_v28 = vpop.f32.mrf.mxu0 }
  0xe6   : > { %v1927_v29 = vpop.f32.mrf.mxu1 }
  0xe7   : > { %v362_v30 = vpop.f32.mrf.mxu0 }
  0xe8   : > { %v435_v31 = vpop.f32.mrf.mxu1 }
  0xe9   : > { %v1914_v32 = vpop.f32.mrf.mxu0 }
  0xea   : > { %v1928_v33 = vpop.f32.mrf.mxu1 }
  0xf7   : > { %v487_v34 = vpop.f32.mrf.mxu0 }
  0xf8   : > { %v530_v35 = vpop.f32.mrf.mxu1 }
  0xf9   : > { %v531_v1 = vadd.f32 %v530_v35, %v487_v34  ;;  %v1941_v36 = vpop.f32.mrf.mxu0 }
  0xfa   : > { %v1955_v37 = vpop.f32.mrf.mxu1 }
  0xfb   : > { %v490_v38 = vpop.f32.mrf.mxu0 }
  0xfc   : > { %v533_v39 = vpop.f32.mrf.mxu1 }
  0xfd   : > { %v1942_v40 = vpop.f32.mrf.mxu0  ;;  %v1783_v39 = vld [vmem:[%s2720_s2] ss:$0 sm:$0xff] }
  0xfe   : > { %v1956_v41 = vpop.f32.mrf.mxu1 }
 0x10b   : > { %v620_v42 = vpop.f32.mrf.mxu0 }
 0x10c   : > { %v626_v43 = vadd.f32 %v620_v42, %v433_v27  ;;  %v668_v44 = vpop.f32.mrf.mxu1 }
 0x10d   : > { %v674_v45 = vadd.f32 %v668_v44, %v531_v1  ;;  %v1969_v46 = vpop.f32.mrf.mxu0 }
 0x10e   : > { %v1983_v47 = vpop.f32.mrf.mxu1  ;;  %v1784_v46 = vld [vmem:[%s2721_s3] ss:$0 sm:$0xff] }
 0x10f   : > { %v623_v48 = vpop.f32.mrf.mxu0 }
 0x110   : > { %v671_v49 = vpop.f32.mrf.mxu1 }
 0x111   : > { %v1970_v50 = vpop.f32.mrf.mxu0 }
 0x112   : > { %v1984_v51 = vpop.f32.mrf.mxu1 }
 0x113   : > { %v1785_v51 = vld [vmem:[%s2722_s4] ss:$0 sm:$0xff] }
 0x11f   : > { %v755_v52 = vpop.f32.mrf.mxu0 }
 0x120   : > { %v761_v53 = vadd.f32 %v755_v52, %v626_v43  ;;  %v799_v54 = vpop.f32.mrf.mxu1 }
 0x121   : > { %v805_v55 = vadd.f32 %v799_v54, %v674_v45  ;;  %v1997_v56 = vpop.f32.mrf.mxu0 }
 0x122   : > { %v2011_v57 = vpop.f32.mrf.mxu1 }
 0x123   : > { %v758_v58 = vpop.f32.mrf.mxu0 }
 0x124   : > { %v802_v59 = vpop.f32.mrf.mxu1 }
 0x125   : > { %v1998_v60 = vpop.f32.mrf.mxu0 }
 0x126   : > { %v2012_v61 = vpop.f32.mrf.mxu1 }
 0x133   : > { %v883_v62 = vpop.f32.mrf.mxu0 }
 0x134   : > { %v889_v63 = vadd.f32 %v883_v62, %v761_v53  ;;  %v939_v0 = vpop.f32.mrf.mxu1 }
 0x135   : > { %v945_v2 = vadd.f32 %v939_v0, %v805_v55  ;;  %v2025_v3 = vpop.f32.mrf.mxu0 }
 0x136   : > { %v2039_v4 = vpop.f32.mrf.mxu1 }
 0x137   : > { %v886_v5 = vpop.f32.mrf.mxu0 }
 0x138   : > { %v942_v6 = vpop.f32.mrf.mxu1 }
 0x139   : > { %v2026_v7 = vpop.f32.mrf.mxu0 }
 0x13a   : > { %v2040_v8 = vpop.f32.mrf.mxu1 }
 0x147   : > { %v1022_v9 = vpop.f32.mrf.mxu0 }
 0x148   : > { %v1070_v10 = vpop.f32.mrf.mxu1  ;;  %v1028_v33 = vadd.f32 %v1022_v9, %v889_v63 }
 0x149   : > { %v2053_v11 = vpop.f32.mrf.mxu0  ;;  %v1076_v34 = vadd.f32 %v1070_v10, %v945_v2 }
 0x14a   : > { %v2067_v12 = vpop.f32.mrf.mxu1 }
 0x14b   : > { %v1025_v13 = vpop.f32.mrf.mxu0 }
 0x14c   : > { %v1073_v14 = vpop.f32.mrf.mxu1 }
 0x14d   : > { %v2054_v15 = vpop.f32.mrf.mxu0 }
 0x14e   : > { %v2068_v16 = vpop.f32.mrf.mxu1 }
 0x15b   : > { %v1157_v17 = vpop.f32.mrf.mxu0 }
 0x15c   : > { %v1201_v18 = vpop.f32.mrf.mxu1  ;;  %v1163_v35 = vadd.f32 %v1157_v17, %v1028_v33 }
 0x15d   : > { %v2081_v19 = vpop.f32.mrf.mxu0  ;;  %v1207_v1 = vadd.f32 %v1201_v18, %v1076_v34 }
 0x15e   : > { %v2095_v20 = vpop.f32.mrf.mxu1 }
 0x15f   : > { %v1160_v21 = vpop.f32.mrf.mxu0 }
 0x160   : > { %v1204_v22 = vpop.f32.mrf.mxu1 }
 0x161   : > { %v2082_v23 = vpop.f32.mrf.mxu0 }
 0x162   : > { %v2096_v24 = vpop.f32.mrf.mxu1 }
 0x16f   : > { %v1285_v25 = vpop.f32.mrf.mxu0 }
 0x170   : > { %v1341_v26 = vpop.f32.mrf.mxu1  ;;  %v1291_v36 = vadd.f32 %v1285_v25, %v1163_v35 }
 0x171   : > { %v2109_v27 = vpop.f32.mrf.mxu0  ;;  %v1347_v37 = vadd.f32 %v1341_v26, %v1207_v1 }
 0x172   : > { %v2123_v28 = vpop.f32.mrf.mxu1 }
 0x173   : > { %v1288_v29 = vpop.f32.mrf.mxu0 }
 0x174   : > { %v1344_v30 = vpop.f32.mrf.mxu1 }
 0x175   : > { %v2110_v31 = vpop.f32.mrf.mxu0 }
 0x176   : > { %v2124_v32 = vpop.f32.mrf.mxu1 }
 0x183   : > { %v1424_v38 = vpop.f32.mrf.mxu0 }
 0x184   : > { %v1430_v40 = vadd.f32 %v1424_v38, %v1291_v36  ;;  %v1472_v41 = vpop.f32.mrf.mxu1 }
 0x185   : > { %v1478_v42 = vadd.f32 %v1472_v41, %v1347_v37  ;;  %v2137_v43 = vpop.f32.mrf.mxu0 }
 0x186   : > { %v1488_v44 = vadd.f32 %v1783_v39, %v1430_v40  ;;  %v2151_v45 = vpop.f32.mrf.mxu1 }
 0x187   : > { %v1504_v47 = vadd.f32 %v1783_v39, %v1478_v42  ;;  %v1427_v48 = vpop.f32.mrf.mxu0 }
 0x188   : > { %v1489_v49 = vmax.f32 %v1488_v44, 0.0  ;;  %v1475_v50 = vpop.f32.mrf.mxu1 }
 0x189   : > { %v1505_v52 = vmax.f32 %v1504_v47, 0.0  ;;  %v2138_v53 = vpop.f32.mrf.mxu0 }
 0x18a   : > { %v1496_v54 = vmul.f32 %v1784_v46, %v1489_v49  ;;  %v2152_v55 = vpop.f32.mrf.mxu1 }
 0x18b   : > { %v1506_v56 = vmul.f32 %v1784_v46, %v1505_v52 }
 0x18c   : > { %v1503_v57 = vadd.f32 %v1785_v51, %v1496_v54 }
 0x18d   : > { %v1507_v58 = vadd.f32 %v1785_v51, %v1506_v56 }
 0x18f   : > { %v1508_v59 = vmax.f32 %v1503_v57, %v1507_v58 }
 0x191   : > { %1509 = vst [vmem:[%s244_s27] sm:$0xff] %v1508_v59 }
 0x192 PF: > { %s15_s22 = sadd.s32 1, %s2287_s22   ;;  %s2724_s18 = smov %s2279_s20 }
 0x193   : > { %p12_p7 = scmp.ge.s32.totalorder %s15_s22, 10   ;;  %s2725_s19 = smov %s2283_s21 }
 0x194   : > { %s2726_s20 = smov %s2729_s23  ;;  %s2727_s21 = smov %s2733_s24 }
 0x195   :  { %14 = sbr.rel (!%p12_p7) target bundleno = 3 (0x3), region = 82 }

// kernel: tile.78
= control target key start
LH: loop header
LB: loop body
LE: loop exit
PB: predicated region body
PF: predicated region fallthrough
CT: control target
= control target key end

     0   :  { %s22_s0 = inlined_call_operand.vmem [shape: f32[32], index: 0, kind: input, shape index: {}]   ;;  %s23_s1 = inlined_call_operand.vmem [shape: f32[4,32], index: 1, kind: output, shape index: {}]  }
   0x1   :  { %v4_v0 = vld [vmem:[%s22_s0] ss:$0 sm:$0xff] }
   0x2   :  { %5 = vst [vmem:[%s23_s1] sm:$0xf] %v4_v0 }

// kernel: tile.79
= control target key start
LH: loop header
LB: loop body
LE: loop exit
PB: predicated region body
PF: predicated region fallthrough
CT: control target
= control target key end

     0   :  { %vm8_vm0 = vcmask 261120   ;;  %s40_s8 = smov 32   ;;  %s41_s9 = smov 64   ;;  %vm14_vm1 = vcmask 1048320   ;;  %vm20_vm2 = vcmask 785920   ;;  %vm26_vm3 = vcmask 523520   ;;  %s58_s0 = inlined_call_operand.vmem [shape: f32[4,32], index: 0, kind: input, shape index: {}]   ;;  %s59_s1 = inlined_call_operand.vmem [shape: f32[1,128], index: 1, kind: output, shape index: {}]  }
   0x1   :  { %v5_v0 = vld [vmem:[%s58_s0] sm:$0xf]  ;;  %s39_s0 = smov 96  }
   0x2   :  { %6 = vst [vmem:[#allocation1] sm:$0xf] %v5_v0 }
   0x9   :  { %v11_v1 = vld [vmem:[#allocation1 + $0x3] sm:$0x1]   ;;  %v23_v2 = vld [vmem:[#allocation1 + $0x1] sm:$0x1]   ;;  %v7_v3 = vld [vmem:[#allocation1] sm:$0x1]  }
   0xa   :  { %12 = vrot.lane.b32.xlu0 %v11_v1, %s39_s0  ;;  %24 = vrot.lane.b32.xlu1 %v23_v2, %s40_s8  ;;  %v17_v4 = vld [vmem:[#allocation1 + $0x2] sm:$0x1]   ;;  %9 = vst.msk [vmem:[#allocation0] sm:$0x1] %vm8_vm0, %v7_v3  }
   0xe   :  { %18 = vrot.lane.b32.xlu0 %v17_v4, %s41_s9 }
  0x7c   :  { %v13_v5 = vpop.permute.xlu0 %12   ;;  %v25_v6 = vpop.permute.xlu1 %24  }
  0x7d   :  { %15 = vst.msk [vmem:[#allocation0] sm:$0x1] %vm14_vm1, %v13_v5  }
  0x80   :  { %v19_v7 = vpop.permute.xlu0 %18  }
  0x81   :  { %21 = vst.msk [vmem:[#allocation0] sm:$0x1] %vm20_vm2, %v19_v7  }
  0x82   :  { %27 = vst.msk [vmem:[#allocation0] sm:$0x1] %vm26_vm3, %v25_v6  }
  0x89   :  { %v32_v8 = vld [vmem:[#allocation0] sm:$0x1] }
  0x8a   :  { %35 = vst [vmem:[%s59_s1] sm:$0x1] %v32_v8 }

// kernel: cnn3d_forward.6
= control target key start
LH: loop header
LB: loop body
LE: loop exit
PB: predicated region body
PF: predicated region fallthrough
CT: control target
= control target key end

     0   :  { %s2463_s18 = smov 0   ;;  %s2465_s19 = smov 0   ;;  %s2904_s0 = inlined_call_operand.vmem [shape: bf16[2,6,6,96], index: 0, kind: input, shape index: {}]   ;;  %s2905_s1 = inlined_call_operand.vmem [shape: bf16[9,96,128], index: 1, kind: input, shape index: {}]   ;;  %s2906_s2 = inlined_call_operand.vmem [shape: f32[1,128], index: 2, kind: input, shape index: {}]   ;;  %s2907_s3 = inlined_call_operand.vmem [shape: f32[1,128], index: 3, kind: input, shape index: {}]   ;;  %s2908_s4 = inlined_call_operand.vmem [shape: f32[1,128], index: 4, kind: input, shape index: {}]   ;;  %s2909_s5 = inlined_call_operand.vmem [shape: f32[2,2,4,128], index: 5, kind: output, shape index: {}]  }
   0x1   :  { %s2467_s20 = smov 0   ;;  %s2469_s21 = smov 0  }
   0x2   :  { %s2471_s22 = smov 0  }
   0x3 LB: > { %s24_s23 = sadd.s32 1, %s2421_s20  ;;  %s27_s24 = sadd.s32 1, %s2425_s21  ;;  %s2429_s22 = sphi %s2471_s22, %s15_s22   ;;  %s2425_s21 = sphi %s2469_s21, %s2913_s21   ;;  %s2421_s20 = sphi %s2467_s20, %s2912_s20   ;;  %s2417_s19 = sphi %s2465_s19, %s2911_s19   ;;  %s2413_s18 = sphi %s2463_s18, %s2910_s18  }
   0x4   : > { %p25_p0 = scmp.ge.s32.totalorder %s24_s23, 2  ;;  %p1666_p1 = scmp.ge.s32.totalorder %s2429_s22, 1 }
   0x5   : > { %p201_p2 = scmp.lt.s32.totalorder %s2429_s22, 5 }
   0x6   : > { %s2915_s23 = smov (%p25_p0, %s24_s23), 0  ;;  %s2917_s24 = smov (!%p25_p0, %s27_s24), %s2425_s21 }
   0x7   : > { %p202_p3 = pnand %p1666_p1, %p201_p2  ;;  %p29_p4 = scmp.ge.s32.totalorder %s2917_s24, 2 }
   0x8   : > { %p232_p5 = scmp.lt.s32.totalorder (!%p202_p3), %s2417_s19, 1  ;;  %s1868_s8 = sshll.u32 (!%p202_p3), %s2413_s18, 3 }
   0x9   : > { %s2919_s24 = smov (%p29_p4, %s2917_s24), 0  ;;  %205 = sbr.rel (%p202_p3) target bundleno = 438 (0x1b6), region = 40 }
   0xa   : > { %p239_p6 = scmp.lt.s32.totalorder (!%p202_p3), %s2413_s18, 1 }
   0xe   : > { %v2329_v0 = vld [vmem:[%s2905_s1 + $0x58] sm:$0xff]   ;;  %v2431_v1 = vmov 0.0   ;;  %v2330_v2 = vld [vmem:[%s2905_s1 + $0x28] sm:$0xff]   ;;  %v2331_v3 = vld [vmem:[%s2905_s1 + $0x50] sm:$0xff]   ;;  %vm2432_vm0 = vmmov 0   ;;  %s2921_s19 = smov (!%p232_p5, %s2417_s19), 1 }
   0xf   : > { %1998 = vmatprep.subr.bf16.mxu0 %v2431_v1  ;;  %2014 = vmatprep.subr.bf16.mxu1 %v2431_v1  ;;  %v2332_v4 = vld [vmem:[%s2905_s1 + $0x20] sm:$0xff]   ;;  %v2333_v5 = vld [vmem:[%s2905_s1 + $0x48] sm:$0xff]   ;;  %s2286_s11 = smul.u32 24, %s2921_s19  ;;  %v2334_v6 = vld [vmem:[%s2905_s1 + $0x18] sm:$0xff]   ;;  %vm327_vm1 = vcmask 785408   ;;  %s2923_s18 = smov (!%p239_p6, %s2413_s18), 1 }
  0x10   : > { %1999 = vmatpush3.bf16.msra.mxu0 %v2329_v0  ;;  %2010 = vmatprep.mubr.msk.bf16.mxu0 %vm2432_vm0, %v2431_v1  ;;  %v2335_v7 = vld [vmem:[%s2905_s1 + $0x40] sm:$0xff]   ;;  %v2336_v8 = vld [vmem:[%s2905_s1 + $0x10] sm:$0xff]   ;;  %v2337_v10 = vld [vmem:[%s2905_s1 + $0x38] sm:$0xff]   ;;  %s1668_s12 = sshll.u32 %s2921_s19, 1 }
  0x11   : > { %2015 = vmatpush3.bf16.msra.mxu1 %v2330_v2  ;;  %2000 = vmatprep.subr.bf16.mxu0 %v2431_v1  ;;  %s236_s16 = scalar_lea.vmem %s2904_s0, %s2286_s11  ;;  %v2338_v11 = vld [vmem:[%s2905_s1 + $0x8] sm:$0xff]   ;;  %v2339_v15 = vld [vmem:[%s2905_s1 + $0x30] sm:$0xff]   ;;  %v2340_v16 = vld [vmem:[%s2905_s1] sm:$0xff]   ;;  %s242_s15 = sadd.s32 %s1668_s12, %s2923_s18 }
  0x12   : > { %2016 = vmatprep.subr.bf16.mxu1 %v2431_v1  ;;  %2026 = vmatprep.mubr.msk.bf16.mxu1 %vm2432_vm0, %v2431_v1  ;;  %s2534_s17 = scalar_lea.vmem %s236_s16, %s1868_s8  ;;  %v2343_v24 = vld [vmem:[%s2905_s1 + $0x88] sm:$0xff]   ;;  %v2344_v26 = vld [vmem:[%s2905_s1 + $0x80] sm:$0xff]   ;;  %v2345_v27 = vld [vmem:[%s2905_s1 + $0x78] sm:$0xff]   ;;  %s1669_s19 = sshll.u32 %s242_s15, 2 }
  0x13   : > { %v2341_v9 = vld [vmem:[%s2534_s17] ss:$0 sps:$4 sm:$0x77]   ;;  %v2342_v19 = vld [vmem:[%s2534_s17 + $0x4] ss:$0 sps:$4 sm:$0x77]   ;;  %s244_s28 = scalar_lea.vmem %s2909_s5, %s1669_s19 }
  0x14   : > { %2001 = vmatpush3.bf16.msra.mxu0 %v2331_v3  ;;  %v287_v12 = vshll.u32 %v2341_v9, 16  ;;  %v285_v13 = vshrl.u32 %v2341_v9, 16  ;;  %v261_v18 = vld [vmem:[%s2534_s17] sm:$0x3]  ;;  %v456_v20 = vshll.u32 %v2342_v19, 16  ;;  %v454_v21 = vshrl.u32 %v2342_v19, 16 }
  0x15   : > { %2017 = vmatpush3.bf16.msra.mxu1 %v2332_v4  ;;  %2002 = vmatprep.subr.bf16.mxu0 %v2431_v1  ;;  %v2587_v25 = vld [vmem:[%s2534_s17 + $0x4] sm:$0x3]  ;;  %v2346_v28 = vld [vmem:[%s2905_s1 + $0x70] sm:$0xff]   ;;  %v2347_v29 = vld [vmem:[%s2905_s1 + $0x68] sm:$0xff]  }
  0x16   : > { %2018 = vmatprep.subr.bf16.mxu1 %v2431_v1  ;;  %v289_v14 = vrot.slane %v287_v12, 1  ;;  %v458_v22 = vrot.slane %v456_v20, 1  ;;  %v2349_v30 = vld [vmem:[%s2534_s17] ss:$0 sps:$4 sm:$0x66]   ;;  %v2351_v35 = vld [vmem:[%s2905_s1 + $0xb8] sm:$0xff]  }
  0x17   : > { %v2348_v31 = vld [vmem:[%s2905_s1 + $0x60] sm:$0xff]   ;;  %v564_v33 = vrot.slane %v2349_v30, 1  ;;  %v2352_v36 = vld [vmem:[%s2905_s1 + $0xb0] sm:$0xff]   ;;  %v2353_v37 = vld [vmem:[%s2905_s1 + $0xa8] sm:$0xff]  }
  0x18   : > { %2003 = vmatpush3.bf16.msra.mxu0 %v2333_v5  ;;  %v290_v17 = vor.u32 %v289_v14, %v285_v13  ;;  %v2581_v23 = vor.u32 %v458_v22, %v454_v21  ;;  %v2624_v32 = vld [vmem:[%s2534_s17 + $0x4] ss:$0 sps:$4 sm:$0x66]   ;;  %v2355_v39 = vld [vmem:[%s2905_s1 + $0x98] sm:$0xff]   ;;  %v2356_v40 = vld [vmem:[%s2905_s1 + $0x90] sm:$0xff]  }
  0x19   : > { %2019 = vmatpush3.bf16.msra.mxu1 %v2334_v6  ;;  %2004 = vmatprep.subr.bf16.mxu0 %v2431_v1  ;;  %v648_v34 = vrot.slane %v2624_v32, 1  ;;  %v2354_v38 = vld [vmem:[%s2905_s1 + $0xa0] sm:$0xff]   ;;  %v2357_v41 = vld [vmem:[%s2905_s1 + $0xe8] sm:$0xff]   ;;  %v2359_v44 = vld [vmem:[%s2905_s1 + $0xd8] sm:$0xff]  }
  0x1a   : > { %2020 = vmatprep.subr.bf16.mxu1 %v2431_v1  ;;  %v2671_v42 = vld [vmem:[%s2534_s17 + $0x8] sm:$0x3]  ;;  %v2358_v43 = vld [vmem:[%s2905_s1 + $0xe0] sm:$0xff]   ;;  %v2360_v45 = vld [vmem:[%s2905_s1 + $0xd0] sm:$0xff]  }
  0x1b   : > { %v2363_v46 = vld [vmem:[%s2534_s17 + $0x8] ss:$0 sps:$4 sm:$0x77]   ;;  %v2362_v49 = vld [vmem:[%s2905_s1 + $0xc0] sm:$0xff]   ;;  %v2364_v53 = vld [vmem:[%s2905_s1 + $0x118] sm:$0xff]  }
  0x1c   : > { %2005 = vmatpush3.bf16.msra.mxu0 %v2335_v7  ;;  %v2361_v47 = vld [vmem:[%s2905_s1 + $0xc8] sm:$0xff]   ;;  %v928_v48 = vshll.u32 %v2363_v46, 16  ;;  %v926_v50 = vshrl.u32 %v2363_v46, 16  ;;  %v2365_v54 = vld [vmem:[%s2905_s1 + $0x110] sm:$0xff]   ;;  %v2367_v56 = vld [vmem:[%s2905_s1 + $0x100] sm:$0xff]  }
  0x1d   : > { %2021 = vmatpush3.bf16.msra.mxu1 %v2336_v8  ;;  %2006 = vmatprep.subr.bf16.mxu0 %v2431_v1  ;;  %v2366_v55 = vld [vmem:[%s2905_s1 + $0x108] sm:$0xff]   ;;  %v2368_v57 = vld [vmem:[%s2905_s1 + $0xf8] sm:$0xff]   ;;  %v2369_v58 = vld [vmem:[%s2905_s1 + $0xf0] sm:$0xff]  }
  0x1e   : > { %2022 = vmatprep.subr.bf16.mxu1 %v2431_v1  ;;  %v930_v51 = vrot.slane %v928_v48, 1  ;;  %v2748_v59 = vld [vmem:[%s2534_s17 + $0x8] ss:$0 sps:$4 sm:$0x66]   ;;  %v2372_v62 = vld [vmem:[%s2905_s1 + $0x140] sm:$0xff]   ;;  %v2373_v63 = vld [vmem:[%s2905_s1 + $0x138] sm:$0xff]  }
  0x1f   : > { %v1070_v60 = vrot.slane %v2748_v59, 1  ;;  %v2371_v61 = vld [vmem:[%s2905_s1 + $0x148] sm:$0xff]   ;;  %v2382_v12 = vld [vmem:[%s2905_s1 + $0x150] sm:$0xff]   ;;  %v2389_v21 = vld [vmem:[%s2905_s1 + $0x180] sm:$0xff]  }
  0x20   : > { %2007 = vmatpush3.bf16.msra.mxu0 %v2337_v10  ;;  %v2709_v52 = vor.u32 %v930_v51, %v926_v50  ;;  %v2383_v9 = vld [vmem:[%s2534_s17 + $0xc] ss:$0 sps:$4 sm:$0x77]   ;;  %v2387_v19 = vld [vmem:[%s2905_s1 + $0x190] sm:$0xff]  }
  0x21   : > { %2023 = vmatpush3.bf16.msra.mxu1 %v2338_v11  ;;  %2008 = vmatprep.subr.bf16.mxu0 %v2431_v1  ;;  %v1348_v13 = vshrl.u32 %v2383_v9, 16  ;;  %v2388_v20 = vld [vmem:[%s2905_s1 + $0x188] sm:$0xff]  }
  0x22   : > { %2024 = vmatprep.subr.bf16.mxu1 %v2431_v1  ;;  %v2390_v22 = vld [vmem:[%s2534_s17 + $0xc] ss:$0 sps:$4 sm:$0x66]  }
  0x24   : > { %2009 = vmatpush3.bf16.msra.mxu0 %v2339_v15 }
  0x25   : > { %2025 = vmatpush3.bf16.msra.mxu1 %v2340_v16  ;;  %2030 = vmatprep.subr.bf16.mxu0 %v2431_v1 }
  0x26   : > { %2046 = vmatprep.subr.bf16.mxu1 %v2431_v1 }
  0x27   : > { %2011 = vmatmul.mubr.msk.bf16.vlgmr.msra.gmra.mxu0 %vm327_vm1, %v290_v17  ;;  %v2385_v17 = vld [vmem:[%s2905_s1 + $0x1a0] sm:$0xff]  }
  0x28   : > { %2027 = vmatmul.mubr.msk.bf16.vlgmr.msra.gmra.mxu1 %vm327_vm1, %v261_v18  ;;  %2031 = vmatpush3.bf16.msra.mxu0 %v2329_v0  ;;  %v2374_v0 = vld [vmem:[%s2905_s1 + $0x130] sm:$0xff]   ;;  %v2386_v18 = vld [vmem:[%s2905_s1 + $0x198] sm:$0xff]  }
  0x29   : > { %2047 = vmatpush3.bf16.msra.mxu1 %v2330_v2  ;;  %2032 = vmatprep.subr.bf16.mxu0 %v2431_v1  ;;  %v2375_v2 = vld [vmem:[%s2905_s1 + $0x128] sm:$0xff]  }
  0x2a   : > { %2048 = vmatprep.subr.bf16.mxu1 %v2431_v1  ;;  %2042 = vmatprep.mubr.msk.bf16.mxu0 %vm2432_vm0, %v2431_v1 }
  0x2b   : > { %2058 = vmatprep.mubr.msk.bf16.mxu1 %vm2432_vm0, %v2431_v1 }
  0x2c   : > { %2033 = vmatpush3.bf16.msra.mxu0 %v2331_v3  ;;  %v2376_v3 = vld [vmem:[%s2905_s1 + $0x120] sm:$0xff]  }
  0x2d   : > { %2049 = vmatpush3.bf16.msra.mxu1 %v2332_v4  ;;  %2034 = vmatprep.subr.bf16.mxu0 %v2431_v1  ;;  %v2377_v4 = vld [vmem:[%s2905_s1 + $0x178] sm:$0xff]  }
  0x2e   : > { %2050 = vmatprep.subr.bf16.mxu1 %v2431_v1 }
  0x30   : > { %2035 = vmatpush3.bf16.msra.mxu0 %v2333_v5  ;;  %v1810_v5 = vld [vmem:[%s2534_s17 + $0xc] sm:$0x3] }
  0x31   : > { %2051 = vmatpush3.bf16.msra.mxu1 %v2334_v6  ;;  %2036 = vmatprep.subr.bf16.mxu0 %v2431_v1  ;;  %v2378_v6 = vld [vmem:[%s2905_s1 + $0x170] sm:$0xff]  }
  0x32   : > { %2052 = vmatprep.subr.bf16.mxu1 %v2431_v1 }
  0x34   : > { %2037 = vmatpush3.bf16.msra.mxu0 %v2335_v7  ;;  %v2379_v7 = vld [vmem:[%s2905_s1 + $0x168] sm:$0xff]  }
  0x35   : > { %2053 = vmatpush3.bf16.msra.mxu1 %v2336_v8  ;;  %2038 = vmatprep.subr.bf16.mxu0 %v2431_v1  ;;  %v2380_v8 = vld [vmem:[%s2905_s1 + $0x160] sm:$0xff]  }
  0x36   : > { %2054 = vmatprep.subr.bf16.mxu1 %v2431_v1 }
  0x38   : > { %2039 = vmatpush3.bf16.msra.mxu0 %v2337_v10  ;;  %v2381_v10 = vld [vmem:[%s2905_s1 + $0x158] sm:$0xff]  }
  0x39   : > { %2055 = vmatpush3.bf16.msra.mxu1 %v2338_v11  ;;  %2040 = vmatprep.subr.bf16.mxu0 %v2431_v1  ;;  %v1350_v11 = vshll.u32 %v2383_v9, 16 }
  0x3a   : > { %2056 = vmatprep.subr.bf16.mxu1 %v2431_v1 }
  0x3b   : > { %v1352_v14 = vrot.slane %v1350_v11, 1 }
  0x3c   : > { %2041 = vmatpush3.bf16.msra.mxu0 %v2339_v15 }
  0x3d   : > { %2057 = vmatpush3.bf16.msra.mxu1 %v2340_v16  ;;  %2062 = vmatprep.subr.bf16.mxu0 %v2431_v1  ;;  %v1353_v15 = vor.u32 %v1352_v14, %v1348_v13  ;;  %v2384_v16 = vld [vmem:[%s2905_s1 + $0x1a8] sm:$0xff]  }
  0x3e   : > { %2078 = vmatprep.subr.bf16.mxu1 %v2431_v1 }
  0x3f   : > { %2043 = vmatmul.mubr.msk.bf16.vlgmr.msra.gmra.mxu0 %vm327_vm1, %v2581_v23 }
  0x40   : > { %2059 = vmatmul.mubr.msk.bf16.vlgmr.msra.gmra.mxu1 %vm327_vm1, %v2587_v25  ;;  %2063 = vmatpush3.bf16.msra.mxu0 %v2343_v24 }
  0x41   : > { %2079 = vmatpush3.bf16.msra.mxu1 %v2343_v24  ;;  %2064 = vmatprep.subr.bf16.mxu0 %v2431_v1 }
  0x42   : > { %2080 = vmatprep.subr.bf16.mxu1 %v2431_v1  ;;  %2074 = vmatprep.mubr.msk.bf16.mxu0 %vm2432_vm0, %v2431_v1 }
  0x43   : > { %2090 = vmatprep.mubr.msk.bf16.mxu1 %vm2432_vm0, %v2431_v1 }
  0x44   : > { %2065 = vmatpush3.bf16.msra.mxu0 %v2344_v26 }
  0x45   : > { %2081 = vmatpush3.bf16.msra.mxu1 %v2344_v26  ;;  %2066 = vmatprep.subr.bf16.mxu0 %v2431_v1 }
  0x46   : > { %2082 = vmatprep.subr.bf16.mxu1 %v2431_v1 }
  0x48   : > { %2067 = vmatpush3.bf16.msra.mxu0 %v2345_v27 }
  0x49   : > { %2083 = vmatpush3.bf16.msra.mxu1 %v2345_v27  ;;  %2068 = vmatprep.subr.bf16.mxu0 %v2431_v1 }
  0x4a   : > { %2084 = vmatprep.subr.bf16.mxu1 %v2431_v1 }
  0x4c   : > { %2069 = vmatpush3.bf16.msra.mxu0 %v2346_v28 }
  0x4d   : > { %2085 = vmatpush3.bf16.msra.mxu1 %v2346_v28  ;;  %2070 = vmatprep.subr.bf16.mxu0 %v2431_v1 }
  0x4e   : > { %2086 = vmatprep.subr.bf16.mxu1 %v2431_v1 }
  0x50   : > { %2071 = vmatpush3.bf16.msra.mxu0 %v2347_v29 }
  0x51   : > { %2087 = vmatpush3.bf16.msra.mxu1 %v2347_v29  ;;  %2072 = vmatprep.subr.bf16.mxu0 %v2431_v1 }
  0x52   : > { %2088 = vmatprep.subr.bf16.mxu1 %v2431_v1 }
  0x54   : > { %2073 = vmatpush3.bf16.msra.mxu0 %v2348_v31 }
  0x55   : > { %2089 = vmatpush3.bf16.msra.mxu1 %v2348_v31  ;;  %2094 = vmatprep.subr.bf16.mxu0 %v2431_v1 }
  0x56   : > { %2110 = vmatprep.subr.bf16.mxu1 %v2431_v1 }
  0x57   : > { %2075 = vmatmul.mubr.msk.bf16.vlgmr.msra.gmra.mxu0 %vm327_vm1, %v564_v33 }
  0x58   : > { %2091 = vmatmul.mubr.msk.bf16.vlgmr.msra.gmra.mxu1 %vm327_vm1, %v648_v34  ;;  %2095 = vmatpush3.bf16.msra.mxu0 %v2351_v35 }
  0x59   : > { %2111 = vmatpush3.bf16.msra.mxu1 %v2351_v35  ;;  %2096 = vmatprep.subr.bf16.mxu0 %v2431_v1 }
  0x5a   : > { %2112 = vmatprep.subr.bf16.mxu1 %v2431_v1  ;;  %2106 = vmatprep.mubr.msk.bf16.mxu0 %vm2432_vm0, %v2431_v1 }
  0x5b   : > { %2122 = vmatprep.mubr.msk.bf16.mxu1 %vm2432_vm0, %v2431_v1 }
  0x5c   : > { %2097 = vmatpush3.bf16.msra.mxu0 %v2352_v36 }
  0x5d   : > { %2113 = vmatpush3.bf16.msra.mxu1 %v2352_v36  ;;  %2098 = vmatprep.subr.bf16.mxu0 %v2431_v1 }
  0x5e   : > { %2114 = vmatprep.subr.bf16.mxu1 %v2431_v1 }
  0x60   : > { %2099 = vmatpush3.bf16.msra.mxu0 %v2353_v37 }
  0x61   : > { %2115 = vmatpush3.bf16.msra.mxu1 %v2353_v37  ;;  %2100 = vmatprep.subr.bf16.mxu0 %v2431_v1 }
  0x62   : > { %2116 = vmatprep.subr.bf16.mxu1 %v2431_v1 }
  0x64   : > { %2101 = vmatpush3.bf16.msra.mxu0 %v2354_v38 }
  0x65   : > { %2117 = vmatpush3.bf16.msra.mxu1 %v2354_v38  ;;  %2102 = vmatprep.subr.bf16.mxu0 %v2431_v1 }
  0x66   : > { %2118 = vmatprep.subr.bf16.mxu1 %v2431_v1 }
  0x68   : > { %2103 = vmatpush3.bf16.msra.mxu0 %v2355_v39 }
  0x69   : > { %2119 = vmatpush3.bf16.msra.mxu1 %v2355_v39  ;;  %2104 = vmatprep.subr.bf16.mxu0 %v2431_v1 }
  0x6a   : > { %2120 = vmatprep.subr.bf16.mxu1 %v2431_v1 }
  0x6c   : > { %2105 = vmatpush3.bf16.msra.mxu0 %v2356_v40 }
  0x6d   : > { %2121 = vmatpush3.bf16.msra.mxu1 %v2356_v40  ;;  %2126 = vmatprep.subr.bf16.mxu0 %v2431_v1 }
  0x6e   : > { %2142 = vmatprep.subr.bf16.mxu1 %v2431_v1 }
  0x6f   : > { %2107 = vmatmul.mubr.msk.bf16.vlgmr.msra.gmra.mxu0 %vm327_vm1, %v2587_v25 }
  0x70   : > { %2123 = vmatmul.mubr.msk.bf16.vlgmr.msra.gmra.mxu1 %vm327_vm1, %v2671_v42  ;;  %2127 = vmatpush3.bf16.msra.mxu0 %v2357_v41 }
  0x71   : > { %2143 = vmatpush3.bf16.msra.mxu1 %v2357_v41  ;;  %2128 = vmatprep.subr.bf16.mxu0 %v2431_v1 }
  0x72   : > { %2144 = vmatprep.subr.bf16.mxu1 %v2431_v1  ;;  %2138 = vmatprep.mubr.msk.bf16.mxu0 %vm2432_vm0, %v2431_v1 }
  0x73   : > { %2154 = vmatprep.mubr.msk.bf16.mxu1 %vm2432_vm0, %v2431_v1 }
  0x74   : > { %2129 = vmatpush3.bf16.msra.mxu0 %v2358_v43 }
  0x75   : > { %2145 = vmatpush3.bf16.msra.mxu1 %v2358_v43  ;;  %2130 = vmatprep.subr.bf16.mxu0 %v2431_v1 }
  0x76   : > { %2146 = vmatprep.subr.bf16.mxu1 %v2431_v1 }
  0x78   : > { %2131 = vmatpush3.bf16.msra.mxu0 %v2359_v44 }
  0x79   : > { %2147 = vmatpush3.bf16.msra.mxu1 %v2359_v44  ;;  %2132 = vmatprep.subr.bf16.mxu0 %v2431_v1 }
  0x7a   : > { %2148 = vmatprep.subr.bf16.mxu1 %v2431_v1 }
  0x7c   : > { %2133 = vmatpush3.bf16.msra.mxu0 %v2360_v45 }
  0x7d   : > { %2149 = vmatpush3.bf16.msra.mxu1 %v2360_v45  ;;  %2134 = vmatprep.subr.bf16.mxu0 %v2431_v1 }
  0x7e   : > { %2150 = vmatprep.subr.bf16.mxu1 %v2431_v1 }
  0x80   : > { %2135 = vmatpush3.bf16.msra.mxu0 %v2361_v47 }
  0x81   : > { %2151 = vmatpush3.bf16.msra.mxu1 %v2361_v47  ;;  %2136 = vmatprep.subr.bf16.mxu0 %v2431_v1 }
  0x82   : > { %2152 = vmatprep.subr.bf16.mxu1 %v2431_v1 }
  0x84   : > { %2137 = vmatpush3.bf16.msra.mxu0 %v2362_v49 }
  0x85   : > { %2153 = vmatpush3.bf16.msra.mxu1 %v2362_v49  ;;  %2158 = vmatprep.subr.bf16.mxu0 %v2431_v1 }
  0x86   : > { %2174 = vmatprep.subr.bf16.mxu1 %v2431_v1 }
  0x87   : > { %2139 = vmatmul.mubr.msk.bf16.vlgmr.msra.gmra.mxu0 %vm327_vm1, %v2581_v23  ;;  %v1492_v23 = vrot.slane %v2390_v22, 1 }
  0x88   : > { %2155 = vmatmul.mubr.msk.bf16.vlgmr.msra.gmra.mxu1 %vm327_vm1, %v2709_v52  ;;  %2159 = vmatpush3.bf16.msra.mxu0 %v2364_v53 }
  0x89   : > { %2175 = vmatpush3.bf16.msra.mxu1 %v2364_v53  ;;  %2160 = vmatprep.subr.bf16.mxu0 %v2431_v1 }
  0x8a   : > { %2176 = vmatprep.subr.bf16.mxu1 %v2431_v1  ;;  %2170 = vmatprep.mubr.msk.bf16.mxu0 %vm2432_vm0, %v2431_v1 }
  0x8b   : > { %2186 = vmatprep.mubr.msk.bf16.mxu1 %vm2432_vm0, %v2431_v1 }
  0x8c   : > { %2161 = vmatpush3.bf16.msra.mxu0 %v2365_v54 }
  0x8d   : > { %2177 = vmatpush3.bf16.msra.mxu1 %v2365_v54  ;;  %2162 = vmatprep.subr.bf16.mxu0 %v2431_v1 }
  0x8e   : > { %2178 = vmatprep.subr.bf16.mxu1 %v2431_v1 }
  0x90   : > { %2163 = vmatpush3.bf16.msra.mxu0 %v2366_v55 }
  0x91   : > { %2179 = vmatpush3.bf16.msra.mxu1 %v2366_v55  ;;  %2164 = vmatprep.subr.bf16.mxu0 %v2431_v1 }
  0x92   : > { %2180 = vmatprep.subr.bf16.mxu1 %v2431_v1 }
  0x94   : > { %2165 = vmatpush3.bf16.msra.mxu0 %v2367_v56 }
  0x95   : > { %2181 = vmatpush3.bf16.msra.mxu1 %v2367_v56  ;;  %2166 = vmatprep.subr.bf16.mxu0 %v2431_v1 }
  0x96   : > { %2182 = vmatprep.subr.bf16.mxu1 %v2431_v1 }
  0x98   : > { %2167 = vmatpush3.bf16.msra.mxu0 %v2368_v57 }
  0x99   : > { %2183 = vmatpush3.bf16.msra.mxu1 %v2368_v57  ;;  %2168 = vmatprep.subr.bf16.mxu0 %v2431_v1 }
  0x9a   : > { %2184 = vmatprep.subr.bf16.mxu1 %v2431_v1 }
  0x9c   : > { %2169 = vmatpush3.bf16.msra.mxu0 %v2369_v58 }
  0x9d   : > { %2185 = vmatpush3.bf16.msra.mxu1 %v2369_v58  ;;  %2190 = vmatprep.subr.bf16.mxu0 %v2431_v1 }
  0x9e   : > { %2206 = vmatprep.subr.bf16.mxu1 %v2431_v1 }
  0x9f   : > { %2171 = vmatmul.mubr.msk.bf16.vlgmr.msra.gmra.mxu0 %vm327_vm1, %v648_v34 }
  0xa0   : > { %2187 = vmatmul.mubr.msk.bf16.vlgmr.msra.gmra.mxu1 %vm327_vm1, %v1070_v60  ;;  %2191 = vmatpush3.bf16.msra.mxu0 %v2371_v61 }
  0xa1   : > { %2207 = vmatpush3.bf16.msra.mxu1 %v2371_v61  ;;  %2192 = vmatprep.subr.bf16.mxu0 %v2431_v1 }
  0xa2   : > { %2208 = vmatprep.subr.bf16.mxu1 %v2431_v1  ;;  %2202 = vmatprep.mubr.msk.bf16.mxu0 %vm2432_vm0, %v2431_v1 }
  0xa3   : > { %2218 = vmatprep.mubr.msk.bf16.mxu1 %vm2432_vm0, %v2431_v1 }
  0xa4   : > { %2193 = vmatpush3.bf16.msra.mxu0 %v2372_v62 }
  0xa5   : > { %2209 = vmatpush3.bf16.msra.mxu1 %v2372_v62  ;;  %2194 = vmatprep.subr.bf16.mxu0 %v2431_v1 }
  0xa6   : > { %2210 = vmatprep.subr.bf16.mxu1 %v2431_v1 }
  0xa8   : > { %2195 = vmatpush3.bf16.msra.mxu0 %v2373_v63 }
  0xa9   : > { %2211 = vmatpush3.bf16.msra.mxu1 %v2373_v63  ;;  %2196 = vmatprep.subr.bf16.mxu0 %v2431_v1 }
  0xaa   : > { %2212 = vmatprep.subr.bf16.mxu1 %v2431_v1 }
  0xac   : > { %2197 = vmatpush3.bf16.msra.mxu0 %v2374_v0 }
  0xad   : > { %2213 = vmatpush3.bf16.msra.mxu1 %v2374_v0  ;;  %2198 = vmatprep.subr.bf16.mxu0 %v2431_v1 }
  0xae   : > { %2214 = vmatprep.subr.bf16.mxu1 %v2431_v1 }
  0xb0   : > { %2199 = vmatpush3.bf16.msra.mxu0 %v2375_v2 }
  0xb1   : > { %2215 = vmatpush3.bf16.msra.mxu1 %v2375_v2  ;;  %2200 = vmatprep.subr.bf16.mxu0 %v2431_v1 }
  0xb2   : > { %2216 = vmatprep.subr.bf16.mxu1 %v2431_v1 }
  0xb4   : > { %2201 = vmatpush3.bf16.msra.mxu0 %v2376_v3 }
  0xb5   : > { %2217 = vmatpush3.bf16.msra.mxu1 %v2376_v3  ;;  %2222 = vmatprep.subr.bf16.mxu0 %v2431_v1 }
  0xb6   : > { %2238 = vmatprep.subr.bf16.mxu1 %v2431_v1 }
  0xb7   : > { %2203 = vmatmul.mubr.msk.bf16.vlgmr.msra.gmra.mxu0 %vm327_vm1, %v2671_v42 }
  0xb8   : > { %2219 = vmatmul.mubr.msk.bf16.vlgmr.msra.gmra.mxu1 %vm327_vm1, %v1810_v5  ;;  %2223 = vmatpush3.bf16.msra.mxu0 %v2377_v4 }
  0xb9   : > { %2239 = vmatpush3.bf16.msra.mxu1 %v2377_v4  ;;  %2224 = vmatprep.subr.bf16.mxu0 %v2431_v1 }
  0xba   : > { %2240 = vmatprep.subr.bf16.mxu1 %v2431_v1  ;;  %2234 = vmatprep.mubr.msk.bf16.mxu0 %vm2432_vm0, %v2431_v1 }
  0xbb   : > { %2250 = vmatprep.mubr.msk.bf16.mxu1 %vm2432_vm0, %v2431_v1 }
  0xbc   : > { %2225 = vmatpush3.bf16.msra.mxu0 %v2378_v6 }
  0xbd   : > { %2241 = vmatpush3.bf16.msra.mxu1 %v2378_v6  ;;  %2226 = vmatprep.subr.bf16.mxu0 %v2431_v1 }
  0xbe   : > { %2242 = vmatprep.subr.bf16.mxu1 %v2431_v1 }
  0xc0   : > { %2227 = vmatpush3.bf16.msra.mxu0 %v2379_v7 }
  0xc1   : > { %2243 = vmatpush3.bf16.msra.mxu1 %v2379_v7  ;;  %2228 = vmatprep.subr.bf16.mxu0 %v2431_v1 }
  0xc2   : > { %2244 = vmatprep.subr.bf16.mxu1 %v2431_v1 }
  0xc4   : > { %2229 = vmatpush3.bf16.msra.mxu0 %v2380_v8 }
  0xc5   : > { %2245 = vmatpush3.bf16.msra.mxu1 %v2380_v8  ;;  %2230 = vmatprep.subr.bf16.mxu0 %v2431_v1 }
  0xc6   : > { %2246 = vmatprep.subr.bf16.mxu1 %v2431_v1 }
  0xc8   : > { %2231 = vmatpush3.bf16.msra.mxu0 %v2381_v10 }
  0xc9   : > { %2247 = vmatpush3.bf16.msra.mxu1 %v2381_v10  ;;  %2232 = vmatprep.subr.bf16.mxu0 %v2431_v1 }
  0xca   : > { %2248 = vmatprep.subr.bf16.mxu1 %v2431_v1 }
  0xcc   : > { %2233 = vmatpush3.bf16.msra.mxu0 %v2382_v12 }
  0xcd   : > { %2249 = vmatpush3.bf16.msra.mxu1 %v2382_v12  ;;  %2254 = vmatprep.subr.bf16.mxu0 %v2431_v1 }
  0xce   : > { %2270 = vmatprep.subr.bf16.mxu1 %v2431_v1 }
  0xcf   : > { %2235 = vmatmul.mubr.msk.bf16.vlgmr.msra.gmra.mxu0 %vm327_vm1, %v2709_v52 }
  0xd0   : > { %2251 = vmatmul.mubr.msk.bf16.vlgmr.msra.gmra.mxu1 %vm327_vm1, %v1353_v15  ;;  %2255 = vmatpush3.bf16.msra.mxu0 %v2384_v16 }
  0xd1   : > { %2271 = vmatpush3.bf16.msra.mxu1 %v2384_v16  ;;  %2256 = vmatprep.subr.bf16.mxu0 %v2431_v1 }
  0xd2   : > { %2272 = vmatprep.subr.bf16.mxu1 %v2431_v1  ;;  %2266 = vmatprep.mubr.msk.bf16.mxu0 %vm2432_vm0, %v2431_v1 }
  0xd3   : > { %2282 = vmatprep.mubr.msk.bf16.mxu1 %vm2432_vm0, %v2431_v1 }
  0xd4   : > { %2257 = vmatpush3.bf16.msra.mxu0 %v2385_v17 }
  0xd5   : > { %2273 = vmatpush3.bf16.msra.mxu1 %v2385_v17  ;;  %2258 = vmatprep.subr.bf16.mxu0 %v2431_v1 }
  0xd6   : > { %2274 = vmatprep.subr.bf16.mxu1 %v2431_v1 }
  0xd8   : > { %2259 = vmatpush3.bf16.msra.mxu0 %v2386_v18 }
  0xd9   : > { %2275 = vmatpush3.bf16.msra.mxu1 %v2386_v18  ;;  %2260 = vmatprep.subr.bf16.mxu0 %v2431_v1 }
  0xda   : > { %2276 = vmatprep.subr.bf16.mxu1 %v2431_v1 }
  0xdc   : > { %2261 = vmatpush3.bf16.msra.mxu0 %v2387_v19 }
  0xdd   : > { %2277 = vmatpush3.bf16.msra.mxu1 %v2387_v19  ;;  %2262 = vmatprep.subr.bf16.mxu0 %v2431_v1 }
  0xde   : > { %2278 = vmatprep.subr.bf16.mxu1 %v2431_v1 }
  0xe0   : > { %2263 = vmatpush3.bf16.msra.mxu0 %v2388_v20 }
  0xe1   : > { %2279 = vmatpush3.bf16.msra.mxu1 %v2388_v20  ;;  %2264 = vmatprep.subr.bf16.mxu0 %v2431_v1 }
  0xe2   : > { %2280 = vmatprep.subr.bf16.mxu1 %v2431_v1 }
  0xe4   : > { %2265 = vmatpush3.bf16.msra.mxu0 %v2389_v21 }
  0xe5   : > { %2281 = vmatpush3.bf16.msra.mxu1 %v2389_v21 }
  0xe7   : > { %v365_v24 = vpop.f32.mrf.mxu0  ;;  %2267 = vmatmul.mubr.msk.bf16.vlgmr.msra.gmra.mxu0 %vm327_vm1, %v1070_v60 }
  0xe8   : > { %v444_v25 = vpop.f32.mrf.mxu1  ;;  %2283 = vmatmul.mubr.msk.bf16.vlgmr.msra.gmra.mxu1 %vm327_vm1, %v1492_v23 }
  0xe9   : > { %v445_v26 = vadd.f32 %v444_v25, %v365_v24  ;;  %v2012_v27 = vpop.f32.mrf.mxu0 }
  0xea   : > { %v2028_v28 = vpop.f32.mrf.mxu1 }
  0xeb   : > { %v368_v29 = vpop.f32.mrf.mxu0 }
  0xec   : > { %v447_v30 = vpop.f32.mrf.mxu1 }
  0xed   : > { %v2013_v31 = vpop.f32.mrf.mxu0 }
  0xee   : > { %v2029_v32 = vpop.f32.mrf.mxu1 }
  0xff   : > { %v497_v33 = vpop.f32.mrf.mxu0 }
 0x100   : > { %v540_v1 = vpop.f32.mrf.mxu1 }
 0x101   : > { %v541_v34 = vadd.f32 %v540_v1, %v497_v33  ;;  %v2044_v35 = vpop.f32.mrf.mxu0 }
 0x102   : > { %v2060_v36 = vpop.f32.mrf.mxu1 }
 0x103   : > { %v500_v37 = vpop.f32.mrf.mxu0 }
 0x104   : > { %v543_v38 = vpop.f32.mrf.mxu1 }
 0x105   : > { %v2045_v39 = vpop.f32.mrf.mxu0  ;;  %v1863_v38 = vld [vmem:[%s2906_s2] ss:$0 sm:$0xff] }
 0x106   : > { %v2061_v40 = vpop.f32.mrf.mxu1 }
 0x117   : > { %v638_v41 = vpop.f32.mrf.mxu0 }
 0x118   : > { %v644_v42 = vadd.f32 %v638_v41, %v445_v26  ;;  %v686_v43 = vpop.f32.mrf.mxu1 }
 0x119   : > { %v692_v44 = vadd.f32 %v686_v43, %v541_v34  ;;  %v2076_v45 = vpop.f32.mrf.mxu0 }
 0x11a   : > { %v2092_v46 = vpop.f32.mrf.mxu1  ;;  %v1864_v45 = vld [vmem:[%s2907_s3] ss:$0 sm:$0xff] }
 0x11b   : > { %v641_v47 = vpop.f32.mrf.mxu0 }
 0x11c   : > { %v689_v48 = vpop.f32.mrf.mxu1 }
 0x11d   : > { %v2077_v49 = vpop.f32.mrf.mxu0 }
 0x11e   : > { %v2093_v50 = vpop.f32.mrf.mxu1 }
 0x11f   : > { %v1865_v50 = vld [vmem:[%s2908_s4] ss:$0 sm:$0xff] }
 0x12f   : > { %v780_v51 = vpop.f32.mrf.mxu0 }
 0x130   : > { %v786_v52 = vadd.f32 %v780_v51, %v644_v42  ;;  %v824_v53 = vpop.f32.mrf.mxu1 }
 0x131   : > { %v830_v54 = vadd.f32 %v824_v53, %v692_v44  ;;  %v2108_v55 = vpop.f32.mrf.mxu0 }
 0x132   : > { %v2124_v56 = vpop.f32.mrf.mxu1 }
 0x133   : > { %v783_v57 = vpop.f32.mrf.mxu0 }
 0x134   : > { %v827_v58 = vpop.f32.mrf.mxu1 }
 0x135   : > { %v2109_v59 = vpop.f32.mrf.mxu0 }
 0x136   : > { %v2125_v60 = vpop.f32.mrf.mxu1 }
 0x147   : > { %v915_v61 = vpop.f32.mrf.mxu0 }
 0x148   : > { %v921_v62 = vadd.f32 %v915_v61, %v786_v52  ;;  %v969_v63 = vpop.f32.mrf.mxu1 }
 0x149   : > { %v975_v0 = vadd.f32 %v969_v63, %v830_v54  ;;  %v2140_v2 = vpop.f32.mrf.mxu0 }
 0x14a   : > { %v2156_v3 = vpop.f32.mrf.mxu1 }
 0x14b   : > { %v918_v4 = vpop.f32.mrf.mxu0 }
 0x14c   : > { %v972_v5 = vpop.f32.mrf.mxu1 }
 0x14d   : > { %v2141_v6 = vpop.f32.mrf.mxu0 }
 0x14e   : > { %v2157_v7 = vpop.f32.mrf.mxu1 }
 0x15f   : > { %v1060_v8 = vpop.f32.mrf.mxu0 }
 0x160   : > { %v1066_v9 = vadd.f32 %v1060_v8, %v921_v62  ;;  %v1108_v10 = vpop.f32.mrf.mxu1 }
 0x161   : > { %v1114_v11 = vadd.f32 %v1108_v10, %v975_v0  ;;  %v2172_v12 = vpop.f32.mrf.mxu0 }
 0x162   : > { %v2188_v13 = vpop.f32.mrf.mxu1 }
 0x163   : > { %v1063_v14 = vpop.f32.mrf.mxu0 }
 0x164   : > { %v1111_v15 = vpop.f32.mrf.mxu1 }
 0x165   : > { %v2173_v16 = vpop.f32.mrf.mxu0 }
 0x166   : > { %v2189_v17 = vpop.f32.mrf.mxu1 }
 0x177   : > { %v1202_v18 = vpop.f32.mrf.mxu0 }
 0x178   : > { %v1246_v19 = vpop.f32.mrf.mxu1  ;;  %v1208_v1 = vadd.f32 %v1202_v18, %v1066_v9 }
 0x179   : > { %v2204_v20 = vpop.f32.mrf.mxu0  ;;  %v1252_v34 = vadd.f32 %v1246_v19, %v1114_v11 }
 0x17a   : > { %v2220_v21 = vpop.f32.mrf.mxu1 }
 0x17b   : > { %v1205_v22 = vpop.f32.mrf.mxu0 }
 0x17c   : > { %v1249_v23 = vpop.f32.mrf.mxu1 }
 0x17d   : > { %v2205_v24 = vpop.f32.mrf.mxu0 }
 0x17e   : > { %v2221_v25 = vpop.f32.mrf.mxu1 }
 0x18f   : > { %v1337_v26 = vpop.f32.mrf.mxu0 }
 0x190   : > { %v1391_v27 = vpop.f32.mrf.mxu1  ;;  %v1343_v35 = vadd.f32 %v1337_v26, %v1208_v1 }
 0x191   : > { %v2236_v28 = vpop.f32.mrf.mxu0  ;;  %v1397_v36 = vadd.f32 %v1391_v27, %v1252_v34 }
 0x192   : > { %v2252_v29 = vpop.f32.mrf.mxu1 }
 0x193   : > { %v1340_v30 = vpop.f32.mrf.mxu0 }
 0x194   : > { %v1394_v31 = vpop.f32.mrf.mxu1 }
 0x195   : > { %v2237_v32 = vpop.f32.mrf.mxu0 }
 0x196   : > { %v2253_v33 = vpop.f32.mrf.mxu1 }
 0x1a7   : > { %v1482_v37 = vpop.f32.mrf.mxu0 }
 0x1a8   : > { %v1488_v39 = vadd.f32 %v1482_v37, %v1343_v35  ;;  %v1530_v40 = vpop.f32.mrf.mxu1 }
 0x1a9   : > { %v1536_v41 = vadd.f32 %v1530_v40, %v1397_v36  ;;  %v2268_v42 = vpop.f32.mrf.mxu0 }
 0x1aa   : > { %v1546_v43 = vadd.f32 %v1863_v38, %v1488_v39  ;;  %v2284_v44 = vpop.f32.mrf.mxu1 }
 0x1ab   : > { %v1562_v46 = vadd.f32 %v1863_v38, %v1536_v41  ;;  %v1485_v47 = vpop.f32.mrf.mxu0 }
 0x1ac   : > { %v1547_v48 = vmax.f32 %v1546_v43, 0.0  ;;  %v1533_v49 = vpop.f32.mrf.mxu1 }
 0x1ad   : > { %v1563_v51 = vmax.f32 %v1562_v46, 0.0  ;;  %v2269_v52 = vpop.f32.mrf.mxu0 }
 0x1ae   : > { %v1554_v53 = vmul.f32 %v1864_v45, %v1547_v48  ;;  %v2285_v54 = vpop.f32.mrf.mxu1 }
 0x1af   : > { %v1564_v55 = vmul.f32 %v1864_v45, %v1563_v51 }
 0x1b0   : > { %v1561_v56 = vadd.f32 %v1865_v50, %v1554_v53 }
 0x1b1   : > { %v1565_v57 = vadd.f32 %v1865_v50, %v1564_v55 }
 0x1b3   : > { %v1566_v58 = vmax.f32 %v1561_v56, %v1565_v57 }
 0x1b5   : > { %1567 = vst [vmem:[%s244_s28] sm:$0xf] %v1566_v58 }
 0x1b6 PF: > { %s15_s22 = sadd.s32 1, %s2429_s22   ;;  %s2910_s18 = smov %s2421_s20 }
 0x1b7   : > { %p12_p7 = scmp.ge.s32.totalorder %s15_s22, 6   ;;  %s2911_s19 = smov %s2425_s21 }
 0x1b8   : > { %s2912_s20 = smov %s2915_s23  ;;  %s2913_s21 = smov %s2919_s24 }
 0x1b9   :  { %14 = sbr.rel (!%p12_p7) target bundleno = 3 (0x3), region = 82 }

// kernel: cnn3d_forward.7
= control target key start
LH: loop header
LB: loop body
LE: loop exit
PB: predicated region body
PF: predicated region fallthrough
CT: control target
= control target key end

     0   :  { %10 = vsyncpa [#allocation4], 0  ;;  %s708_s18 = smov 0   ;;  %s806_s0 = inlined_call_operand.vmem [shape: bf16[2,256], index: 0, kind: input, shape index: {}]   ;;  %s807_s1 = inlined_call_operand.vmem [shape: bf16[256,128], index: 1, kind: input, shape index: {}]   ;;  %s808_s2 = inlined_call_operand.vmem [shape: f32[1,128], index: 2, kind: input, shape index: {}]   ;;  %s809_s3 = inlined_call_operand.vmem [shape: f32[128,2], index: 3, kind: input, shape index: {}]   ;;  %s810_s4 = inlined_call_operand.vmem [shape: f32[1,2], index: 4, kind: input, shape index: {}]   ;;  %s811_s5 = inlined_call_operand.hbm [shape: f32[2,2], index: 5, kind: output, shape index: {}]  }
   0x1 LB: > { %s714_s19 = sadd.s32 4294967295, %s670_s18   ;;  %p508_p0 = scmp.ge.s32.totalorder %s670_s18, 1  ;;  %s670_s18 = sphi %s708_s18, %s16_s18  }
   0x2   : > { %p192_p1 = scmp.lt.s32.totalorder %s670_s18, 3 }
   0x4   : > { %p193_p2 = pnand %p508_p0, %p192_p1 }
   0x5   : > { %p218_p3 = scmp.lt.s32.totalorder (!%p193_p2), %s714_s19, 1  ;;  %s509_s20 = sshll.u32 (!%p193_p2), %s714_s19, 4 }
   0x6   : > { %196 = sbr.rel (%p193_p2) target bundleno = 495 (0x1ef), region = 40  ;;  %p222_p4 = scmp.lt.s32.totalorder (!%p193_p2), %s509_s20, 31 }
   0x7   : > { %p511_p5 = scmp.ne.s32.totalorder (!%p193_p2), %s714_s19, 0 }
   0xb   : > { %s721_s21 = scalar_select %p218_p3, %s714_s19, 1 }
   0xc   : > { %s813_s20 = smov (!%p222_p4, %s509_s20), 31  ;;  %231 = sbr.rel (%p511_p5) target bundleno = 19 (0x13), region = 44 }
   0xd   : > { %s220_s24 = scalar_lea.vmem %s806_s0, %s721_s21  ;;  %s510_s25 = sshll.u32 %s813_s20, 2 }
   0xe   : > { %s225_s28 = scalar_lea.vmem %s807_s1, %s510_s25 }
  0x11   : > { %v672_v0 = vmov 0.0  }
  0x12   : > { %232 = vst [vmem:[#allocation2] sm:$0x3] %v672_v0 }
  0x13 PF: > { %v628_v1 = vld [vmem:[%s225_s28 + $0x38] sm:$0xff]   ;;  %v673_v2 = vmov 0.0   ;;  %v629_v3 = vld [vmem:[%s225_s28 + $0x30] sm:$0xff]   ;;  %vm674_vm0 = vmmov 0   ;;  %v630_v4 = vld [vmem:[%s225_s28 + $0x28] sm:$0xff]   ;;  %p520_p6 = scmp.ne.s32.totalorder %s714_s19, 1 }
  0x14   : > { %553 = vmatprep.subr.bf16.mxu0 %v673_v2  ;;  %569 = vmatprep.mubr.msk.bf16.mxu0 %vm674_vm0, %v673_v2  ;;  %v631_v5 = vld [vmem:[%s225_s28 + $0x20] sm:$0xff]   ;;  %v632_v6 = vld [vmem:[%s225_s28 + $0x18] sm:$0xff]   ;;  %v633_v7 = vld [vmem:[%s225_s28 + $0x10] sm:$0xff]  }
  0x15   : > { %554 = vmatpush3.bf16.msra.mxu0 %v628_v1  ;;  %v634_v8 = vld [vmem:[%s225_s28 + $0x8] sm:$0xff]   ;;  %v635_v9 = vld [vmem:[%s225_s28] sm:$0xff]  }
  0x16   : > { %555 = vmatprep.subr.bf16.mxu0 %v673_v2  ;;  %v234_v10 = vld [vmem:[%s220_s24] sm:$0x1] }
  0x19   : > { %556 = vmatpush3.bf16.msra.mxu0 %v629_v3  ;;  %v233_v11 = vld [vmem:[#allocation2] sm:$0x3] }
  0x1a   : > { %557 = vmatprep.subr.bf16.mxu0 %v673_v2 }
  0x1d   : > { %558 = vmatpush3.bf16.msra.mxu0 %v630_v4 }
  0x1e   : > { %559 = vmatprep.subr.bf16.mxu0 %v673_v2 }
  0x21   : > { %560 = vmatpush3.bf16.msra.mxu0 %v631_v5 }
  0x22   : > { %561 = vmatprep.subr.bf16.mxu0 %v673_v2 }
  0x25   : > { %562 = vmatpush3.bf16.msra.mxu0 %v632_v6 }
  0x26   : > { %563 = vmatprep.subr.bf16.mxu0 %v673_v2 }
  0x29   : > { %564 = vmatpush3.bf16.msra.mxu0 %v633_v7 }
  0x2a   : > { %565 = vmatprep.subr.bf16.mxu0 %v673_v2 }
  0x2d   : > { %566 = vmatpush3.bf16.msra.mxu0 %v634_v8 }
  0x2e   : > { %567 = vmatprep.subr.bf16.mxu0 %v673_v2 }
  0x31   : > { %568 = vmatpush3.bf16.msra.mxu0 %v635_v9 }
  0x34   : > { %570 = vmatmul.mubr.bf16.vlgmr.msra.gmra.mxu0 %v234_v10 }
  0xf4   : > { %v333_v12 = vpop.f32.mrf.mxu0 }
  0xf5   : > { %v339_v13 = vadd.f32 %v333_v12, %v233_v11 }
  0xf6   : > { %v571_v14 = vpop.f32.mrf.mxu0  ;;  %344 = sbr.rel (%p520_p6) target bundleno = 480 (0x1e0), region = 48 }
  0xf7   : > { %340 = vst [vmem:[#allocation2] sm:$0x3] %v339_v13 }
  0xf8   : > { %v336_v15 = vpop.f32.mrf.mxu0 }
  0xfa   : > { %v572_v16 = vpop.f32.mrf.mxu0 }
  0xfb   : > { %v370_v17 = vld [vmem:[%s809_s3 + $0x78] sm:$0xff]  ;;  %v675_v18 = vmov 0.0   ;;  %v369_v19 = vld [vmem:[%s809_s3 + $0x70] sm:$0xff]  ;;  %vm676_vm1 = vmmov 0   ;;  %v368_v20 = vld [vmem:[%s809_s3 + $0x68] sm:$0xff]  ;;  %vm448_vm2 = vcmask 9216  }
  0xfc   : > { %573 = vmatprep.subr.mxu0 %v675_v18  ;;  %605 = vmatprep.mubr.msk.f32.mxu0 %vm676_vm1, %v675_v18  ;;  %v367_v21 = vld [vmem:[%s809_s3 + $0x60] sm:$0xff]  ;;  %v366_v22 = vld [vmem:[%s809_s3 + $0x58] sm:$0xff]  ;;  %v365_v23 = vld [vmem:[%s809_s3 + $0x50] sm:$0xff] }
  0xfd   : > { %574 = vmatpush3.msra.mxu0 %v370_v17  ;;  %v364_v24 = vld [vmem:[%s809_s3 + $0x48] sm:$0xff]  ;;  %v363_v25 = vld [vmem:[%s809_s3 + $0x40] sm:$0xff]  ;;  %v362_v26 = vld [vmem:[%s809_s3 + $0x38] sm:$0xff] }
  0xfe   : > { %575 = vmatprep.subr.mxu0 %v675_v18  ;;  %v361_v27 = vld [vmem:[%s809_s3 + $0x30] sm:$0xff]  ;;  %v360_v28 = vld [vmem:[%s809_s3 + $0x28] sm:$0xff]  ;;  %v359_v29 = vld [vmem:[%s809_s3 + $0x20] sm:$0xff] }
  0xff   : > { %576 = vmatpush3.msra.mxu0 %v369_v19  ;;  %v345_v30 = vld [vmem:[#allocation2] sm:$0x3]  ;;  %v358_v32 = vld [vmem:[%s809_s3 + $0x18] sm:$0xff]  ;;  %v357_v33 = vld [vmem:[%s809_s3 + $0x10] sm:$0xff] }
 0x100   : > { %577 = vmatprep.subr.mxu0 %v675_v18  ;;  %v521_v31 = vld [vmem:[%s808_s2] ss:$0 sm:$0xff]  ;;  %v356_v35 = vld [vmem:[%s809_s3 + $0x8] sm:$0xff] }
 0x101   : > { %578 = vmatpush3.msra.mxu0 %v368_v20  ;;  %v353_v34 = vadd.f32 %v521_v31, %v345_v30  ;;  %v355_v36 = vld [vmem:[%s809_s3] sm:$0xff] }
 0x102   : > { %579 = vmatprep.subr.mxu0 %v675_v18  ;;  %v522_v38 = vld [vmem:[%s810_s4] ss:$0 sm:$0xff] }
 0x103   : > { %580 = vmatpush3.msra.mxu0 %v367_v21  ;;  %v354_v37 = vmax.f32 %v353_v34, 0.0 }
 0x104   : > { %581 = vmatprep.subr.mxu0 %v675_v18 }
 0x105   : > { %582 = vmatpush3.msra.mxu0 %v366_v22 }
 0x106   : > { %583 = vmatprep.subr.mxu0 %v675_v18 }
 0x107   : > { %584 = vmatpush3.msra.mxu0 %v365_v23 }
 0x108   : > { %585 = vmatprep.subr.mxu0 %v675_v18 }
 0x109   : > { %586 = vmatpush3.msra.mxu0 %v364_v24 }
 0x10a   : > { %587 = vmatprep.subr.mxu0 %v675_v18 }
 0x10b   : > { %588 = vmatpush3.msra.mxu0 %v363_v25 }
 0x10c   : > { %589 = vmatprep.subr.mxu0 %v675_v18 }
 0x10d   : > { %590 = vmatpush3.msra.mxu0 %v362_v26 }
 0x10e   : > { %591 = vmatprep.subr.mxu0 %v675_v18 }
 0x10f   : > { %592 = vmatpush3.msra.mxu0 %v361_v27 }
 0x110   : > { %593 = vmatprep.subr.mxu0 %v675_v18 }
 0x111   : > { %594 = vmatpush3.msra.mxu0 %v360_v28 }
 0x112   : > { %595 = vmatprep.subr.mxu0 %v675_v18 }
 0x113   : > { %596 = vmatpush3.msra.mxu0 %v359_v29 }
 0x114   : > { %597 = vmatprep.subr.mxu0 %v675_v18 }
 0x115   : > { %598 = vmatpush3.msra.mxu0 %v358_v32 }
 0x116   : > { %599 = vmatprep.subr.mxu0 %v675_v18 }
 0x117   : > { %600 = vmatpush3.msra.mxu0 %v357_v33 }
 0x118   : > { %601 = vmatprep.subr.mxu0 %v675_v18 }
 0x119   : > { %602 = vmatpush3.msra.mxu0 %v356_v35 }
 0x11a   : > { %603 = vmatprep.subr.mxu0 %v675_v18 }
 0x11b   : > { %604 = vmatpush3.msra.mxu0 %v355_v36 }
 0x11c   : > { %606 = vmatmul.mubr.f32.vlgmr.msra.gmra.mxu0 %v354_v37 }
 0x1dc   : > { %v444_v39 = vpop.f32.mrf.mxu0 }
 0x1dd   : > { %v445_v40 = vadd.f32 %v522_v38, %v444_v39 }
 0x1de   : > { %v607_v41 = vpop.f32.mrf.mxu0 }
 0x1df   : > { %449 = vst.msk [vmem:[#allocation3] sm:$0x3] %vm448_vm2, %v445_v40 }
 0x1e0 PF: > { %p612_p7 = scmp.eq.s32.totalorder %s714_s19, 1  ;;  %s677_s21 = smov [#allocation3]  }
 0x1e1   : > { %s457_s22 = sshll.u32 %s677_s21, 4  ;;  %s458_s22 = int_to_ptr.vmem [resolvable:$true] %s457_s22 }
 0x1e2   : > { %s636_s23 = scalar_lea.vmem %s458_s22, 32  ;;  %p643_p11 = scmp.lt.s32.totalorder %s458_s22, %s458_s22 }
 0x1e3   : > { %p637_p8 = scmp.ne.s32.totalorder %s458_s22, %s636_s23  ;;  %p644_p12 = scmp.lt.s32.totalorder %s636_s23, %s636_s23 }
 0x1e5   : > { %p638_p9 = pnand %p637_p8, %p612_p7  ;;  %p645_p13 = por %p644_p12, %p643_p11 }
 0x1e7   : > { %p639_p10 = pneg %p638_p9 }
 0x1e9   : > { %p646_p0 = pnand %p645_p13, %p639_p10 }
 0x1eb   : > { %649 = shalt.err (!%p646_p0)
}
 0x1ec   : > { %609 = dma.vmem_to_hbm [thread:$0]  (%p612_p7), %s458_s22, 32, %s811_s5, [#allocation4]  }
 0x1ed   : > { %665 = dma.done.wait (%p612_p7), [#allocation4], 32  }
 0x1ee   : > { %667 = vsyncadd (%p612_p7), [#allocation4], 4294967264 }
 0x1ef PF: > { %s16_s18 = sadd.s32 1, %s670_s18  }
 0x1f0   : > { %p13_p1 = scmp.ge.s32.totalorder %s16_s18, 4  }
 0x1f2   :  { %15 = sbr.rel (!%p13_p1) target bundleno = 1 (0x1), region = 78 }
 0x1f7   :  { %470 = vsyncpa [#allocation4], 1 }
 0x1f8   :  { %472 = vsyncpa [#allocation4 + $0x1], 1 }

</bundles_post_ra>
